<compile_context>
chip_gen: v5e
topology: v5e:2x2
jax: 0.10.0
libtpu: 0.0.40
codegen_flags: <defaults>
</compile_context>

<pallas_src>
import functools
import math

import jax
import jax.numpy as jnp
from jax.experimental import pallas as pl
from jax.experimental.pallas import tpu as pltpu


# ---------------------------------------------------------------------------
# Pallas kernel: fused NeuMF forward for one batch tile
# ---------------------------------------------------------------------------
def ncf_kernel(*refs, num_layers):
    """refs layout:
      ug  (TB, F)    GMF user embeddings, bf16                  (VMEM)
      ig  (TB, F)    GMF item embeddings, bf16                  (VMEM)
      xm  (TB, 2H)   concat(MLP user, MLP item) embeddings, bf16 (VMEM)
      [w_l (d_in, d_out) bf16, b_l (1, d_out) f32] * num_layers  MLP tower
      wpg (F, 1) bf16, wpm (F, 1) bf16                          predict weight, split
      bp  (1,) f32                                              predict bias (SMEM)
      o   (TB, 1) f32                                           predictions (output)
    """
    ug, ig, xm = refs[0], refs[1], refs[2]
    idx = 3
    layers = []
    for _ in range(num_layers):
        layers.append((refs[idx], refs[idx + 1]))
        idx += 2
    wpg, wpm, bp = refs[idx], refs[idx + 1], refs[idx + 2]
    o_ref = refs[idx + 3]

    # ---- GMF branch: elementwise product in f32 (v5e VPU has no bf16) ------
    gmf = (ug[...].astype(jnp.float32) * ig[...].astype(jnp.float32))
    gmf = gmf.astype(jnp.bfloat16)                       # (TB, F) for the MXU

    # ---- MLP tower: bf16 MXU matmuls, f32 accumulation ---------------------
    # torch.cat((embed_user_MLP, embed_item_MLP), -1) was folded in the
    # wrapper, so layer 1 is a single K=2H matmul.
    h = xm[...]                                          # (TB, 2H) bf16
    for (w, b) in layers:                                # static unroll
        h = jnp.dot(h, w[...], preferred_element_type=jnp.float32) + b[...]
        h = jnp.maximum(h, 0.0).astype(jnp.bfloat16)     # ReLU (+ bf16 for MXU)

    # ---- predict layer: cat([gmf, mlp]) @ Wp + bp  (concat folded) ---------
    # Two (TB, F) @ (F, 1) column dots keep the batch dim in sublanes; no
    # cross-lane reduce / relayout before the store.
    pred = (jnp.dot(gmf, wpg[...], preferred_element_type=jnp.float32)
            + jnp.dot(h, wpm[...], preferred_element_type=jnp.float32)
            + bp[0])                                     # (TB, 1) f32
    o_ref[...] = pred


# ---------------------------------------------------------------------------
# Wrapper
# ---------------------------------------------------------------------------
def _choose_batch_tile(B, tile_b):
    """Largest batch tile <= tile_b that divides B and is a multiple of 8;
    keep grid >= 2 when possible so both v7x TensorCores get work."""
    candidates = [tb for tb in range(8, min(tile_b, B) + 1, 8) if B % tb == 0]
    tb = max(candidates) if candidates else B
    if B // tb < 2 and B % 16 == 0:
        tb = B // 2
    return tb


def ncf_forward(params, user, item, *, num_layers, tile_b=512):
    # Embedding lookups (XLA gathers); kernel consumes dense per-tile slabs.
    ug = params["embed_user_GMF"][user]                 # (B, F)   bf16
    ig = params["embed_item_GMF"][item]                 # (B, F)   bf16
    um = params["embed_user_MLP"][user]                 # (B, H)   bf16
    im = params["embed_item_MLP"][item]                 # (B, H)   bf16
    xm = jnp.concatenate([um, im], axis=-1)             # (B, 2H)  one slab

    B, F = ug.shape
    K = xm.shape[1]
    TB = _choose_batch_tile(B, tile_b)
    assert B % TB == 0, "batch must be a multiple of the batch tile"
    grid = (B // TB,)

    def tile_spec(d):                                   # batch-tiled operand
        return pl.BlockSpec((TB, d), lambda i: (i, 0))

    def rep_spec(shape):                                # weight: VMEM-resident
        return pl.BlockSpec(shape, lambda i: (0,) * len(shape))

    args = [ug, ig, xm]
    specs = [tile_spec(F), tile_spec(F), tile_spec(K)]
    for w, b in zip(params["mlp_ws"], params["mlp_bs"]):
        args += [w, b]
        specs += [rep_spec(w.shape), rep_spec(b.shape)]
    args += [params["wp_gmf"], params["wp_mlp"], params["bp"]]
    specs += [rep_spec(params["wp_gmf"].shape),
              rep_spec(params["wp_mlp"].shape),
              pl.BlockSpec(memory_space=pltpu.MemorySpace.SMEM)]

    kernel = functools.partial(ncf_kernel, num_layers=num_layers)
    out = pl.pallas_call(
        kernel,
        out_shape=jax.ShapeDtypeStruct((B, 1), jnp.float32),
        grid=grid,
        in_specs=specs,
        out_specs=pl.BlockSpec((TB, 1), lambda i: (i, 0)),
        compiler_params=pltpu.CompilerParams(
            dimension_semantics=("parallel",)),
    )(*args)
    return out.reshape(-1)                               # prediction.view(-1)


# ---------------------------------------------------------------------------
# Parameter init (mirrors NCF._init_weight_ shapes/dists; weights stored
# pre-transposed / pre-split / bf16 once so the hot path does no layout work)
# ---------------------------------------------------------------------------
def init_params(key, user_num, item_num, factor_num, num_layers):
    F = factor_num
    H = F * 2 ** (num_layers - 1)
    ks = jax.random.split(key, 5 + num_layers)
    p = {}
    # nn.init.normal_(std=0.01) embeddings, stored bf16
    p["embed_user_GMF"] = (0.01 * jax.random.normal(ks[0], (user_num, F))).astype(jnp.bfloat16)
    p["embed_item_GMF"] = (0.01 * jax.random.normal(ks[1], (item_num, F))).astype(jnp.bfloat16)
    p["embed_user_MLP"] = (0.01 * jax.random.normal(ks[2], (user_num, H))).astype(jnp.bfloat16)
    p["embed_item_MLP"] = (0.01 * jax.random.normal(ks[3], (item_num, H))).astype(jnp.bfloat16)
    # MLP tower: Linear(F*2**(L-i) -> F*2**(L-i-1)), xavier_uniform, zero bias.
    mlp_ws, mlp_bs = [], []
    for i in range(num_layers):
        d_in = F * 2 ** (num_layers - i)
        d_out = d_in // 2
        bound = math.sqrt(6.0 / (d_in + d_out))
        w = jax.random.uniform(ks[4 + i], (d_in, d_out), jnp.float32, -bound, bound)
        mlp_ws.append(w.astype(jnp.bfloat16))            # stored as (in, out), bf16
        mlp_bs.append(jnp.zeros((1, d_out), jnp.float32))
    p["mlp_ws"] = mlp_ws
    p["mlp_bs"] = mlp_bs
    # predict layer: Linear(2F -> 1), kaiming_uniform(a=1, sigmoid), zero bias.
    fan_in = 2 * F
    bound = math.sqrt(3.0 / fan_in)
    wp = jax.random.uniform(ks[4 + num_layers], (1, 2 * F), jnp.float32, -bound, bound)
    p["wp_gmf"] = wp[:, :F].T.astype(jnp.bfloat16)       # (F, 1)
    p["wp_mlp"] = wp[:, F:].T.astype(jnp.bfloat16)       # (F, 1)
    p["bp"] = jnp.zeros((1,), jnp.float32)
    return p


# ---------------------------------------------------------------------------
# Pure-JAX reference (NeuMF forward, eval-mode dropout), mirroring the
# kernel's explicit bf16-input / f32-accumulation matmul contract.
# ---------------------------------------------------------------------------
def reference(params, user, item, num_layers):
    ug = params["embed_user_GMF"][user].astype(jnp.float32)
    ig = params["embed_item_GMF"][item].astype(jnp.float32)
    gmf = (ug * ig).astype(jnp.bfloat16)
    um = params["embed_user_MLP"][user]
    im = params["embed_item_MLP"][item]
    h = jnp.concatenate([um, im], axis=-1)               # (B, 2H) bf16
    for w, b in zip(params["mlp_ws"], params["mlp_bs"]):
        h = jnp.dot(h, w, preferred_element_type=jnp.float32) + b
        h = jnp.maximum(h, 0.0).astype(jnp.bfloat16)
    pred = (jnp.dot(gmf, params["wp_gmf"], preferred_element_type=jnp.float32)
            + jnp.dot(h, params["wp_mlp"], preferred_element_type=jnp.float32)
            + params["bp"])                              # (B, 1)
    return pred.reshape(-1)


# ---------------------------------------------------------------------------
if __name__ == "__main__":
    user_num, item_num = 64, 128
    factor_num, num_layers = 32, 3          # MLP: 256 -> 128 -> 64 -> 32
    batch = 1024                            # two 512-row tiles (parallel grid)

    key = jax.random.PRNGKey(0)
    k_p, k_u, k_i = jax.random.split(key, 3)
    params = init_params(k_p, user_num, item_num, factor_num, num_layers)
    user = jax.random.randint(k_u, (batch,), 0, user_num)
    item = jax.random.randint(k_i, (batch,), 0, item_num)

    pred = jax.block_until_ready(
        ncf_forward(params, user, item, num_layers=num_layers))
    ref = jax.block_until_ready(reference(params, user, item, num_layers))

    assert pred.shape == (batch,)
    assert jnp.allclose(pred, ref, atol=1e-4, rtol=1e-2), "mismatch vs JAX reference"
    print("KERNEL_OK")
</pallas_src>

<mosaic_0001>
module attributes {stable_mosaic.version = 11 : i64} {
  func.func @ncf_kernel(%arg0: i32, %arg1: memref<512x32xbf16, #tpu.memory_space<vmem>>, %arg2: memref<512x32xbf16, #tpu.memory_space<vmem>>, %arg3: memref<512x256xbf16, #tpu.memory_space<vmem>>, %arg4: memref<256x128xbf16, #tpu.memory_space<vmem>>, %arg5: memref<1x128xf32, #tpu.memory_space<vmem>>, %arg6: memref<128x64xbf16, #tpu.memory_space<vmem>>, %arg7: memref<1x64xf32, #tpu.memory_space<vmem>>, %arg8: memref<64x32xbf16, #tpu.memory_space<vmem>>, %arg9: memref<1x32xf32, #tpu.memory_space<vmem>>, %arg10: memref<32x1xbf16, #tpu.memory_space<vmem>>, %arg11: memref<32x1xbf16, #tpu.memory_space<vmem>>, %arg12: memref<1xf32, #tpu.memory_space<smem>>, %arg13: memref<512x1xf32, #tpu.memory_space<vmem>>) attributes {dimension_semantics = [#tpu.dimension_semantics<parallel>], iteration_bounds = array<i64: 2>, scalar_prefetch = 0 : i64, scratch_operands = 0 : i64, tpu.core_type = #tpu.core_type<tc>, window_params = [{transform_indices = @transform_0, window_bounds = array<i64: 512, 32>}, {transform_indices = @transform_1, window_bounds = array<i64: 512, 32>}, {transform_indices = @transform_2, window_bounds = array<i64: 512, 256>}, {pipeline_mode = #tpu.pipeline_mode<synchronous>, transform_indices = @transform_3, window_bounds = array<i64: 256, 128>}, {pipeline_mode = #tpu.pipeline_mode<synchronous>, transform_indices = @transform_4, window_bounds = array<i64: 1, 128>}, {pipeline_mode = #tpu.pipeline_mode<synchronous>, transform_indices = @transform_5, window_bounds = array<i64: 128, 64>}, {pipeline_mode = #tpu.pipeline_mode<synchronous>, transform_indices = @transform_6, window_bounds = array<i64: 1, 64>}, {pipeline_mode = #tpu.pipeline_mode<synchronous>, transform_indices = @transform_7, window_bounds = array<i64: 64, 32>}, {pipeline_mode = #tpu.pipeline_mode<synchronous>, transform_indices = @transform_8, window_bounds = array<i64: 1, 32>}, {pipeline_mode = #tpu.pipeline_mode<synchronous>, transform_indices = @transform_9, window_bounds = array<i64: 32, 1>}, {pipeline_mode = #tpu.pipeline_mode<synchronous>, transform_indices = @transform_10, window_bounds = array<i64: 32, 1>}, {transform_indices = @transform_11, window_bounds = array<i64: 1>}, {transform_indices = @transform_12, window_bounds = array<i64: 512, 1>}]} {
    %c0 = arith.constant 0 : index
    %c0_0 = arith.constant 0 : index
    %0 = vector.load %arg1[%c0, %c0_0] : memref<512x32xbf16, #tpu.memory_space<vmem>>, vector<512x32xbf16>
    %1 = arith.extf %0 : vector<512x32xbf16> to vector<512x32xf32>
    %c0_1 = arith.constant 0 : index
    %c0_2 = arith.constant 0 : index
    %2 = vector.load %arg2[%c0_1, %c0_2] : memref<512x32xbf16, #tpu.memory_space<vmem>>, vector<512x32xbf16>
    %3 = arith.extf %2 : vector<512x32xbf16> to vector<512x32xf32>
    %4 = arith.mulf %1, %3 : vector<512x32xf32>
    %5 = arith.truncf %4 : vector<512x32xf32> to vector<512x32xbf16>
    %c0_3 = arith.constant 0 : index
    %c0_4 = arith.constant 0 : index
    %6 = vector.load %arg3[%c0_3, %c0_4] : memref<512x256xbf16, #tpu.memory_space<vmem>>, vector<512x256xbf16>
    %c0_5 = arith.constant 0 : index
    %c0_6 = arith.constant 0 : index
    %7 = vector.load %arg4[%c0_5, %c0_6] : memref<256x128xbf16, #tpu.memory_space<vmem>>, vector<256x128xbf16>
    %cst = arith.constant dense<0.000000e+00> : vector<512x128xf32>
    %8 = tpu.matmul %6, %7, %cst {dimension_numbers = #tpu.dot_dimension_numbers<[1], [0], [0], [1], [0, 0, 1, 1], [], []>} : vector<512x256xbf16>, vector<256x128xbf16>, vector<512x128xf32> -> vector<512x128xf32>
    %c0_7 = arith.constant 0 : index
    %c0_8 = arith.constant 0 : index
    %9 = vector.load %arg5[%c0_7, %c0_8] : memref<1x128xf32, #tpu.memory_space<vmem>>, vector<1x128xf32>
    %10 = vector.broadcast %9 : vector<1x128xf32> to vector<512x128xf32>
    %11 = arith.addf %8, %10 : vector<512x128xf32>
    %cst_9 = arith.constant 0.000000e+00 : f32
    %12 = vector.broadcast %cst_9 : f32 to vector<512x128xf32>
    %13 = arith.maximumf %11, %12 : vector<512x128xf32>
    %14 = arith.truncf %13 : vector<512x128xf32> to vector<512x128xbf16>
    %c0_10 = arith.constant 0 : index
    %c0_11 = arith.constant 0 : index
    %15 = vector.load %arg6[%c0_10, %c0_11] : memref<128x64xbf16, #tpu.memory_space<vmem>>, vector<128x64xbf16>
    %cst_12 = arith.constant dense<0.000000e+00> : vector<512x64xf32>
    %16 = tpu.matmul %14, %15, %cst_12 {dimension_numbers = #tpu.dot_dimension_numbers<[1], [0], [0], [1], [0, 0, 1, 1], [], []>} : vector<512x128xbf16>, vector<128x64xbf16>, vector<512x64xf32> -> vector<512x64xf32>
    %c0_13 = arith.constant 0 : index
    %c0_14 = arith.constant 0 : index
    %17 = vector.load %arg7[%c0_13, %c0_14] : memref<1x64xf32, #tpu.memory_space<vmem>>, vector<1x64xf32>
    %18 = vector.broadcast %17 : vector<1x64xf32> to vector<512x64xf32>
    %19 = arith.addf %16, %18 : vector<512x64xf32>
    %cst_15 = arith.constant 0.000000e+00 : f32
    %20 = vector.broadcast %cst_15 : f32 to vector<512x64xf32>
    %21 = arith.maximumf %19, %20 : vector<512x64xf32>
    %22 = arith.truncf %21 : vector<512x64xf32> to vector<512x64xbf16>
    %c0_16 = arith.constant 0 : index
    %c0_17 = arith.constant 0 : index
    %23 = vector.load %arg8[%c0_16, %c0_17] : memref<64x32xbf16, #tpu.memory_space<vmem>>, vector<64x32xbf16>
    %cst_18 = arith.constant dense<0.000000e+00> : vector<512x32xf32>
    %24 = tpu.matmul %22, %23, %cst_18 {dimension_numbers = #tpu.dot_dimension_numbers<[1], [0], [0], [1], [0, 0, 1, 1], [], []>} : vector<512x64xbf16>, vector<64x32xbf16>, vector<512x32xf32> -> vector<512x32xf32>
    %c0_19 = arith.constant 0 : index
    %c0_20 = arith.constant 0 : index
    %25 = vector.load %arg9[%c0_19, %c0_20] : memref<1x32xf32, #tpu.memory_space<vmem>>, vector<1x32xf32>
    %26 = vector.broadcast %25 : vector<1x32xf32> to vector<512x32xf32>
    %27 = arith.addf %24, %26 : vector<512x32xf32>
    %cst_21 = arith.constant 0.000000e+00 : f32
    %28 = vector.broadcast %cst_21 : f32 to vector<512x32xf32>
    %29 = arith.maximumf %27, %28 : vector<512x32xf32>
    %30 = arith.truncf %29 : vector<512x32xf32> to vector<512x32xbf16>
    %c0_22 = arith.constant 0 : index
    %c0_23 = arith.constant 0 : index
    %31 = vector.load %arg10[%c0_22, %c0_23] : memref<32x1xbf16, #tpu.memory_space<vmem>>, vector<32x1xbf16>
    %cst_24 = arith.constant dense<0.000000e+00> : vector<512x1xf32>
    %32 = tpu.matmul %5, %31, %cst_24 {dimension_numbers = #tpu.dot_dimension_numbers<[1], [0], [0], [1], [0, 0, 1, 1], [], []>} : vector<512x32xbf16>, vector<32x1xbf16>, vector<512x1xf32> -> vector<512x1xf32>
    %c0_25 = arith.constant 0 : index
    %c0_26 = arith.constant 0 : index
    %33 = vector.load %arg11[%c0_25, %c0_26] : memref<32x1xbf16, #tpu.memory_space<vmem>>, vector<32x1xbf16>
    %cst_27 = arith.constant dense<0.000000e+00> : vector<512x1xf32>
    %34 = tpu.matmul %30, %33, %cst_27 {dimension_numbers = #tpu.dot_dimension_numbers<[1], [0], [0], [1], [0, 0, 1, 1], [], []>} : vector<512x32xbf16>, vector<32x1xbf16>, vector<512x1xf32> -> vector<512x1xf32>
    %35 = arith.addf %32, %34 : vector<512x1xf32>
    %c0_28 = arith.constant 0 : index
    %36 = memref.load %arg12[%c0_28] : memref<1xf32, #tpu.memory_space<smem>>
    %37 = vector.broadcast %36 : f32 to vector<512x1xf32>
    %38 = arith.addf %35, %37 : vector<512x1xf32>
    %c0_29 = arith.constant 0 : index
    %c0_30 = arith.constant 0 : index
    %39 = vector.load %arg13[%c0_29, %c0_30] : memref<512x1xf32, #tpu.memory_space<vmem>>, vector<512x1xf32>
    tpu.vector_store %arg13[%c0_29, %c0_30], %38 {strides = array<i32>} : memref<512x1xf32, #tpu.memory_space<vmem>>, vector<512x1xf32>,
    return
  }
  func.func @transform_0(%arg0: i32) -> (i32, i32) {
    %c0_i32 = arith.constant 0 : i32
    %c0_i32_0 = arith.constant 0 : i32
    return %arg0, %c0_i32 : i32, i32
  }
  func.func @transform_1(%arg0: i32) -> (i32, i32) {
    %c0_i32 = arith.constant 0 : i32
    %c0_i32_0 = arith.constant 0 : i32
    return %arg0, %c0_i32 : i32, i32
  }
  func.func @transform_2(%arg0: i32) -> (i32, i32) {
    %c0_i32 = arith.constant 0 : i32
    %c0_i32_0 = arith.constant 0 : i32
    return %arg0, %c0_i32 : i32, i32
  }
  func.func @transform_3(%arg0: i32) -> (i32, i32) {
    %c0_i32 = arith.constant 0 : i32
    %c0_i32_0 = arith.constant 0 : i32
    %c0_i32_1 = arith.constant 0 : i32
    return %c0_i32, %c0_i32_0 : i32, i32
  }
  func.func @transform_4(%arg0: i32) -> (i32, i32) {
    %c0_i32 = arith.constant 0 : i32
    %c0_i32_0 = arith.constant 0 : i32
    %c0_i32_1 = arith.constant 0 : i32
    return %c0_i32, %c0_i32_0 : i32, i32
  }
  func.func @transform_5(%arg0: i32) -> (i32, i32) {
    %c0_i32 = arith.constant 0 : i32
    %c0_i32_0 = arith.constant 0 : i32
    %c0_i32_1 = arith.constant 0 : i32
    return %c0_i32, %c0_i32_0 : i32, i32
  }
  func.func @transform_6(%arg0: i32) -> (i32, i32) {
    %c0_i32 = arith.constant 0 : i32
    %c0_i32_0 = arith.constant 0 : i32
    %c0_i32_1 = arith.constant 0 : i32
    return %c0_i32, %c0_i32_0 : i32, i32
  }
  func.func @transform_7(%arg0: i32) -> (i32, i32) {
    %c0_i32 = arith.constant 0 : i32
    %c0_i32_0 = arith.constant 0 : i32
    %c0_i32_1 = arith.constant 0 : i32
    return %c0_i32, %c0_i32_0 : i32, i32
  }
  func.func @transform_8(%arg0: i32) -> (i32, i32) {
    %c0_i32 = arith.constant 0 : i32
    %c0_i32_0 = arith.constant 0 : i32
    %c0_i32_1 = arith.constant 0 : i32
    return %c0_i32, %c0_i32_0 : i32, i32
  }
  func.func @transform_9(%arg0: i32) -> (i32, i32) {
    %c0_i32 = arith.constant 0 : i32
    %c0_i32_0 = arith.constant 0 : i32
    %c0_i32_1 = arith.constant 0 : i32
    return %c0_i32, %c0_i32_0 : i32, i32
  }
  func.func @transform_10(%arg0: i32) -> (i32, i32) {
    %c0_i32 = arith.constant 0 : i32
    %c0_i32_0 = arith.constant 0 : i32
    %c0_i32_1 = arith.constant 0 : i32
    return %c0_i32, %c0_i32_0 : i32, i32
  }
  func.func @transform_11(%arg0: i32) -> i32 {
    %c0_i32 = arith.constant 0 : i32
    %c0_i32_0 = arith.constant 0 : i32
    return %c0_i32 : i32
  }
  func.func @transform_12(%arg0: i32) -> (i32, i32) {
    %c0_i32 = arith.constant 0 : i32
    %c0_i32_0 = arith.constant 0 : i32
    return %arg0, %c0_i32 : i32, i32
  }
}

</mosaic_0001>

<bundles_post_ra>
// kernel: tpu_custom_call.1
= control target key start
LH: loop header
LB: loop body
LE: loop exit
PB: predicated region body
PF: predicated region fallthrough
CT: control target
= control target key end

     0   :  { %s4286_s23 = smov 0   ;;  %s5354_s0 = inlined_call_operand.vmem [shape: bf16[1024,32], index: 0, kind: input, shape index: {}]   ;;  %s5355_s1 = inlined_call_operand.vmem [shape: bf16[1024,32], index: 1, kind: input, shape index: {}]   ;;  %s5356_s2 = inlined_call_operand.vmem [shape: bf16[1024,256], index: 2, kind: input, shape index: {}]   ;;  %s5357_s3 = inlined_call_operand.vmem [shape: bf16[256,128], index: 3, kind: input, shape index: {}]   ;;  %s5358_s4 = inlined_call_operand.vmem [shape: f32[1,128], index: 4, kind: input, shape index: {}]   ;;  %s5359_s5 = inlined_call_operand.vmem [shape: bf16[128,64], index: 5, kind: input, shape index: {}]   ;;  %s5360_s6 = inlined_call_operand.vmem [shape: f32[1,64], index: 6, kind: input, shape index: {}]   ;;  %s5361_s7 = inlined_call_operand.vmem [shape: bf16[64,32], index: 7, kind: input, shape index: {}]   ;;  %s5362_s8 = inlined_call_operand.vmem [shape: f32[1,32], index: 8, kind: input, shape index: {}]   ;;  %s5363_s9 = inlined_call_operand.vmem [shape: bf16[32,1], index: 9, kind: input, shape index: {}]   ;;  %s5364_s10 = inlined_call_operand.vmem [shape: bf16[32,1], index: 10, kind: input, shape index: {}]   ;;  %s5365_s11 = inlined_call_operand.<no memory space> [shape: f32[1], index: 11, kind: input, shape index: {}]   ;;  %s5366_s12 = inlined_call_operand.vmem [shape: f32[1024,1], index: 12, kind: output, shape index: {}]  }
   0x1   :  { %17 = sst [smem:[#allocation2]] %s5365_s11 }
   0x2 LB: > { %s3273_s24 = sadd.s32 4294967295, %s4216_s23   ;;  %p3277_p0 = scmp.ge.s32.totalorder %s4216_s23, 1  ;;  %s4216_s23 = sphi %s4286_s23, %s23_s23  }
   0x3   : > { %p387_p1 = scmp.lt.s32.totalorder %s4216_s23, 3 }
   0x5   : > { %p388_p2 = pnand %p3277_p0, %p387_p1 }
   0x6   : > { %s3278_s30 = sshll.u32 (!%p388_p2), %s3273_s24, 6  ;;  %s3062_s13 = sld [smem:[#allocation2]] (!%p388_p2) }
   0x7   : > { %391 = sbr.rel (%p388_p2) target bundleno = 1739 (0x6cb), region = 68  ;;  %p441_p3 = scmp.lt.s32.totalorder (!%p388_p2), %s3278_s30, 127 }
   0xc   : > { %v3841_v0 = vld [vmem:[%s5357_s3 + $0x38] sm:$0xff]  ;;  %v3840_v1 = vld [vmem:[%s5357_s3 + $0x30] sm:$0xff]  ;;  %v3839_v2 = vld [vmem:[%s5357_s3 + $0x28] sm:$0xff]  ;;  %s5368_s30 = smov (!%p441_p3, %s3278_s30), 127  ;;  %vm2137_vm0 = vcmask 523264   ;;  %vm2519_vm1 = vcmask 261120  }
   0xd   : > { %4184 = vmatpush.bf16.msra.mxu1 %v3841_v0  ;;  %1334 = vmatpush.bf16.msra.mxu0 %v3841_v0  ;;  %v3838_v3 = vld [vmem:[%s5357_s3 + $0x20] sm:$0xff]  ;;  %v3837_v4 = vld [vmem:[%s5357_s3 + $0x18] sm:$0xff]  ;;  %v3836_v5 = vld [vmem:[%s5357_s3 + $0x10] sm:$0xff]  ;;  %s3769_s19 = sshll.u32 %s5368_s30, 3  ;;  %s3279_s24 = sshll.u32 %s5368_s30, 2  ;;  %vm3128_vm2 = vcmask 7168  }
   0xe   : > { %v3835_v6 = vld [vmem:[%s5357_s3 + $0x8] sm:$0xff]  ;;  %s4323_s25 = scalar_lea.vmem %s5356_s2, %s3769_s19  ;;  %v3834_v7 = vld [vmem:[%s5357_s3] sm:$0xff]  ;;  %v3849_v10 = vld [vmem:[%s5357_s3 + $0x78] sm:$0xff]  ;;  %s4860_s27 = scalar_lea.vmem %s5354_s0, %s3279_s24 }
   0xf   : > { %v3417_v8 = vld [vmem:[%s4323_s25 + $0x100] sm:$0xf]  ;;  %v3803_v9 = vld [vmem:[%s4323_s25 + $0x104] sm:$0xf0]  ;;  %v3848_v12 = vld [vmem:[%s5357_s3 + $0x70] sm:$0xff]  ;;  %s4865_s29 = scalar_lea.vmem %s5355_s1, %s3279_s24  ;;  %s5013_s16 = scalar_lea.vmem %s5366_s12, %s3769_s19 }
  0x10   : > { %v3418_v11 = vor.u32 %v3803_v9, %v3417_v8  ;;  %v3425_v13 = vld [vmem:[%s4323_s25 + $0x110] sm:$0xf]  ;;  %v3805_v14 = vld [vmem:[%s4323_s25 + $0x114] sm:$0xf0]  ;;  %v3433_v16 = vld [vmem:[%s4323_s25 + $0x120] sm:$0xf] }
  0x11   : > { %4185 = vmatpush.bf16.msra.mxu1 %v3840_v1  ;;  %1335 = vmatpush.bf16.msra.mxu0 %v3840_v1  ;;  %v3426_v15 = vor.u32 %v3805_v14, %v3425_v13  ;;  %v3807_v17 = vld [vmem:[%s4323_s25 + $0x124] sm:$0xf0]  ;;  %v3441_v20 = vld [vmem:[%s4323_s25 + $0x130] sm:$0xf]  ;;  %v3809_v21 = vld [vmem:[%s4323_s25 + $0x134] sm:$0xf0] }
  0x12   : > { %v3434_v18 = vor.u32 %v3807_v17, %v3433_v16  ;;  %v3847_v19 = vld [vmem:[%s5357_s3 + $0x68] sm:$0xff]  ;;  %v3442_v22 = vor.u32 %v3809_v21, %v3441_v20  ;;  %v3449_v23 = vld [vmem:[%s4323_s25 + $0x140] sm:$0xf]  ;;  %v3457_v27 = vld [vmem:[%s4323_s25 + $0x150] sm:$0xf] }
  0x13   : > { %v3811_v24 = vld [vmem:[%s4323_s25 + $0x144] sm:$0xf0]  ;;  %v3846_v26 = vld [vmem:[%s5357_s3 + $0x60] sm:$0xff]  ;;  %v3813_v28 = vld [vmem:[%s4323_s25 + $0x154] sm:$0xf0] }
  0x14   : > { %v3450_v25 = vor.u32 %v3811_v24, %v3449_v23  ;;  %v3458_v29 = vor.u32 %v3813_v28, %v3457_v27  ;;  %v3465_v30 = vld [vmem:[%s4323_s25 + $0x160] sm:$0xf]  ;;  %v3815_v31 = vld [vmem:[%s4323_s25 + $0x164] sm:$0xf0]  ;;  %v3845_v33 = vld [vmem:[%s5357_s3 + $0x58] sm:$0xff] }
  0x15   : > { %4186 = vmatpush.bf16.msra.mxu1 %v3839_v2  ;;  %1336 = vmatpush.bf16.msra.mxu0 %v3839_v2  ;;  %v3466_v32 = vor.u32 %v3815_v31, %v3465_v30  ;;  %v3473_v34 = vld [vmem:[%s4323_s25 + $0x170] sm:$0xf]  ;;  %v3817_v35 = vld [vmem:[%s4323_s25 + $0x174] sm:$0xf0]  ;;  %v3481_v37 = vld [vmem:[%s4323_s25 + $0x180] sm:$0xf] }
  0x16   : > { %v3474_v36 = vor.u32 %v3817_v35, %v3473_v34  ;;  %v3819_v38 = vld [vmem:[%s4323_s25 + $0x184] sm:$0xf0]  ;;  %v3844_v41 = vld [vmem:[%s5357_s3 + $0x50] sm:$0xff]  ;;  %v3821_v44 = vld [vmem:[%s4323_s25 + $0x194] sm:$0xf0] }
  0x17   : > { %v3482_v39 = vor.u32 %v3819_v38, %v3481_v37  ;;  %v3489_v43 = vld [vmem:[%s4323_s25 + $0x190] sm:$0xf]  ;;  %v3497_v48 = vld [vmem:[%s4323_s25 + $0x1a0] sm:$0xf]  ;;  %v3823_v49 = vld [vmem:[%s4323_s25 + $0x1a4] sm:$0xf0] }
  0x18   : > { %v3490_v45 = vor.u32 %v3821_v44, %v3489_v43  ;;  %v3498_v50 = vor.u32 %v3823_v49, %v3497_v48  ;;  %v3843_v52 = vld [vmem:[%s5357_s3 + $0x48] sm:$0xff]  ;;  %v3505_v54 = vld [vmem:[%s4323_s25 + $0x1b0] sm:$0xf]  ;;  %v3825_v55 = vld [vmem:[%s4323_s25 + $0x1b4] sm:$0xf0] }
  0x19   : > { %4187 = vmatpush.bf16.msra.mxu1 %v3838_v3  ;;  %1337 = vmatpush.bf16.msra.mxu0 %v3838_v3  ;;  %v3506_v56 = vor.u32 %v3825_v55, %v3505_v54  ;;  %v3513_v59 = vld [vmem:[%s4323_s25 + $0x1c0] sm:$0xf]  ;;  %v3827_v60 = vld [vmem:[%s4323_s25 + $0x1c4] sm:$0xf0]  ;;  %v3521_v1 = vld [vmem:[%s4323_s25 + $0x1d0] sm:$0xf] }
  0x1a   : > { %v3514_v61 = vor.u32 %v3827_v60, %v3513_v59  ;;  %v3842_v63 = vld [vmem:[%s5357_s3 + $0x40] sm:$0xff]  ;;  %v3829_v2 = vld [vmem:[%s4323_s25 + $0x1d4] sm:$0xf0]  ;;  %v3297_v13 = vld [vmem:[%s4323_s25 + $0x10] sm:$0xf] }
  0x1b   : > { %v3522_v3 = vor.u32 %v3829_v2, %v3521_v1  ;;  %v3529_v9 = vld [vmem:[%s4323_s25 + $0x1e0] sm:$0xf]  ;;  %v3773_v14 = vld [vmem:[%s4323_s25 + $0x14] sm:$0xf0]  ;;  %v3537_v17 = vld [vmem:[%s4323_s25 + $0x1f0] sm:$0xf] }
  0x1c   : > { %v3305_v21 = vld [vmem:[%s4323_s25 + $0x20] sm:$0xf]  ;;  %v3777_v30 = vld [vmem:[%s4323_s25 + $0x34] sm:$0xf0]  ;;  %v3299_v34 = vld [vmem:[%s4323_s25 + $0x18] sm:$0xf0] }
  0x1d   : > { %4188 = vmatpush.bf16.msra.mxu1 %v3837_v4  ;;  %1338 = vmatpush.bf16.msra.mxu0 %v3837_v4  ;;  %v3321_v37 = vld [vmem:[%s4323_s25 + $0x40] sm:$0xf]  ;;  %v3779_v38 = vld [vmem:[%s4323_s25 + $0x44] sm:$0xf0]  ;;  %v3774_v43 = vld [vmem:[%s4323_s25 + $0x24] sm:$0xf] }
  0x1e   : > { %v3307_v44 = vld [vmem:[%s4323_s25 + $0x28] sm:$0xf0]  ;;  %v3329_v49 = vld [vmem:[%s4323_s25 + $0x50] sm:$0xf]  ;;  %v3776_v55 = vld [vmem:[%s4323_s25 + $0x34] sm:$0xf] }
  0x21   : > { %4189 = vmatpush.bf16.msra.mxu1 %v3836_v5  ;;  %1339 = vmatpush.bf16.msra.mxu0 %v3836_v5  ;;  %v3289_v5 = vld [vmem:[%s4323_s25] sm:$0xf] }
  0x25   : > { %4190 = vmatpush.bf16.msra.mxu1 %v3835_v6  ;;  %1340 = vmatpush.bf16.msra.mxu0 %v3835_v6  ;;  %v3771_v6 = vld [vmem:[%s4323_s25 + $0x4] sm:$0xf0] }
  0x29   : > { %4191 = vmatpush.bf16.msra.mxu1 %v3834_v7  ;;  %1341 = vmatpush.bf16.msra.mxu0 %v3834_v7  ;;  %v3290_v7 = vor.u32 %v3771_v6, %v3289_v5  ;;  %v3323_v5 = vld [vmem:[%s4323_s25 + $0x48] sm:$0xf0] }
  0x2c   : > { %1422 = vmatmul.bf16.vlgmr.msra.gmra.mxu1 %v3418_v11  ;;  %1342 = vmatmul.bf16.vlgmr.msra.gmra.mxu0 %v3290_v7 }
  0x2d   : > { %1503 = vmatpush.bf16.msrb.mxu1 %v3849_v10  ;;  %v3831_v10 = vld [vmem:[%s4323_s25 + $0x1e4] sm:$0xf0] }
  0x2e   : > { %v3530_v11 = vor.u32 %v3831_v10, %v3529_v9  ;;  %v3345_v9 = vld [vmem:[%s4323_s25 + $0x70] sm:$0xf]  ;;  %v3785_v10 = vld [vmem:[%s4323_s25 + $0x74] sm:$0xf0] }
  0x31   : > { %1504 = vmatpush.bf16.msrb.mxu1 %v3848_v12 }
  0x35   : > { %1505 = vmatpush.bf16.msrb.mxu1 %v3847_v19 }
  0x39   : > { %1506 = vmatpush.bf16.msrb.mxu1 %v3846_v26  ;;  %v3291_v26 = vld [vmem:[%s4323_s25 + $0x8] sm:$0xf0] }
  0x3c   : > { %1427 = vmatmul.bf16.gmra.mxu1 %v3426_v15  ;;  %v3298_v15 = vor.u32 %v3773_v14, %v3297_v13  ;;  %v3780_v14 = vld [vmem:[%s4323_s25 + $0x54] sm:$0xf] }
  0x3d   : > { %1507 = vmatpush.bf16.msrb.mxu1 %v3845_v33  ;;  %v3772_v33 = vld [vmem:[%s4323_s25 + $0x14] sm:$0xf] }
  0x3e   : > { %1347 = vmatmul.bf16.gmra.mxu0 %v3298_v15  ;;  %v3302_v35 = vor.u32 %v3772_v33, %v3299_v34  ;;  %v3331_v15 = vld [vmem:[%s4323_s25 + $0x58] sm:$0xf0]  ;;  %v3339_v33 = vld [vmem:[%s4323_s25 + $0x68] sm:$0xf0] }
  0x41   : > { %1508 = vmatpush.bf16.msrb.mxu1 %v3844_v41 }
  0x45   : > { %1509 = vmatpush.bf16.msrb.mxu1 %v3843_v52 }
  0x49   : > { %1510 = vmatpush.bf16.msrb.mxu1 %v3842_v63  ;;  %v3783_v63 = vld [vmem:[%s4323_s25 + $0x64] sm:$0xf0] }
  0x4c   : > { %1432 = vmatmul.bf16.gmra.mxu1 %v3434_v18  ;;  %v3833_v18 = vld [vmem:[%s4323_s25 + $0x1f4] sm:$0xf0] }
  0x4d   : > { %v3538_v19 = vor.u32 %v3833_v18, %v3537_v17  ;;  %v3857_v17 = vld [vmem:[%s5359_s5 + $0x38] sm:$0xff]  ;;  %v3334_v18 = vor.u32 %v3780_v14, %v3331_v15  ;;  %v3786_v14 = vld [vmem:[%s4323_s25 + $0x84] sm:$0xf]  ;;  %v3355_v15 = vld [vmem:[%s4323_s25 + $0x88] sm:$0xf0] }
  0x4e   : > { %1836 = vmatpush.bf16.msra.mxu2 %v3857_v17 }
  0x5c   : > { %1437 = vmatmul.bf16.gmra.mxu1 %v3442_v22  ;;  %v3775_v22 = vld [vmem:[%s4323_s25 + $0x24] sm:$0xf0] }
  0x5d   : > { %v3306_v23 = vor.u32 %v3775_v22, %v3305_v21  ;;  %v3856_v21 = vld [vmem:[%s5359_s5 + $0x30] sm:$0xff] }
  0x5e   : > { %1837 = vmatpush.bf16.msra.mxu2 %v3856_v21 }
  0x5f   : > { %1352 = vmatmul.bf16.gmra.mxu0 %v3306_v23  ;;  %v3855_v23 = vld [vmem:[%s5359_s5 + $0x28] sm:$0xff] }
  0x62   : > { %1838 = vmatpush.bf16.msra.mxu2 %v3855_v23  ;;  %v4518_v23 = vld [vmem:[%s5358_s4] ss:$0 sm:$0xff] }
  0x6c   : > { %1442 = vmatmul.bf16.gmra.mxu1 %v3450_v25  ;;  %v3770_v25 = vld [vmem:[%s4323_s25 + $0x4] sm:$0xf] }
  0x6d   : > { %v3294_v27 = vor.u32 %v3770_v25, %v3291_v26  ;;  %v3353_v25 = vld [vmem:[%s4323_s25 + $0x80] sm:$0xf]  ;;  %v3787_v26 = vld [vmem:[%s4323_s25 + $0x84] sm:$0xf0] }
  0x7c   : > { %1447 = vmatmul.bf16.gmra.mxu1 %v3458_v29  ;;  %v3313_v29 = vld [vmem:[%s4323_s25 + $0x30] sm:$0xf] }
  0x7d   : > { %v3314_v31 = vor.u32 %v3777_v30, %v3313_v29  ;;  %v3854_v30 = vld [vmem:[%s5359_s5 + $0x20] sm:$0xff] }
  0x7e   : > { %1839 = vmatpush.bf16.msra.mxu2 %v3854_v30  ;;  %v3793_v30 = vld [vmem:[%s4323_s25 + $0xb4] sm:$0xf0] }
  0x7f   : > { %1357 = vmatmul.bf16.gmra.mxu0 %v3314_v31  ;;  %v3782_v31 = vld [vmem:[%s4323_s25 + $0x64] sm:$0xf] }
  0x8c   : > { %1452 = vmatmul.bf16.gmra.mxu1 %v3466_v32 }
  0x9c   : > { %1457 = vmatmul.bf16.gmra.mxu1 %v3474_v36 }
  0xa9   : > { %v4361_v40 = vpop.f32.mrf.mxu1  ;;  %v1343_v22 = vpop.f32.mrf.mxu0 }
  0xac   : > { %1462 = vmatmul.bf16.gmra.mxu1 %v3482_v39  ;;  %v3322_v39 = vor.u32 %v3779_v38, %v3321_v37  ;;  %v3342_v37 = vor.u32 %v3782_v31, %v3339_v33 }
  0xae   : > { %1362 = vmatmul.bf16.gmra.mxu0 %v3322_v39  ;;  %v3852_v39 = vld [vmem:[%s5359_s5 + $0x10] sm:$0xff] }
  0xb1   : > { %v4366_v42 = vpop.f32.mrf.mxu1  ;;  %v1345_v34 = vpop.f32.mrf.mxu0 }
  0xb2   : > { %v1346_v31 = vadd.f32 %v4518_v23, %v1345_v34 }
  0xb9   : > { %v4370_v46 = vpop.f32.mrf.mxu1 }
  0xbc   : > { %1467 = vmatmul.bf16.gmra.mxu1 %v3490_v45  ;;  %v3310_v45 = vor.u32 %v3774_v43, %v3307_v44  ;;  %v1348_v43 = vpop.f32.mrf.mxu0  ;;  %v3851_v44 = vld [vmem:[%s5359_s5 + $0x8] sm:$0xff] }
  0xbd   : > { %v1349_v34 = vadd.f32 %v4518_v23, %v1348_v43 }
  0xc1   : > { %v4372_v47 = vpop.f32.mrf.mxu1 }
  0xc9   : > { %v4376_v51 = vpop.f32.mrf.mxu1 }
  0xcc   : > { %1472 = vmatmul.bf16.gmra.mxu1 %v3498_v50  ;;  %v3781_v50 = vld [vmem:[%s4323_s25 + $0x54] sm:$0xf0] }
  0xcd   : > { %v3330_v52 = vor.u32 %v3781_v50, %v3329_v49  ;;  %v3789_v49 = vld [vmem:[%s4323_s25 + $0x94] sm:$0xf0] }
  0xcf   : > { %1367 = vmatmul.bf16.gmra.mxu0 %v3330_v52 }
  0xd1   : > { %v4381_v53 = vpop.f32.mrf.mxu1 }
  0xd9   : > { %v4385_v57 = vpop.f32.mrf.mxu1 }
  0xdc   : > { %1477 = vmatmul.bf16.gmra.mxu1 %v3506_v56  ;;  %v3315_v56 = vld [vmem:[%s4323_s25 + $0x38] sm:$0xf0] }
  0xdd   : > { %v3318_v59 = vor.u32 %v3776_v55, %v3315_v56  ;;  %v3850_v55 = vld [vmem:[%s5359_s5] sm:$0xff]  ;;  %v3784_v56 = vld [vmem:[%s4323_s25 + $0x74] sm:$0xf] }
  0xe1   : > { %v4387_v58 = vpop.f32.mrf.mxu1 }
  0xe9   : > { %v4391_v62 = vpop.f32.mrf.mxu1 }
  0xec   : > { %1482 = vmatmul.bf16.gmra.mxu1 %v3514_v61  ;;  %v3337_v61 = vld [vmem:[%s4323_s25 + $0x60] sm:$0xf] }
  0xed   : > { %v3338_v1 = vor.u32 %v3783_v63, %v3337_v61  ;;  %v1350_v61 = vpop.f32.mrf.mxu0 }
  0xef   : > { %1372 = vmatmul.bf16.gmra.mxu0 %v3338_v1  ;;  %v3861_v1 = vld [vmem:[%s5361_s7 + $0x18] sm:$0xff] }
  0xf0   : > { %4192 = vmatpush.bf16.msra.mxu3 %v3861_v1 }
  0xf1   : > { %v4396_v0 = vpop.f32.mrf.mxu1 }
  0xf9   : > { %v4400_v4 = vpop.f32.mrf.mxu1 }
  0xfc   : > { %1487 = vmatmul.bf16.gmra.mxu1 %v3522_v3  ;;  %v3778_v3 = vld [vmem:[%s4323_s25 + $0x44] sm:$0xf] }
  0xfd   : > { %v3326_v6 = vor.u32 %v3778_v3, %v3323_v5  ;;  %v1353_v5 = vpop.f32.mrf.mxu0 }
 0x101   : > { %v4404_v8 = vpop.f32.mrf.mxu1 }
 0x105   : > { %v1355_v17 = vpop.f32.mrf.mxu0 }
 0x109   : > { %v4408_v12 = vpop.f32.mrf.mxu1 }
 0x10c   : > { %1492 = vmatmul.bf16.gmra.mxu1 %v3530_v11  ;;  %v3346_v11 = vor.u32 %v3785_v10, %v3345_v9  ;;  %v3791_v9 = vld [vmem:[%s4323_s25 + $0xa4] sm:$0xf0] }
 0x10e   : > { %1377 = vmatmul.bf16.gmra.mxu0 %v3346_v11 }
 0x111   : > { %v4412_v16 = vpop.f32.mrf.mxu1 }
 0x119   : > { %v4416_v20 = vpop.f32.mrf.mxu1 }
 0x11c   : > { %1497 = vmatmul.bf16.gmra.mxu1 %v3538_v19 }
 0x121   : > { %v4420_v24 = vpop.f32.mrf.mxu1 }
 0x129   : > { %v4424_v28 = vpop.f32.mrf.mxu1 }
 0x12c   : > { %1511 = vmatmul.bf16.vlgmr.msrb.gmra.mxu1 %v3294_v27  ;;  %v3354_v27 = vor.u32 %v3787_v26, %v3353_v25  ;;  %v1344_v25 = vadd.f32 %v4518_v23, %v1343_v22  ;;  %v1358_v26 = vpop.f32.mrf.mxu0 }
 0x12e   : > { %1382 = vmatmul.bf16.gmra.mxu0 %v3354_v27  ;;  %v3377_v27 = vld [vmem:[%s4323_s25 + $0xb0] sm:$0xf] }
 0x131   : > { %v4428_v32 = vpop.f32.mrf.mxu1 }
 0x139   : > { %v4432_v36 = vpop.f32.mrf.mxu1 }
 0x13c   : > { %1516 = vmatmul.bf16.gmra.mxu1 %v3302_v35  ;;  %v3853_v35 = vld [vmem:[%s5359_s5 + $0x18] sm:$0xff] }
 0x13d   : > { %1840 = vmatpush.bf16.msra.mxu2 %v3853_v35  ;;  %v3378_v35 = vor.u32 %v3793_v30, %v3377_v27  ;;  %v3790_v27 = vld [vmem:[%s4323_s25 + $0xa4] sm:$0xf]  ;;  %v3371_v30 = vld [vmem:[%s4323_s25 + $0xa8] sm:$0xf0] }
 0x13e   : > { %v3374_v43 = vor.u32 %v3790_v27, %v3371_v30 }
 0x141   : > { %v4436_v41 = vpop.f32.mrf.mxu1  ;;  %1841 = vmatpush.bf16.msra.mxu2 %v3852_v39 }
 0x145   : > { %1842 = vmatpush.bf16.msra.mxu2 %v3851_v44 }
 0x149   : > { %v4440_v48 = vpop.f32.mrf.mxu1  ;;  %1843 = vmatpush.bf16.msra.mxu2 %v3850_v55 }
 0x14c   : > { %1521 = vmatmul.bf16.gmra.mxu1 %v3310_v45  ;;  %v3361_v45 = vld [vmem:[%s4323_s25 + $0x90] sm:$0xf] }
 0x14d   : > { %v3362_v50 = vor.u32 %v3789_v49, %v3361_v45  ;;  %2238 = vmatpush.bf16.msrb.mxu2 %v3861_v1  ;;  %v3788_v49 = vld [vmem:[%s4323_s25 + $0x94] sm:$0xf]  ;;  %v3385_v1 = vld [vmem:[%s4323_s25 + $0xc0] sm:$0xf] }
 0x14f   : > { %1387 = vmatmul.bf16.gmra.mxu0 %v3362_v50  ;;  %v3363_v50 = vld [vmem:[%s4323_s25 + $0x98] sm:$0xf0] }
 0x150   : > { %v3366_v22 = vor.u32 %v3788_v49, %v3363_v50 }
 0x151   : > { %v4444_v54 = vpop.f32.mrf.mxu1 }
 0x159   : > { %v4448_v60 = vpop.f32.mrf.mxu1 }
 0x15c   : > { %1526 = vmatmul.bf16.gmra.mxu1 %v3318_v59  ;;  %v3347_v59 = vld [vmem:[%s4323_s25 + $0x78] sm:$0xf0] }
 0x15d   : > { %v3350_v63 = vor.u32 %v3784_v56, %v3347_v59  ;;  %v1360_v56 = vpop.f32.mrf.mxu0 }
 0x161   : > { %v4452_v2 = vpop.f32.mrf.mxu1 }
 0x169   : > { %v4456_v7 = vpop.f32.mrf.mxu1 }
 0x16c   : > { %1531 = vmatmul.bf16.gmra.mxu1 %v3326_v6  ;;  %v3369_v6 = vld [vmem:[%s4323_s25 + $0xa0] sm:$0xf] }
 0x16d   : > { %v3370_v10 = vor.u32 %v3791_v9, %v3369_v6  ;;  %v3795_v6 = vld [vmem:[%s4323_s25 + $0xc4] sm:$0xf0]  ;;  %v1351_v9 = vadd.f32 %v4518_v23, %v1350_v61  ;;  %v1354_v61 = vadd.f32 %v4518_v23, %v1353_v5 }
 0x16f   : > { %1392 = vmatmul.bf16.gmra.mxu0 %v3370_v10 }
 0x171   : > { %v4460_v13 = vpop.f32.mrf.mxu1 }
 0x179   : > { %v4467_v19 = vpop.f32.mrf.mxu1 }
 0x17c   : > { %1536 = vmatmul.bf16.gmra.mxu1 %v3334_v18  ;;  %v3358_v18 = vor.u32 %v3786_v14, %v3355_v15  ;;  %v3386_v14 = vor.u32 %v3795_v6, %v3385_v1  ;;  %v3792_v1 = vld [vmem:[%s4323_s25 + $0xb4] sm:$0xf]  ;;  %v3379_v6 = vld [vmem:[%s4323_s25 + $0xb8] sm:$0xf0] }
 0x17d   : > { %v3382_v5 = vor.u32 %v3792_v1, %v3379_v6 }
 0x17f   : > { %1397 = vmatmul.bf16.gmra.mxu0 %v3378_v35 }
 0x181   : > { %v4477_v29 = vpop.f32.mrf.mxu1 }
 0x189   : > { %v4487_v38 = vpop.f32.mrf.mxu1 }
 0x18c   : > { %1541 = vmatmul.bf16.gmra.mxu1 %v3342_v37 }
 0x18f   : > { %1402 = vmatmul.bf16.gmra.mxu0 %v3386_v14 }
 0x191   : > { %v4497_v52 = vpop.f32.mrf.mxu1 }
 0x199   : > { %v4507_v3 = vpop.f32.mrf.mxu1 }
 0x19c   : > { %1546 = vmatmul.bf16.gmra.mxu1 %v3350_v63  ;;  %v1363_v63 = vpop.f32.mrf.mxu0 }
 0x1a1   : > { %v4511_v11 = vpop.f32.mrf.mxu1 }
 0x1a9   : > { %v1512_v21 = vpop.f32.mrf.mxu1 }
 0x1aa   : > { %v1513_v33 = vadd.f32 %v1512_v21, %v1344_v25 }
 0x1ac   : > { %1551 = vmatmul.bf16.gmra.mxu1 %v3358_v18  ;;  %v1672_v44 = vmax.f32 %v1513_v33, 0.0  ;;  %v1365_v33 = vpop.f32.mrf.mxu0 }
 0x1b1   : > { %v1514_v37 = vpop.f32.mrf.mxu1 }
 0x1b2   : > { %v1515_v39 = vadd.f32 %v1514_v37, %v1346_v31 }
 0x1b4   : > { %v1673_v45 = vmax.f32 %v1515_v39, 0.0  ;;  %v1368_v37 = vpop.f32.mrf.mxu0  ;;  %v3393_v39 = vld [vmem:[%s4323_s25 + $0xd0] sm:$0xf] }
 0x1b6   : > { %v1736_v55 = vpack.c.bf16 %v1673_v45, %v1672_v44  ;;  %v3797_v44 = vld [vmem:[%s4323_s25 + $0xd4] sm:$0xf0]  ;;  %v1356_v45 = vadd.f32 %v4518_v23, %v1355_v17  ;;  %v1359_v17 = vadd.f32 %v4518_v23, %v1358_v26 }
 0x1b7   : > { %v3394_v50 = vor.u32 %v3797_v44, %v3393_v39  ;;  %v3794_v39 = vld [vmem:[%s4323_s25 + $0xc4] sm:$0xf]  ;;  %v3387_v44 = vld [vmem:[%s4323_s25 + $0xc8] sm:$0xf0] }
 0x1b8   : > { %1844 = vmatmul.bf16.vlgmr.msra.gmra.mxu2 %v1736_v55  ;;  %v3390_v26 = vor.u32 %v3794_v39, %v3387_v44 }
 0x1b9   : > { %v1517_v59 = vpop.f32.mrf.mxu1  ;;  %1407 = vmatmul.bf16.gmra.mxu0 %v3394_v50 }
 0x1ba   : > { %v1518_v10 = vadd.f32 %v1517_v59, %v1349_v34 }
 0x1bc   : > { %1556 = vmatmul.bf16.gmra.mxu1 %v3366_v22  ;;  %v1674_v21 = vmax.f32 %v1518_v10, 0.0  ;;  %v1370_v10 = vpop.f32.mrf.mxu0 }
 0x1c1   : > { %v1519_v15 = vpop.f32.mrf.mxu1 }
 0x1c2   : > { %v1520_v18 = vadd.f32 %v1519_v15, %v1351_v9 }
 0x1c4   : > { %v1675_v25 = vmax.f32 %v1520_v18, 0.0  ;;  %v1373_v15 = vpop.f32.mrf.mxu0  ;;  %v3401_v18 = vld [vmem:[%s4323_s25 + $0xe0] sm:$0xf] }
 0x1c6   : > { %v1737_v31 = vpack.c.bf16 %v1675_v25, %v1674_v21  ;;  %v3799_v21 = vld [vmem:[%s4323_s25 + $0xe4] sm:$0xf0]  ;;  %v1361_v25 = vadd.f32 %v4518_v23, %v1360_v56  ;;  %v1364_v56 = vadd.f32 %v4518_v23, %v1363_v63 }
 0x1c7   : > { %v3402_v30 = vor.u32 %v3799_v21, %v3401_v18  ;;  %v3796_v18 = vld [vmem:[%s4323_s25 + $0xd4] sm:$0xf]  ;;  %v3395_v21 = vld [vmem:[%s4323_s25 + $0xd8] sm:$0xf0] }
 0x1c8   : > { %1849 = vmatmul.bf16.gmra.mxu2 %v1737_v31  ;;  %v3398_v63 = vor.u32 %v3796_v18, %v3395_v21  ;;  %v3411_v18 = vld [vmem:[%s4323_s25 + $0xf8] sm:$0xf0] }
 0x1c9   : > { %v1522_v35 = vpop.f32.mrf.mxu1  ;;  %1412 = vmatmul.bf16.gmra.mxu0 %v3402_v30  ;;  %v1369_v30 = vadd.f32 %v4518_v23, %v1368_v37  ;;  %v1374_v37 = vadd.f32 %v4518_v23, %v1373_v15  ;;  %v3860_v15 = vld [vmem:[%s5361_s7 + $0x10] sm:$0xff] }
 0x1ca   : > { %v1523_v49 = vadd.f32 %v1522_v35, %v1354_v61  ;;  %2239 = vmatpush.bf16.msrb.mxu2 %v3860_v15  ;;  %4193 = vmatpush.bf16.msra.mxu3 %v3860_v15 }
 0x1cc   : > { %1561 = vmatmul.bf16.gmra.mxu1 %v3374_v43  ;;  %v1676_v59 = vmax.f32 %v1523_v49, 0.0  ;;  %v1375_v50 = vpop.f32.mrf.mxu0 }
 0x1d1   : > { %v1524_v55 = vpop.f32.mrf.mxu1 }
 0x1d2   : > { %v1525_v22 = vadd.f32 %v1524_v55, %v1356_v45  ;;  %v3409_v55 = vld [vmem:[%s4323_s25 + $0xf0] sm:$0xf] }
 0x1d4   : > { %v1677_v34 = vmax.f32 %v1525_v22, 0.0  ;;  %v3801_v22 = vld [vmem:[%s4323_s25 + $0xf4] sm:$0xf0] }
 0x1d5   : > { %v3410_v1 = vor.u32 %v3801_v22, %v3409_v55 }
 0x1d6   : > { %v1738_v9 = vpack.c.bf16 %v1677_v34, %v1676_v59  ;;  %v1366_v59 = vadd.f32 %v4518_v23, %v1365_v33 }
 0x1d8   : > { %1854 = vmatmul.bf16.gmra.mxu2 %v1738_v9 }
 0x1d9   : > { %v1527_v14 = vpop.f32.mrf.mxu1  ;;  %1417 = vmatmul.bf16.gmra.mxu0 %v3410_v1 }
 0x1da   : > { %v1528_v27 = vadd.f32 %v1527_v14, %v1359_v17 }
 0x1dc   : > { %1566 = vmatmul.bf16.gmra.mxu1 %v3382_v5  ;;  %v1678_v35 = vmax.f32 %v1528_v27, 0.0  ;;  %v1378_v5 = vpop.f32.mrf.mxu0 }
 0x1e1   : > { %v1529_v31 = vpop.f32.mrf.mxu1 }
 0x1e2   : > { %v1530_v43 = vadd.f32 %v1529_v31, %v1361_v25  ;;  %v1371_v31 = vadd.f32 %v4518_v23, %v1370_v10 }
 0x1e4   : > { %v1679_v61 = vmax.f32 %v1530_v43, 0.0  ;;  %v1380_v33 = vpop.f32.mrf.mxu0 }
 0x1e6   : > { %v1739_v45 = vpack.c.bf16 %v1679_v61, %v1678_v35 }
 0x1e8   : > { %1859 = vmatmul.bf16.gmra.mxu2 %v1739_v45  ;;  %v3798_v45 = vld [vmem:[%s4323_s25 + $0xe4] sm:$0xf] }
 0x1e9   : > { %v1532_v49 = vpop.f32.mrf.mxu1 }
 0x1ea   : > { %v1533_v34 = vadd.f32 %v1532_v49, %v1364_v56 }
 0x1ec   : > { %1571 = vmatmul.bf16.gmra.mxu1 %v3390_v26  ;;  %v1680_v14 = vmax.f32 %v1533_v34, 0.0  ;;  %v3403_v26 = vld [vmem:[%s4323_s25 + $0xe8] sm:$0xf0]  ;;  %v1383_v56 = vpop.f32.mrf.mxu0 }
 0x1ed   : > { %v3406_v55 = vor.u32 %v3798_v45, %v3403_v26  ;;  %v3419_v45 = vld [vmem:[%s4323_s25 + $0x108] sm:$0xf0] }
 0x1f1   : > { %v1534_v6 = vpop.f32.mrf.mxu1 }
 0x1f2   : > { %v1535_v9 = vadd.f32 %v1534_v6, %v1366_v59  ;;  %v1376_v59 = vadd.f32 %v4518_v23, %v1375_v50 }
 0x1f4   : > { %v1681_v17 = vmax.f32 %v1535_v9, 0.0  ;;  %v1385_v1 = vpop.f32.mrf.mxu0 }
 0x1f6   : > { %v1740_v25 = vpack.c.bf16 %v1681_v17, %v1680_v14  ;;  %v3800_v17 = vld [vmem:[%s4323_s25 + $0xf4] sm:$0xf] }
 0x1f8   : > { %1864 = vmatmul.bf16.gmra.mxu2 %v1740_v25  ;;  %v3414_v25 = vor.u32 %v3800_v17, %v3411_v18  ;;  %v3427_v17 = vld [vmem:[%s4323_s25 + $0x118] sm:$0xf0] }
 0x1f9   : > { %v1537_v27 = vpop.f32.mrf.mxu1 }
 0x1fa   : > { %v1538_v43 = vadd.f32 %v1537_v27, %v1369_v30  ;;  %v1379_v27 = vadd.f32 %v4518_v23, %v1378_v5  ;;  %v1381_v30 = vadd.f32 %v4518_v23, %v1380_v33  ;;  %v1386_v33 = vadd.f32 %v4518_v23, %v1385_v1  ;;  %v4573_v1 = vld [vmem:[%s5360_s6] ss:$0 sm:$0xff] }
 0x1fc   : > { %1576 = vmatmul.bf16.gmra.mxu1 %v3398_v63  ;;  %v1682_v39 = vmax.f32 %v1538_v43, 0.0  ;;  %v1388_v50 = vpop.f32.mrf.mxu0 }
 0x201   : > { %v1539_v35 = vpop.f32.mrf.mxu1 }
 0x202   : > { %v1540_v61 = vadd.f32 %v1539_v35, %v1371_v31 }
 0x204   : > { %v1683_v44 = vmax.f32 %v1540_v61, 0.0  ;;  %v1390_v26 = vpop.f32.mrf.mxu0 }
 0x206   : > { %v1741_v49 = vpack.c.bf16 %v1683_v44, %v1682_v39  ;;  %v3802_v44 = vld [vmem:[%s4323_s25 + $0x104] sm:$0xf] }
 0x208   : > { %1869 = vmatmul.bf16.gmra.mxu2 %v1741_v49 }
 0x209   : > { %v1542_v22 = vpop.f32.mrf.mxu1 }
 0x20a   : > { %v1543_v10 = vadd.f32 %v1542_v22, %v1374_v37  ;;  %v1384_v37 = vadd.f32 %v4518_v23, %v1383_v56  ;;  %v1389_v56 = vadd.f32 %v4518_v23, %v1388_v50  ;;  %v3806_v50 = vld [vmem:[%s4323_s25 + $0x124] sm:$0xf] }
 0x20c   : > { %1581 = vmatmul.bf16.gmra.mxu1 %v3406_v55  ;;  %v1684_v9 = vmax.f32 %v1543_v10, 0.0  ;;  %v3422_v55 = vor.u32 %v3802_v44, %v3419_v45  ;;  %v1393_v5 = vpop.f32.mrf.mxu0 }
 0x211   : > { %v1544_v34 = vpop.f32.mrf.mxu1 }
 0x212   : > { %v1545_v6 = vadd.f32 %v1544_v34, %v1376_v59 }
 0x214   : > { %v1685_v14 = vmax.f32 %v1545_v6, 0.0  ;;  %v1395_v15 = vpop.f32.mrf.mxu0 }
 0x216   : > { %v1742_v21 = vpack.c.bf16 %v1685_v14, %v1684_v9  ;;  %v3804_v14 = vld [vmem:[%s4323_s25 + $0x114] sm:$0xf] }
 0x218   : > { %1874 = vmatmul.bf16.gmra.mxu2 %v1742_v21  ;;  %v3430_v21 = vor.u32 %v3804_v14, %v3427_v17  ;;  %v1396_v14 = vadd.f32 %v4518_v23, %v1395_v15 }
 0x219   : > { %v1547_v63 = vpop.f32.mrf.mxu1 }
 0x21a   : > { %v1548_v31 = vadd.f32 %v1547_v63, %v1379_v27  ;;  %v1391_v27 = vadd.f32 %v4518_v23, %v1390_v26 }
 0x21c   : > { %1586 = vmatmul.bf16.gmra.mxu1 %v3414_v25  ;;  %v1686_v61 = vmax.f32 %v1548_v31, 0.0 }
 0x221   : > { %v1549_v43 = vpop.f32.mrf.mxu1 }
 0x222   : > { %v1550_v35 = vadd.f32 %v1549_v43, %v1381_v30 }
 0x224   : > { %v1687_v39 = vmax.f32 %v1550_v35, 0.0 }
 0x226   : > { %v1743_v49 = vpack.c.bf16 %v1687_v39, %v1686_v61  ;;  %v1398_v39 = vpop.f32.mrf.mxu0 }
 0x228   : > { %1879 = vmatmul.bf16.gmra.mxu2 %v1743_v49 }
 0x229   : > { %v1552_v22 = vpop.f32.mrf.mxu1 }
 0x22a   : > { %v1553_v59 = vadd.f32 %v1552_v22, %v1384_v37 }
 0x22c   : > { %1591 = vmatmul.bf16.gmra.mxu1 %v3422_v55  ;;  %v1688_v6 = vmax.f32 %v1553_v59, 0.0  ;;  %v3435_v55 = vld [vmem:[%s4323_s25 + $0x128] sm:$0xf0] }
 0x22d   : > { %v3438_v26 = vor.u32 %v3806_v50, %v3435_v55  ;;  %v1399_v55 = vadd.f32 %v4518_v23, %v1398_v39 }
 0x231   : > { %v1554_v10 = vpop.f32.mrf.mxu1 }
 0x232   : > { %v1555_v34 = vadd.f32 %v1554_v10, %v1386_v33 }
 0x234   : > { %v1689_v9 = vmax.f32 %v1555_v34, 0.0 }
 0x236   : > { %v1744_v18 = vpack.c.bf16 %v1689_v9, %v1688_v6  ;;  %v1394_v6 = vadd.f32 %v4518_v23, %v1393_v5  ;;  %v1400_v9 = vpop.f32.mrf.mxu0 }
 0x238   : > { %1884 = vmatmul.bf16.gmra.mxu2 %v1744_v18 }
 0x239   : > { %v1557_v25 = vpop.f32.mrf.mxu1 }
 0x23a   : > { %v1558_v30 = vadd.f32 %v1557_v25, %v1389_v56 }
 0x23b   : > { %v1845_v63 = vpop.f32.mrf.mxu2 }
 0x23c   : > { %1596 = vmatmul.bf16.gmra.mxu1 %v3430_v21  ;;  %v1846_v43 = vadd.f32 %v4573_v1, %v1845_v63  ;;  %v1690_v44 = vmax.f32 %v1558_v30, 0.0 }
 0x23e   : > { %v2005_v22 = vmax.f32 %v1846_v43, 0.0  ;;  %v3443_v43 = vld [vmem:[%s4323_s25 + $0x138] sm:$0xf0]  ;;  %v1403_v5 = vpop.f32.mrf.mxu0 }
 0x241   : > { %v1559_v31 = vpop.f32.mrf.mxu1 }
 0x242   : > { %v1560_v35 = vadd.f32 %v1559_v31, %v1391_v27  ;;  %v3808_v31 = vld [vmem:[%s4323_s25 + $0x134] sm:$0xf] }
 0x243   : > { %v1847_v61 = vpop.f32.mrf.mxu2  ;;  %v3446_v15 = vor.u32 %v3808_v31, %v3443_v43 }
 0x244   : > { %v1691_v45 = vmax.f32 %v1560_v35, 0.0  ;;  %v1848_v49 = vadd.f32 %v4573_v1, %v1847_v61 }
 0x246   : > { %v2006_v37 = vmax.f32 %v1848_v49, 0.0  ;;  %v1745_v33 = vpack.c.bf16 %v1691_v45, %v1690_v44 }
 0x248   : > { %v4580_v59 = vpack.c.bf16 %v2006_v37, %v2005_v22  ;;  %1889 = vmatmul.bf16.gmra.mxu2 %v1745_v33  ;;  %v1401_v22 = vadd.f32 %v4518_v23, %v1400_v9 }
 0x249   : > { %v1562_v10 = vpop.f32.mrf.mxu1 }
 0x24a   : > { %v1563_v17 = vadd.f32 %v1562_v10, %v1394_v6 }
 0x24b   : > { %v1850_v34 = vpop.f32.mrf.mxu2 }
 0x24c   : > { %1601 = vmatmul.bf16.gmra.mxu1 %v3438_v26  ;;  %v1851_v21 = vadd.f32 %v4573_v1, %v1850_v34  ;;  %v1692_v56 = vmax.f32 %v1563_v17, 0.0  ;;  %v1405_v26 = vpop.f32.mrf.mxu0 }
 0x24e   : > { %v2007_v35 = vmax.f32 %v1851_v21, 0.0  ;;  %v3810_v21 = vld [vmem:[%s4323_s25 + $0x144] sm:$0xf] }
 0x251   : > { %v1564_v18 = vpop.f32.mrf.mxu1 }
 0x252   : > { %v1565_v25 = vadd.f32 %v1564_v18, %v1396_v14 }
 0x253   : > { %v1852_v63 = vpop.f32.mrf.mxu2 }
 0x254   : > { %v1693_v27 = vmax.f32 %v1565_v25, 0.0  ;;  %v1853_v30 = vadd.f32 %v4573_v1, %v1852_v63  ;;  %v3451_v25 = vld [vmem:[%s4323_s25 + $0x148] sm:$0xf0]  ;;  %v1408_v43 = vpop.f32.mrf.mxu0 }
 0x255   : > { %v3454_v9 = vor.u32 %v3810_v21, %v3451_v25 }
 0x256   : > { %v2008_v61 = vmax.f32 %v1853_v30, 0.0  ;;  %v1746_v44 = vpack.c.bf16 %v1693_v27, %v1692_v56 }
 0x258   : > { %v4588_v45 = vpack.c.bf16 %v2008_v61, %v2007_v35  ;;  %1894 = vmatmul.bf16.gmra.mxu2 %v1746_v44  ;;  %v1404_v35 = vadd.f32 %v4518_v23, %v1403_v5  ;;  %v1406_v61 = vadd.f32 %v4518_v23, %v1405_v26 }
 0x259   : > { %v1567_v49 = vpop.f32.mrf.mxu1 }
 0x25a   : > { %v1568_v37 = vadd.f32 %v1567_v49, %v1399_v55 }
 0x25b   : > { %v1855_v50 = vpop.f32.mrf.mxu2 }
 0x25c   : > { %1606 = vmatmul.bf16.gmra.mxu1 %v3446_v15  ;;  %v1856_v10 = vadd.f32 %v4573_v1, %v1855_v50  ;;  %v1694_v14 = vmax.f32 %v1568_v37, 0.0 }
 0x25e   : > { %v2009_v63 = vmax.f32 %v1856_v10, 0.0  ;;  %v1410_v10 = vpop.f32.mrf.mxu0 }
 0x261   : > { %v1569_v33 = vpop.f32.mrf.mxu1 }
 0x262   : > { %v1570_v34 = vadd.f32 %v1569_v33, %v1401_v22 }
 0x263   : > { %v1857_v6 = vpop.f32.mrf.mxu2 }
 0x264   : > { %v1695_v17 = vmax.f32 %v1570_v34, 0.0  ;;  %v1858_v18 = vadd.f32 %v4573_v1, %v1857_v6  ;;  %v3812_v34 = vld [vmem:[%s4323_s25 + $0x154] sm:$0xf]  ;;  %v3459_v6 = vld [vmem:[%s4323_s25 + $0x158] sm:$0xf0] }
 0x265   : > { %v3462_v26 = vor.u32 %v3812_v34, %v3459_v6 }
 0x266   : > { %v2010_v56 = vmax.f32 %v1858_v18, 0.0  ;;  %v1747_v27 = vpack.c.bf16 %v1695_v17, %v1694_v14 }
 0x268   : > { %v4596_v39 = vpack.c.bf16 %v2010_v56, %v2009_v63  ;;  %1899 = vmatmul.bf16.gmra.mxu2 %v1747_v27  ;;  %v1409_v63 = vadd.f32 %v4518_v23, %v1408_v43  ;;  %v1413_v56 = vpop.f32.mrf.mxu0  ;;  %v1411_v27 = vadd.f32 %v4518_v23, %v1410_v10 }
 0x269   : > { %v1572_v30 = vpop.f32.mrf.mxu1 }
 0x26a   : > { %v1573_v44 = vadd.f32 %v1572_v30, %v1404_v35 }
 0x26b   : > { %v1860_v31 = vpop.f32.mrf.mxu2 }
 0x26c   : > { %1611 = vmatmul.bf16.gmra.mxu1 %v3454_v9  ;;  %v1861_v49 = vadd.f32 %v4573_v1, %v1860_v31  ;;  %v1696_v22 = vmax.f32 %v1573_v44, 0.0 }
 0x26e   : > { %v2011_v14 = vmax.f32 %v1861_v49, 0.0 }
 0x270   : > { %v1415_v10 = vpop.f32.mrf.mxu0 }
 0x271   : > { %v1574_v15 = vpop.f32.mrf.mxu1 }
 0x272   : > { %v1575_v50 = vadd.f32 %v1574_v15, %v1406_v61 }
 0x273   : > { %v1862_v55 = vpop.f32.mrf.mxu2 }
 0x274   : > { %v1697_v37 = vmax.f32 %v1575_v50, 0.0  ;;  %v1863_v33 = vadd.f32 %v4573_v1, %v1862_v55  ;;  %v3814_v50 = vld [vmem:[%s4323_s25 + $0x164] sm:$0xf]  ;;  %v3467_v55 = vld [vmem:[%s4323_s25 + $0x168] sm:$0xf0] }
 0x275   : > { %v3470_v34 = vor.u32 %v3814_v50, %v3467_v55 }
 0x276   : > { %v2012_v17 = vmax.f32 %v1863_v33, 0.0  ;;  %v1748_v18 = vpack.c.bf16 %v1697_v37, %v1696_v22 }
 0x278   : > { %v4604_v5 = vpack.c.bf16 %v2012_v17, %v2011_v14  ;;  %1904 = vmatmul.bf16.gmra.mxu2 %v1748_v18  ;;  %v1414_v17 = vadd.f32 %v4518_v23, %v1413_v56  ;;  %v1416_v18 = vadd.f32 %v4518_v23, %v1415_v10 }
 0x279   : > { %v1577_v21 = vpop.f32.mrf.mxu1 }
 0x27a   : > { %v1578_v9 = vadd.f32 %v1577_v21, %v1409_v63 }
 0x27b   : > { %v1865_v25 = vpop.f32.mrf.mxu2 }
 0x27c   : > { %1616 = vmatmul.bf16.gmra.mxu1 %v3462_v26  ;;  %v1866_v31 = vadd.f32 %v4573_v1, %v1865_v25  ;;  %v1698_v44 = vmax.f32 %v1578_v9, 0.0 }
 0x27e   : > { %v2013_v22 = vmax.f32 %v1866_v31, 0.0 }
 0x281   : > { %v1579_v30 = vpop.f32.mrf.mxu1 }
 0x282   : > { %v1580_v35 = vadd.f32 %v1579_v30, %v1411_v27  ;;  %v1418_v27 = vpop.f32.mrf.mxu0 }
 0x283   : > { %v1867_v61 = vpop.f32.mrf.mxu2 }
 0x284   : > { %v1699_v15 = vmax.f32 %v1580_v35, 0.0  ;;  %v1868_v49 = vadd.f32 %v4573_v1, %v1867_v61  ;;  %v3816_v61 = vld [vmem:[%s4323_s25 + $0x174] sm:$0xf] }
 0x286   : > { %v2014_v37 = vmax.f32 %v1868_v49, 0.0  ;;  %v1749_v33 = vpack.c.bf16 %v1699_v15, %v1698_v44  ;;  %v3475_v44 = vld [vmem:[%s4323_s25 + $0x178] sm:$0xf0] }
 0x287   : > { %v3478_v55 = vor.u32 %v3816_v61, %v3475_v44 }
 0x288   : > { %v4612_v43 = vpack.c.bf16 %v2014_v37, %v2013_v22  ;;  %1909 = vmatmul.bf16.gmra.mxu2 %v1749_v33  ;;  %v3859_v22 = vld [vmem:[%s5361_s7 + $0x8] sm:$0xff] }
 0x289   : > { %v1582_v6 = vpop.f32.mrf.mxu1  ;;  %2240 = vmatpush.bf16.msrb.mxu2 %v3859_v22  ;;  %4194 = vmatpush.bf16.msra.mxu3 %v3859_v22  ;;  %v1426_v22 = vadd.f32 %v4518_v23, %v4366_v42 }
 0x28a   : > { %v1583_v26 = vadd.f32 %v1582_v6, %v1414_v17  ;;  %v1420_v10 = vpop.f32.mrf.mxu0 }
 0x28b   : > { %v1870_v14 = vpop.f32.mrf.mxu2  ;;  %v1421_v6 = vadd.f32 %v4518_v23, %v1420_v10 }
 0x28c   : > { %1621 = vmatmul.bf16.gmra.mxu1 %v3470_v34  ;;  %v1871_v25 = vadd.f32 %v4573_v1, %v1870_v14  ;;  %v1700_v30 = vmax.f32 %v1583_v26, 0.0  ;;  %v1419_v34 = vadd.f32 %v4518_v23, %v1418_v27 }
 0x28e   : > { %v2015_v15 = vmax.f32 %v1871_v25, 0.0 }
 0x291   : > { %v1584_v21 = vpop.f32.mrf.mxu1 }
 0x292   : > { %v1585_v63 = vadd.f32 %v1584_v21, %v1416_v18 }
 0x293   : > { %v1872_v9 = vpop.f32.mrf.mxu2 }
 0x294   : > { %v1701_v31 = vmax.f32 %v1585_v63, 0.0  ;;  %v1873_v35 = vadd.f32 %v4573_v1, %v1872_v9 }
 0x296   : > { %v2016_v49 = vmax.f32 %v1873_v35, 0.0  ;;  %v1750_v50 = vpack.c.bf16 %v1701_v31, %v1700_v30  ;;  %v3818_v30 = vld [vmem:[%s4323_s25 + $0x184] sm:$0xf]  ;;  %v3483_v31 = vld [vmem:[%s4323_s25 + $0x188] sm:$0xf0] }
 0x298   : > { %v4620_v56 = vpack.c.bf16 %v2016_v49, %v2015_v15  ;;  %1914 = vmatmul.bf16.gmra.mxu2 %v1750_v50  ;;  %v3486_v15 = vor.u32 %v3818_v30, %v3483_v31 }
 0x299   : > { %v1587_v37 = vpop.f32.mrf.mxu1 }
 0x29a   : > { %v1588_v14 = vadd.f32 %v1587_v37, %v1419_v34 }
 0x29b   : > { %v1875_v33 = vpop.f32.mrf.mxu2 }
 0x29c   : > { %1626 = vmatmul.bf16.gmra.mxu1 %v3478_v55  ;;  %v1876_v18 = vadd.f32 %v4573_v1, %v1875_v33  ;;  %v1702_v25 = vmax.f32 %v1588_v14, 0.0  ;;  %v1424_v55 = vadd.f32 %v4518_v23, %v4361_v40 }
 0x29e   : > { %v2017_v35 = vmax.f32 %v1876_v18, 0.0 }
 0x2a1   : > { %v1589_v17 = vpop.f32.mrf.mxu1 }
 0x2a2   : > { %v1590_v26 = vadd.f32 %v1589_v17, %v1421_v6 }
 0x2a3   : > { %v1877_v21 = vpop.f32.mrf.mxu2 }
 0x2a4   : > { %v1703_v63 = vmax.f32 %v1590_v26, 0.0  ;;  %v1878_v9 = vadd.f32 %v4573_v1, %v1877_v21  ;;  %v3820_v26 = vld [vmem:[%s4323_s25 + $0x194] sm:$0xf]  ;;  %v3491_v21 = vld [vmem:[%s4323_s25 + $0x198] sm:$0xf0] }
 0x2a5   : > { %v3494_v40 = vor.u32 %v3820_v26, %v3491_v21  ;;  %v1434_v21 = vadd.f32 %v4518_v23, %v4376_v51 }
 0x2a6   : > { %v2018_v61 = vmax.f32 %v1878_v9, 0.0  ;;  %v1751_v44 = vpack.c.bf16 %v1703_v63, %v1702_v25 }
 0x2a8   : > { %v4631_v27 = vpack.c.bf16 %v2018_v61, %v2017_v35  ;;  %1919 = vmatmul.bf16.gmra.mxu2 %v1751_v44  ;;  %v1429_v35 = vadd.f32 %v4518_v23, %v4370_v46  ;;  %v1431_v61 = vadd.f32 %v4518_v23, %v4372_v47 }
 0x2a9   : > { %v1592_v49 = vpop.f32.mrf.mxu1 }
 0x2aa   : > { %v1593_v37 = vadd.f32 %v1592_v49, %v1424_v55 }
 0x2ab   : > { %v1880_v50 = vpop.f32.mrf.mxu2 }
 0x2ac   : > { %1631 = vmatmul.bf16.gmra.mxu1 %v3486_v15  ;;  %v1881_v34 = vadd.f32 %v4573_v1, %v1880_v50  ;;  %v1704_v14 = vmax.f32 %v1593_v37, 0.0 }
 0x2ae   : > { %v2019_v25 = vmax.f32 %v1881_v34, 0.0  ;;  %v3822_v34 = vld [vmem:[%s4323_s25 + $0x1a4] sm:$0xf] }
 0x2b1   : > { %v1594_v33 = vpop.f32.mrf.mxu1 }
 0x2b2   : > { %v1595_v10 = vadd.f32 %v1594_v33, %v1426_v22 }
 0x2b3   : > { %v1882_v6 = vpop.f32.mrf.mxu2 }
 0x2b4   : > { %v1705_v17 = vmax.f32 %v1595_v10, 0.0  ;;  %v1883_v18 = vadd.f32 %v4573_v1, %v1882_v6  ;;  %v3499_v10 = vld [vmem:[%s4323_s25 + $0x1a8] sm:$0xf0] }
 0x2b5   : > { %v3502_v46 = vor.u32 %v3822_v34, %v3499_v10  ;;  %v1439_v34 = vadd.f32 %v4518_v23, %v4385_v57  ;;  %v1441_v10 = vadd.f32 %v4518_v23, %v4387_v58 }
 0x2b6   : > { %v2020_v63 = vmax.f32 %v1883_v18, 0.0  ;;  %v1752_v9 = vpack.c.bf16 %v1705_v17, %v1704_v14 }
 0x2b8   : > { %v4641_v30 = vpack.c.bf16 %v2020_v63, %v2019_v25  ;;  %1924 = vmatmul.bf16.gmra.mxu2 %v1752_v9  ;;  %v1436_v25 = vadd.f32 %v4518_v23, %v4381_v53 }
 0x2b9   : > { %v1597_v42 = vpop.f32.mrf.mxu1 }
 0x2ba   : > { %v1598_v44 = vadd.f32 %v1597_v42, %v1429_v35 }
 0x2bb   : > { %v1885_v31 = vpop.f32.mrf.mxu2 }
 0x2bc   : > { %1636 = vmatmul.bf16.gmra.mxu1 %v3494_v40  ;;  %v1886_v49 = vadd.f32 %v4573_v1, %v1885_v31  ;;  %v1706_v22 = vmax.f32 %v1598_v44, 0.0 }
 0x2be   : > { %v2021_v6 = vmax.f32 %v1886_v49, 0.0  ;;  %v3507_v49 = vld [vmem:[%s4323_s25 + $0x1b8] sm:$0xf0] }
 0x2c1   : > { %v1599_v15 = vpop.f32.mrf.mxu1 }
 0x2c2   : > { %v1600_v50 = vadd.f32 %v1599_v15, %v1431_v61  ;;  %v3824_v15 = vld [vmem:[%s4323_s25 + $0x1b4] sm:$0xf] }
 0x2c3   : > { %v1887_v55 = vpop.f32.mrf.mxu2  ;;  %v3510_v51 = vor.u32 %v3824_v15, %v3507_v49  ;;  %v1446_v15 = vadd.f32 %v4518_v23, %v4396_v0 }
 0x2c4   : > { %v1707_v37 = vmax.f32 %v1600_v50, 0.0  ;;  %v1888_v33 = vadd.f32 %v4573_v1, %v1887_v55 }
 0x2c6   : > { %v2022_v14 = vmax.f32 %v1888_v33, 0.0  ;;  %v1753_v17 = vpack.c.bf16 %v1707_v37, %v1706_v22 }
 0x2c8   : > { %v4651_v18 = vpack.c.bf16 %v2022_v14, %v2021_v6  ;;  %1929 = vmatmul.bf16.gmra.mxu2 %v1753_v17 }
 0x2c9   : > { %v1602_v47 = vpop.f32.mrf.mxu1 }
 0x2ca   : > { %v1603_v63 = vadd.f32 %v1602_v47, %v1434_v21 }
 0x2cb   : > { %v1890_v26 = vpop.f32.mrf.mxu2 }
 0x2cc   : > { %1641 = vmatmul.bf16.gmra.mxu1 %v3502_v46  ;;  %v1891_v40 = vadd.f32 %v4573_v1, %v1890_v26  ;;  %v1708_v35 = vmax.f32 %v1603_v63, 0.0  ;;  %v3826_v63 = vld [vmem:[%s4323_s25 + $0x1c4] sm:$0xf] }
 0x2ce   : > { %v2023_v50 = vmax.f32 %v1891_v40, 0.0 }
 0x2d1   : > { %v1604_v9 = vpop.f32.mrf.mxu1 }
 0x2d2   : > { %v1605_v42 = vadd.f32 %v1604_v9, %v1436_v25  ;;  %v3515_v9 = vld [vmem:[%s4323_s25 + $0x1c8] sm:$0xf0] }
 0x2d3   : > { %v1892_v31 = vpop.f32.mrf.mxu2  ;;  %v3518_v57 = vor.u32 %v3826_v63, %v3515_v9 }
 0x2d4   : > { %v1709_v61 = vmax.f32 %v1605_v42, 0.0  ;;  %v1893_v44 = vadd.f32 %v4573_v1, %v1892_v31 }
 0x2d6   : > { %v2024_v55 = vmax.f32 %v1893_v44, 0.0  ;;  %v1754_v22 = vpack.c.bf16 %v1709_v61, %v1708_v35  ;;  %v1444_v44 = vadd.f32 %v4518_v23, %v4391_v62 }
 0x2d8   : > { %v4661_v37 = vpack.c.bf16 %v2024_v55, %v2023_v50  ;;  %1934 = vmatmul.bf16.gmra.mxu2 %v1754_v22 }
 0x2d9   : > { %v1607_v53 = vpop.f32.mrf.mxu1 }
 0x2da   : > { %v1608_v6 = vadd.f32 %v1607_v53, %v1439_v34 }
 0x2db   : > { %v1895_v33 = vpop.f32.mrf.mxu2 }
 0x2dc   : > { %1646 = vmatmul.bf16.gmra.mxu1 %v3510_v51  ;;  %v1896_v17 = vadd.f32 %v4573_v1, %v1895_v33  ;;  %v1710_v26 = vmax.f32 %v1608_v6, 0.0  ;;  %v3523_v6 = vld [vmem:[%s4323_s25 + $0x1d8] sm:$0xf0] }
 0x2de   : > { %v2025_v40 = vmax.f32 %v1896_v17, 0.0 }
 0x2e1   : > { %v1609_v14 = vpop.f32.mrf.mxu1 }
 0x2e2   : > { %v1610_v46 = vadd.f32 %v1609_v14, %v1441_v10  ;;  %v3828_v10 = vld [vmem:[%s4323_s25 + $0x1d4] sm:$0xf] }
 0x2e3   : > { %v1897_v47 = vpop.f32.mrf.mxu2  ;;  %v3526_v62 = vor.u32 %v3828_v10, %v3523_v6 }
 0x2e4   : > { %v1711_v21 = vmax.f32 %v1610_v46, 0.0  ;;  %v1898_v25 = vadd.f32 %v4573_v1, %v1897_v47 }
 0x2e6   : > { %v2026_v42 = vmax.f32 %v1898_v25, 0.0  ;;  %v1755_v31 = vpack.c.bf16 %v1711_v21, %v1710_v26  ;;  %v1449_v21 = vadd.f32 %v4518_v23, %v4400_v4  ;;  %v1451_v25 = vadd.f32 %v4518_v23, %v4404_v8 }
 0x2e8   : > { %v4671_v35 = vpack.c.bf16 %v2026_v42, %v2025_v40  ;;  %1939 = vmatmul.bf16.gmra.mxu2 %v1755_v31 }
 0x2e9   : > { %v1612_v58 = vpop.f32.mrf.mxu1 }
 0x2ea   : > { %v1613_v49 = vadd.f32 %v1612_v58, %v1444_v44  ;;  %v3830_v44 = vld [vmem:[%s4323_s25 + $0x1e4] sm:$0xf] }
 0x2eb   : > { %v1900_v61 = vpop.f32.mrf.mxu2 }
 0x2ec   : > { %1651 = vmatmul.bf16.gmra.mxu1 %v3518_v57  ;;  %v1901_v55 = vadd.f32 %v4573_v1, %v1900_v61  ;;  %v1712_v53 = vmax.f32 %v1613_v49, 0.0 }
 0x2ee   : > { %v2027_v14 = vmax.f32 %v1901_v55, 0.0 }
 0x2f1   : > { %v1614_v50 = vpop.f32.mrf.mxu1 }
 0x2f2   : > { %v1615_v22 = vadd.f32 %v1614_v50, %v1446_v15  ;;  %v3531_v15 = vld [vmem:[%s4323_s25 + $0x1e8] sm:$0xf0] }
 0x2f3   : > { %v1902_v51 = vpop.f32.mrf.mxu2  ;;  %v3534_v4 = vor.u32 %v3830_v44, %v3531_v15 }
 0x2f4   : > { %v1713_v33 = vmax.f32 %v1615_v22, 0.0  ;;  %v1903_v34 = vadd.f32 %v4573_v1, %v1902_v51 }
 0x2f6   : > { %v1756_v17 = vpack.c.bf16 %v1713_v33, %v1712_v53  ;;  %v2028_v46 = vmax.f32 %v1903_v34, 0.0  ;;  %v1454_v53 = vadd.f32 %v4518_v23, %v4408_v12  ;;  %v1456_v33 = vadd.f32 %v4518_v23, %v4412_v16 }
 0x2f8   : > { %v4681_v47 = vpack.c.bf16 %v2028_v46, %v2027_v14  ;;  %1944 = vmatmul.bf16.gmra.mxu2 %v1756_v17 }
 0x2f9   : > { %v1617_v0 = vpop.f32.mrf.mxu1 }
 0x2fa   : > { %v1618_v63 = vadd.f32 %v1617_v0, %v1449_v21  ;;  %v3539_v21 = vld [vmem:[%s4323_s25 + $0x1f8] sm:$0xf0] }
 0x2fb   : > { %v1905_v26 = vpop.f32.mrf.mxu2 }
 0x2fc   : > { %1656 = vmatmul.bf16.gmra.mxu1 %v3526_v62  ;;  %v1906_v40 = vadd.f32 %v4573_v1, %v1905_v26  ;;  %v1714_v57 = vmax.f32 %v1618_v63, 0.0  ;;  %v3832_v26 = vld [vmem:[%s4323_s25 + $0x1f4] sm:$0xf] }
 0x2fe   : > { %v2029_v49 = vmax.f32 %v1906_v40, 0.0  ;;  %v3542_v40 = vor.u32 %v3832_v26, %v3539_v21 }
 0x301   : > { %v1619_v9 = vpop.f32.mrf.mxu1 }
 0x302   : > { %v1620_v42 = vadd.f32 %v1619_v9, %v1451_v25  ;;  %v3858_v25 = vld [vmem:[%s5361_s7] sm:$0xff] }
 0x303   : > { %v1907_v31 = vpop.f32.mrf.mxu2  ;;  %4195 = vmatpush.bf16.msra.mxu3 %v3858_v25  ;;  %2241 = vmatpush.bf16.msrb.mxu2 %v3858_v25 }
 0x304   : > { %v1715_v58 = vmax.f32 %v1620_v42, 0.0  ;;  %v1908_v61 = vadd.f32 %v4573_v1, %v1907_v31 }
 0x306   : > { %v1757_v50 = vpack.c.bf16 %v1715_v58, %v1714_v57  ;;  %v2030_v55 = vmax.f32 %v1908_v61, 0.0  ;;  %v3865_v57 = vld [vmem:[%s5364_s10 + $0x8] sm:$0xff]  ;;  %v1459_v58 = vadd.f32 %v4518_v23, %v4416_v20  ;;  %v1461_v61 = vadd.f32 %v4518_v23, %v4420_v24 }
 0x307   : > { %2622 = vmatpush.bf16.msrb.mxu3 %v3865_v57  ;;  %v1464_v24 = vadd.f32 %v4518_v23, %v4424_v28 }
 0x308   : > { %v4691_v22 = vpack.c.bf16 %v2030_v55, %v2029_v49  ;;  %1949 = vmatmul.bf16.gmra.mxu2 %v1757_v50 }
 0x309   : > { %v1622_v8 = vpop.f32.mrf.mxu1 }
 0x30a   : > { %v1623_v34 = vadd.f32 %v1622_v8, %v1454_v53 }
 0x30b   : > { %v1910_v51 = vpop.f32.mrf.mxu2 }
 0x30c   : > { %1661 = vmatmul.bf16.gmra.mxu1 %v3534_v4  ;;  %v1911_v6 = vadd.f32 %v4573_v1, %v1910_v51  ;;  %v1716_v46 = vmax.f32 %v1623_v34, 0.0 }
 0x30e   : > { %v2031_v12 = vmax.f32 %v1911_v6, 0.0 }
 0x311   : > { %v1624_v10 = vpop.f32.mrf.mxu1 }
 0x312   : > { %v1625_v14 = vadd.f32 %v1624_v10, %v1456_v33 }
 0x313   : > { %v1912_v17 = vpop.f32.mrf.mxu2 }
 0x314   : > { %v1717_v62 = vmax.f32 %v1625_v14, 0.0  ;;  %v1913_v0 = vadd.f32 %v4573_v1, %v1912_v17  ;;  %v3863_v14 = vld [vmem:[%s5363_s9 + $0x8] sm:$0xff]  ;;  %v1466_v17 = vadd.f32 %v4518_v23, %v4428_v32  ;;  %v4730_v23 = vld [vmem:[%s5358_s4] ss:$0 sm:$0xff] }
 0x315   : > { %2899 = vmatpush.bf16.msrb.mxu0 %v3863_v14  ;;  %v1469_v57 = vadd.f32 %v4730_v23, %v4432_v36 }
 0x316   : > { %v1758_v63 = vpack.c.bf16 %v1717_v62, %v1716_v46  ;;  %v2032_v9 = vmax.f32 %v1913_v0, 0.0 }
 0x318   : > { %v4704_v16 = vpack.c.bf16 %v2032_v9, %v2031_v12  ;;  %1954 = vmatmul.bf16.gmra.mxu2 %v1758_v63 }
 0x319   : > { %v1627_v42 = vpop.f32.mrf.mxu1 }
 0x31a   : > { %v1628_v44 = vadd.f32 %v1627_v42, %v1459_v58  ;;  %v1471_v58 = vadd.f32 %v4730_v23, %v4436_v41  ;;  %v1474_v41 = vadd.f32 %v4730_v23, %v4440_v48 }
 0x31b   : > { %v1915_v31 = vpop.f32.mrf.mxu2 }
 0x31c   : > { %1666 = vmatmul.bf16.gmra.mxu1 %v3542_v40  ;;  %v1916_v49 = vadd.f32 %v4573_v1, %v1915_v31  ;;  %v1718_v4 = vmax.f32 %v1628_v44, 0.0 }
 0x31e   : > { %v2033_v53 = vmax.f32 %v1916_v49, 0.0 }
 0x321   : > { %v1629_v15 = vpop.f32.mrf.mxu1 }
 0x322   : > { %v1630_v50 = vadd.f32 %v1629_v15, %v1461_v61 }
 0x323   : > { %v1917_v55 = vpop.f32.mrf.mxu2 }
 0x324   : > { %v1719_v8 = vmax.f32 %v1630_v50, 0.0  ;;  %v1918_v51 = vadd.f32 %v4573_v1, %v1917_v55 }
 0x326   : > { %v1759_v33 = vpack.c.bf16 %v1719_v8, %v1718_v4  ;;  %v2034_v34 = vmax.f32 %v1918_v51, 0.0 }
 0x328   : > { %v4715_v10 = vpack.c.bf16 %v2034_v34, %v2033_v53  ;;  %1959 = vmatmul.bf16.gmra.mxu2 %v1759_v33 }
 0x329   : > { %v1632_v20 = vpop.f32.mrf.mxu1 }
 0x32a   : > { %v1633_v46 = vadd.f32 %v1632_v20, %v1464_v24 }
 0x32b   : > { %v1920_v6 = vpop.f32.mrf.mxu2 }
 0x32c   : > { %v1921_v0 = vadd.f32 %v4573_v1, %v1920_v6  ;;  %v1720_v25 = vmax.f32 %v1633_v46, 0.0  ;;  %v1476_v6 = vadd.f32 %v4730_v23, %v4444_v54  ;;  %v1479_v54 = vadd.f32 %v4730_v23, %v4448_v60 }
 0x32e   : > { %v2035_v9 = vmax.f32 %v1921_v0, 0.0 }
 0x331   : > { %v1634_v62 = vpop.f32.mrf.mxu1 }
 0x332   : > { %v1635_v26 = vadd.f32 %v1634_v62, %v1466_v17 }
 0x333   : > { %v1922_v21 = vpop.f32.mrf.mxu2 }
 0x334   : > { %v1721_v12 = vmax.f32 %v1635_v26, 0.0  ;;  %v1923_v63 = vadd.f32 %v4573_v1, %v1922_v21 }
 0x336   : > { %v1760_v28 = vpack.c.bf16 %v1721_v12, %v1720_v25  ;;  %v2036_v40 = vmax.f32 %v1923_v63, 0.0 }
 0x338   : > { %1964 = vmatmul.bf16.gmra.mxu2 %v1760_v28  ;;  %v2084_v42 = vpack.c.bf16 %v2036_v40, %v2035_v9  ;;  %v1481_v40 = vadd.f32 %v4730_v23, %v4452_v2  ;;  %v1484_v2 = vadd.f32 %v4730_v23, %v4456_v7 }
 0x339   : > { %v1637_v31 = vpop.f32.mrf.mxu1 }
 0x33a   : > { %3670 = vmatmul.msk.bf16.vlgmr.msra.gmra.mxu3 %vm2137_vm0, %v2084_v42  ;;  %v1638_v61 = vadd.f32 %v1637_v31, %v1469_v57 }
 0x33b   : > { %v1925_v32 = vpop.f32.mrf.mxu2 }
 0x33c   : > { %v1926_v15 = vadd.f32 %v4573_v1, %v1925_v32  ;;  %v1722_v55 = vmax.f32 %v1638_v61, 0.0 }
 0x33e   : > { %v2037_v51 = vmax.f32 %v1926_v15, 0.0 }
 0x341   : > { %v1639_v44 = vpop.f32.mrf.mxu1 }
 0x342   : > { %v1640_v49 = vadd.f32 %v1639_v44, %v1471_v58 }
 0x343   : > { %v1927_v50 = vpop.f32.mrf.mxu2 }
 0x344   : > { %v1723_v4 = vmax.f32 %v1640_v49, 0.0  ;;  %v1928_v8 = vadd.f32 %v4573_v1, %v1927_v50 }
 0x346   : > { %v1761_v53 = vpack.c.bf16 %v1723_v4, %v1722_v55  ;;  %v2038_v33 = vmax.f32 %v1928_v8, 0.0 }
 0x348   : > { %1969 = vmatmul.bf16.gmra.mxu2 %v1761_v53  ;;  %v2085_v34 = vpack.c.bf16 %v2038_v33, %v2037_v51  ;;  %v1486_v51 = vadd.f32 %v4730_v23, %v4460_v13  ;;  %v1489_v13 = vadd.f32 %v4730_v23, %v4467_v19 }
 0x349   : > { %v1642_v20 = vpop.f32.mrf.mxu1 }
 0x34a   : > { %3671 = vmatmul.msk.bf16.gmra.mxu3 %vm2137_vm0, %v2085_v34  ;;  %v1643_v24 = vadd.f32 %v1642_v20, %v1474_v41 }
 0x34b   : > { %v1930_v36 = vpop.f32.mrf.mxu2 }
 0x34c   : > { %v1931_v17 = vadd.f32 %v4573_v1, %v1930_v36  ;;  %v1724_v0 = vmax.f32 %v1643_v24, 0.0 }
 0x34e   : > { %v2039_v25 = vmax.f32 %v1931_v17, 0.0 }
 0x351   : > { %v1644_v14 = vpop.f32.mrf.mxu1 }
 0x352   : > { %v1645_v46 = vadd.f32 %v1644_v14, %v1476_v6 }
 0x353   : > { %v1932_v62 = vpop.f32.mrf.mxu2 }
 0x354   : > { %v1725_v26 = vmax.f32 %v1645_v46, 0.0  ;;  %v1933_v21 = vadd.f32 %v4573_v1, %v1932_v62 }
 0x356   : > { %v1762_v12 = vpack.c.bf16 %v1725_v26, %v1724_v0  ;;  %v2040_v63 = vmax.f32 %v1933_v21, 0.0  ;;  %v1491_v26 = vadd.f32 %v4730_v23, %v4477_v29  ;;  %v1494_v29 = vadd.f32 %v4730_v23, %v4487_v38 }
 0x358   : > { %1974 = vmatmul.bf16.gmra.mxu2 %v1762_v12  ;;  %v2086_v9 = vpack.c.bf16 %v2040_v63, %v2039_v25 }
 0x359   : > { %v1647_v28 = vpop.f32.mrf.mxu1 }
 0x35a   : > { %3672 = vmatmul.msk.bf16.gmra.mxu3 %vm2137_vm0, %v2086_v9  ;;  %v1648_v42 = vadd.f32 %v1647_v28, %v1479_v54 }
 0x35b   : > { %v1935_v48 = vpop.f32.mrf.mxu2 }
 0x35c   : > { %v1936_v32 = vadd.f32 %v4573_v1, %v1935_v48  ;;  %v1726_v61 = vmax.f32 %v1648_v42, 0.0 }
 0x35e   : > { %v2041_v49 = vmax.f32 %v1936_v32, 0.0 }
 0x361   : > { %v1649_v31 = vpop.f32.mrf.mxu1 }
 0x362   : > { %v1650_v57 = vadd.f32 %v1649_v31, %v1481_v40 }
 0x363   : > { %v1937_v58 = vpop.f32.mrf.mxu2 }
 0x364   : > { %v1727_v44 = vmax.f32 %v1650_v57, 0.0  ;;  %v1938_v15 = vadd.f32 %v4573_v1, %v1937_v58  ;;  %v1496_v58 = vadd.f32 %v4730_v23, %v4497_v52  ;;  %v1499_v52 = vadd.f32 %v4730_v23, %v4507_v3 }
 0x366   : > { %v1763_v50 = vpack.c.bf16 %v1727_v44, %v1726_v61  ;;  %v2042_v55 = vmax.f32 %v1938_v15, 0.0 }
 0x368   : > { %1979 = vmatmul.bf16.gmra.mxu2 %v1763_v50  ;;  %v2087_v4 = vpack.c.bf16 %v2042_v55, %v2041_v49 }
 0x369   : > { %v1652_v8 = vpop.f32.mrf.mxu1 }
 0x36a   : > { %3673 = vmatmul.msk.bf16.gmra.mxu3 %vm2137_vm0, %v2087_v4  ;;  %v1653_v53 = vadd.f32 %v1652_v8, %v1484_v2 }
 0x36b   : > { %v1940_v60 = vpop.f32.mrf.mxu2 }
 0x36c   : > { %v1941_v34 = vadd.f32 %v4573_v1, %v1940_v60  ;;  %v1728_v41 = vmax.f32 %v1653_v53, 0.0 }
 0x36e   : > { %v2043_v14 = vmax.f32 %v1941_v34, 0.0  ;;  %v1501_v34 = vadd.f32 %v4730_v23, %v4511_v11 }
 0x371   : > { %v1654_v33 = vpop.f32.mrf.mxu1 }
 0x372   : > { %v1655_v20 = vadd.f32 %v1654_v33, %v1486_v51 }
 0x373   : > { %v1942_v36 = vpop.f32.mrf.mxu2 }
 0x374   : > { %v1729_v6 = vmax.f32 %v1655_v20, 0.0  ;;  %v1943_v24 = vadd.f32 %v4573_v1, %v1942_v36  ;;  %v3864_v36 = vld [vmem:[%s5364_s10] sm:$0xff] }
 0x375   : > { %2623 = vmatpush.bf16.msrb.mxu3 %v3864_v36 }
 0x376   : > { %v1764_v17 = vpack.c.bf16 %v1729_v6, %v1728_v41  ;;  %v2044_v46 = vmax.f32 %v1943_v24, 0.0 }
 0x378   : > { %1984 = vmatmul.bf16.gmra.mxu2 %v1764_v17  ;;  %v2088_v62 = vpack.c.bf16 %v2044_v46, %v2043_v14 }
 0x379   : > { %v1657_v0 = vpop.f32.mrf.mxu1 }
 0x37a   : > { %3674 = vmatmul.msk.bf16.gmra.mxu3 %vm2137_vm0, %v2088_v62  ;;  %v1658_v21 = vadd.f32 %v1657_v0, %v1489_v13  ;;  %v3862_v13 = vld [vmem:[%s5363_s9] sm:$0xff] }
 0x37b   : > { %v1945_v7 = vpop.f32.mrf.mxu2  ;;  %2900 = vmatpush.bf16.msrb.mxu0 %v3862_v13 }
 0x37c   : > { %v1946_v12 = vadd.f32 %v4573_v1, %v1945_v7  ;;  %v1730_v28 = vmax.f32 %v1658_v21, 0.0 }
 0x37e   : > { %v2045_v40 = vmax.f32 %v1946_v12, 0.0 }
 0x381   : > { %v1659_v25 = vpop.f32.mrf.mxu1 }
 0x382   : > { %v1660_v63 = vadd.f32 %v1659_v25, %v1491_v26 }
 0x383   : > { %v1947_v9 = vpop.f32.mrf.mxu2 }
 0x384   : > { %v1731_v48 = vmax.f32 %v1660_v63, 0.0  ;;  %v1948_v54 = vadd.f32 %v4573_v1, %v1947_v9 }
 0x386   : > { %v1765_v42 = vpack.c.bf16 %v1731_v48, %v1730_v28  ;;  %v2046_v31 = vmax.f32 %v1948_v54, 0.0  ;;  %v4795_v54 = vld [vmem:[%s5362_s8] ss:$0 sm:$0xff] }
 0x388   : > { %1989 = vmatmul.bf16.gmra.mxu2 %v1765_v42  ;;  %v2089_v32 = vpack.c.bf16 %v2046_v31, %v2045_v40 }
 0x389   : > { %v1662_v57 = vpop.f32.mrf.mxu1 }
 0x38a   : > { %3675 = vmatmul.msk.bf16.gmra.mxu3 %vm2137_vm0, %v2089_v32  ;;  %v1663_v61 = vadd.f32 %v1662_v57, %v1494_v29 }
 0x38b   : > { %v1950_v19 = vpop.f32.mrf.mxu2 }
 0x38c   : > { %v1951_v15 = vadd.f32 %v4573_v1, %v1950_v19  ;;  %v1732_v55 = vmax.f32 %v1663_v61, 0.0 }
 0x38e   : > { %v2047_v60 = vmax.f32 %v1951_v15, 0.0 }
 0x391   : > { %v1664_v44 = vpop.f32.mrf.mxu1 }
 0x392   : > { %v1665_v49 = vadd.f32 %v1664_v44, %v1496_v58 }
 0x393   : > { %v1952_v50 = vpop.f32.mrf.mxu2 }
 0x394   : > { %v1733_v4 = vmax.f32 %v1665_v49, 0.0  ;;  %v1953_v8 = vadd.f32 %v4573_v1, %v1952_v50 }
 0x396   : > { %v1766_v2 = vpack.c.bf16 %v1733_v4, %v1732_v55  ;;  %v2048_v51 = vmax.f32 %v1953_v8, 0.0 }
 0x398   : > { %1994 = vmatmul.bf16.gmra.mxu2 %v1766_v2  ;;  %v2090_v53 = vpack.c.bf16 %v2048_v51, %v2047_v60 }
 0x399   : > { %v1667_v33 = vpop.f32.mrf.mxu1 }
 0x39a   : > { %3676 = vmatmul.msk.bf16.gmra.mxu3 %vm2137_vm0, %v2090_v53  ;;  %v1668_v20 = vadd.f32 %v1667_v33, %v1499_v52 }
 0x39b   : > { %v1955_v38 = vpop.f32.mrf.mxu2 }
 0x39c   : > { %v1956_v6 = vadd.f32 %v4573_v1, %v1955_v38  ;;  %v1734_v17 = vmax.f32 %v1668_v20, 0.0 }
 0x39e   : > { %v2049_v0 = vmax.f32 %v1956_v6, 0.0 }
 0x3a1   : > { %v1669_v41 = vpop.f32.mrf.mxu1 }
 0x3a2   : > { %v1670_v24 = vadd.f32 %v1669_v41, %v1501_v34 }
 0x3a3   : > { %v1957_v14 = vpop.f32.mrf.mxu2 }
 0x3a4   : > { %v1735_v46 = vmax.f32 %v1670_v24, 0.0  ;;  %v1958_v62 = vadd.f32 %v4573_v1, %v1957_v14 }
 0x3a6   : > { %v1767_v3 = vpack.c.bf16 %v1735_v46, %v1734_v17  ;;  %v2050_v7 = vmax.f32 %v1958_v62, 0.0 }
 0x3a8   : > { %1999 = vmatmul.bf16.gmra.mxu2 %v1767_v3  ;;  %v2091_v11 = vpack.c.bf16 %v2050_v7, %v2049_v0 }
 0x3aa   : > { %3677 = vmatmul.msk.bf16.gmra.mxu3 %vm2137_vm0, %v2091_v11 }
 0x3ab   : > { %v1960_v23 = vpop.f32.mrf.mxu2 }
 0x3ac   : > { %v1961_v26 = vadd.f32 %v4573_v1, %v1960_v23 }
 0x3ae   : > { %v2051_v12 = vmax.f32 %v1961_v26, 0.0 }
 0x3b3   : > { %v1962_v21 = vpop.f32.mrf.mxu2 }
 0x3b4   : > { %v1963_v25 = vadd.f32 %v4573_v1, %v1962_v21 }
 0x3b6   : > { %v2052_v63 = vmax.f32 %v1963_v25, 0.0 }
 0x3b8   : > { %3655 = vmatmul.msk.bf16.vlgmr.msrb.gmra.mxu2 %vm2137_vm0, %v4580_v59  ;;  %v2092_v9 = vpack.c.bf16 %v2052_v63, %v2051_v12 }
 0x3ba   : > { %3678 = vmatmul.msk.bf16.gmra.mxu3 %vm2137_vm0, %v2092_v9 }
 0x3bb   : > { %v1965_v28 = vpop.f32.mrf.mxu2 }
 0x3bc   : > { %v1966_v40 = vadd.f32 %v4573_v1, %v1965_v28 }
 0x3bd   : > { %v2318_v48 = vpop.f32.mrf.mxu3 }
 0x3be   : > { %v2319_v31 = vadd.f32 %v4795_v54, %v2318_v48  ;;  %v2053_v19 = vmax.f32 %v1966_v40, 0.0 }
 0x3c0   : > { %v2433_v58 = vmax.f32 %v2319_v31, 0.0 }
 0x3c3   : > { %v1967_v42 = vpop.f32.mrf.mxu2 }
 0x3c4   : > { %v1968_v32 = vadd.f32 %v4573_v1, %v1967_v42 }
 0x3c5   : > { %v2320_v57 = vpop.f32.mrf.mxu3 }
 0x3c6   : > { %v2054_v59 = vmax.f32 %v1968_v32, 0.0  ;;  %v2321_v29 = vadd.f32 %v4795_v54, %v2320_v57 }
 0x3c8   : > { %v2434_v61 = vmax.f32 %v2321_v29, 0.0  ;;  %3656 = vmatmul.msk.bf16.gmra.mxu2 %vm2137_vm0, %v4588_v45  ;;  %v2093_v44 = vpack.c.bf16 %v2054_v59, %v2053_v19 }
 0x3ca   : > { %v4803_v15 = vpack.c.bf16 %v2434_v61, %v2433_v58  ;;  %3679 = vmatmul.msk.bf16.gmra.mxu3 %vm2137_vm0, %v2093_v44 }
 0x3cb   : > { %v1970_v49 = vpop.f32.mrf.mxu2 }
 0x3cc   : > { %v1971_v55 = vadd.f32 %v4573_v1, %v1970_v49 }
 0x3cd   : > { %v2323_v50 = vpop.f32.mrf.mxu3 }
 0x3ce   : > { %v2324_v8 = vadd.f32 %v4795_v54, %v2323_v50  ;;  %v2055_v51 = vmax.f32 %v1971_v55, 0.0 }
 0x3d0   : > { %v2435_v45 = vmax.f32 %v2324_v8, 0.0 }
 0x3d3   : > { %v1972_v4 = vpop.f32.mrf.mxu2 }
 0x3d4   : > { %v1973_v60 = vadd.f32 %v4573_v1, %v1972_v4  ;;  %v4818_v1 = vld [vmem:[%s5360_s6] ss:$0 sm:$0xff] }
 0x3d5   : > { %v2325_v2 = vpop.f32.mrf.mxu3 }
 0x3d6   : > { %v2056_v53 = vmax.f32 %v1973_v60, 0.0  ;;  %v2326_v33 = vadd.f32 %v4795_v54, %v2325_v2 }
 0x3d8   : > { %v2436_v38 = vmax.f32 %v2326_v33, 0.0  ;;  %3657 = vmatmul.msk.bf16.gmra.mxu2 %vm2137_vm0, %v4596_v39  ;;  %v2094_v52 = vpack.c.bf16 %v2056_v53, %v2055_v51 }
 0x3da   : > { %v4812_v34 = vpack.c.bf16 %v2436_v38, %v2435_v45  ;;  %3680 = vmatmul.msk.bf16.gmra.mxu3 %vm2137_vm0, %v2094_v52 }
 0x3db   : > { %v1975_v20 = vpop.f32.mrf.mxu2 }
 0x3dc   : > { %v1976_v41 = vadd.f32 %v4818_v1, %v1975_v20 }
 0x3dd   : > { %v2328_v36 = vpop.f32.mrf.mxu3 }
 0x3de   : > { %v2329_v24 = vadd.f32 %v4795_v54, %v2328_v36  ;;  %v2057_v17 = vmax.f32 %v1976_v41, 0.0 }
 0x3e0   : > { %v2437_v0 = vmax.f32 %v2329_v24, 0.0 }
 0x3e3   : > { %v1977_v6 = vpop.f32.mrf.mxu2 }
 0x3e4   : > { %v1978_v14 = vadd.f32 %v4818_v1, %v1977_v6 }
 0x3e5   : > { %v2330_v39 = vpop.f32.mrf.mxu3 }
 0x3e6   : > { %v2058_v46 = vmax.f32 %v1978_v14, 0.0  ;;  %v2331_v62 = vadd.f32 %v4795_v54, %v2330_v39 }
 0x3e8   : > { %v2438_v3 = vmax.f32 %v2331_v62, 0.0  ;;  %3658 = vmatmul.msk.bf16.gmra.mxu2 %vm2137_vm0, %v4604_v5  ;;  %v2095_v7 = vpack.c.bf16 %v2058_v46, %v2057_v17  ;;  %v3867_v17 = vld [vmem:[%s4860_s27] sm:$0xff]  }
 0x3e9   : > { %v3995_v46 = vld [vmem:[%s4865_s29] sm:$0xff]   ;;  %v3868_v62 = vunpack.c.l.bf16 %v3867_v17 }
 0x3ea   : > { %v4826_v11 = vpack.c.bf16 %v2438_v3, %v2437_v0  ;;  %3681 = vmatmul.msk.bf16.gmra.mxu3 %vm2137_vm0, %v2095_v7  ;;  %v3869_v0 = vunpack.c.h.bf16 %v3867_v17  ;;  %v3996_v3 = vunpack.c.l.bf16 %v3995_v46  ;;  %v3997_v7 = vunpack.c.h.bf16 %v3995_v46 }
 0x3eb   : > { %v1980_v23 = vpop.f32.mrf.mxu2 }
 0x3ec   : > { %v1981_v26 = vadd.f32 %v4818_v1, %v1980_v23 }
 0x3ed   : > { %v2333_v13 = vpop.f32.mrf.mxu3 }
 0x3ee   : > { %v2334_v25 = vadd.f32 %v4795_v54, %v2333_v13  ;;  %v2059_v9 = vmax.f32 %v1981_v26, 0.0 }
 0x3f0   : > { %v2439_v5 = vmax.f32 %v2334_v25, 0.0  ;;  %v723_v25 = vmul.f32 %v3997_v7, %v3869_v0 }
 0x3f3   : > { %v1982_v21 = vpop.f32.mrf.mxu2 }
 0x3f4   : > { %v1983_v12 = vadd.f32 %v4818_v1, %v1982_v21  ;;  %v722_v21 = vmul.f32 %v3996_v3, %v3868_v62 }
 0x3f5   : > { %v2335_v63 = vpop.f32.mrf.mxu3 }
 0x3f6   : > { %v2060_v28 = vmax.f32 %v1983_v12, 0.0  ;;  %v2336_v48 = vadd.f32 %v4795_v54, %v2335_v63 }
 0x3f8   : > { %v2096_v40 = vpack.c.bf16 %v2060_v28, %v2059_v9  ;;  %v2440_v42 = vmax.f32 %v2336_v48, 0.0  ;;  %3659 = vmatmul.msk.bf16.gmra.mxu2 %vm2137_vm0, %v4612_v43  ;;  %v786_v48 = vpack.c.bf16 %v723_v25, %v722_v21 }
 0x3fa   : > { %v4835_v31 = vpack.c.bf16 %v2440_v42, %v2439_v5  ;;  %3682 = vmatmul.msk.bf16.gmra.mxu3 %vm2137_vm0, %v2096_v40  ;;  %3735 = vmatmul.msk.bf16.vlgmr.msrb.gmra.mxu0 %vm2519_vm1, %v786_v48 }
 0x3fb   : > { %v1985_v32 = vpop.f32.mrf.mxu2 }
 0x3fc   : > { %v1986_v19 = vadd.f32 %v4818_v1, %v1985_v32 }
 0x3fd   : > { %v2338_v57 = vpop.f32.mrf.mxu3 }
 0x3fe   : > { %v2339_v29 = vadd.f32 %v4795_v54, %v2338_v57  ;;  %v2061_v44 = vmax.f32 %v1986_v19, 0.0 }
 0x400   : > { %v2441_v55 = vmax.f32 %v2339_v29, 0.0  ;;  %v4122_v29 = vld [vmem:[%s4860_s27 + $0x8] sm:$0xff]  }
 0x403   : > { %v1987_v59 = vpop.f32.mrf.mxu2 }
 0x404   : > { %v1988_v58 = vadd.f32 %v4818_v1, %v1987_v59 }
 0x405   : > { %v2340_v61 = vpop.f32.mrf.mxu3 }
 0x406   : > { %v2062_v49 = vmax.f32 %v1988_v58, 0.0  ;;  %v2341_v50 = vadd.f32 %v4795_v54, %v2340_v61  ;;  %v4153_v58 = vld [vmem:[%s4865_s29 + $0x8] sm:$0xff]   ;;  %v3872_v61 = vunpack.c.l.bf16 %v4122_v29 }
 0x408   : > { %v2097_v43 = vpack.c.bf16 %v2062_v49, %v2061_v44  ;;  %v2442_v4 = vmax.f32 %v2341_v50, 0.0  ;;  %3660 = vmatmul.msk.bf16.gmra.mxu2 %vm2137_vm0, %v4620_v56  ;;  %v3873_v44 = vunpack.c.h.bf16 %v4122_v29  ;;  %v4000_v49 = vunpack.c.l.bf16 %v4153_v58 }
 0x409   : > { %v4001_v50 = vunpack.c.h.bf16 %v4153_v58 }
 0x40a   : > { %v4844_v8 = vpack.c.bf16 %v2442_v4, %v2441_v55  ;;  %3683 = vmatmul.msk.bf16.gmra.mxu3 %vm2137_vm0, %v2097_v43  ;;  %v724_v4 = vmul.f32 %v4000_v49, %v3872_v61 }
 0x40b   : > { %v1990_v60 = vpop.f32.mrf.mxu2 }
 0x40c   : > { %v1991_v51 = vadd.f32 %v4818_v1, %v1990_v60  ;;  %v725_v60 = vmul.f32 %v4001_v50, %v3873_v44 }
 0x40d   : > { %v2343_v2 = vpop.f32.mrf.mxu3 }
 0x40e   : > { %v2344_v33 = vadd.f32 %v4795_v54, %v2343_v2  ;;  %v2063_v52 = vmax.f32 %v1991_v51, 0.0 }
 0x410   : > { %v2443_v56 = vmax.f32 %v2344_v33, 0.0 }
 0x413   : > { %v1992_v53 = vpop.f32.mrf.mxu2 }
 0x414   : > { %v1993_v45 = vadd.f32 %v4818_v1, %v1992_v53 }
 0x415   : > { %v2345_v38 = vpop.f32.mrf.mxu3 }
 0x416   : > { %v2064_v20 = vmax.f32 %v1993_v45, 0.0  ;;  %v2346_v36 = vadd.f32 %v4795_v54, %v2345_v38  ;;  %v787_v45 = vpack.c.bf16 %v725_v60, %v724_v4 }
 0x418   : > { %v2098_v41 = vpack.c.bf16 %v2064_v20, %v2063_v52  ;;  %v2444_v6 = vmax.f32 %v2346_v36, 0.0  ;;  %3661 = vmatmul.msk.bf16.gmra.mxu2 %vm2137_vm0, %v4631_v27  ;;  %3736 = vmatmul.msk.bf16.gmra.mxu0 %vm2519_vm1, %v787_v45 }
 0x41a   : > { %v4853_v24 = vpack.c.bf16 %v2444_v6, %v2443_v56  ;;  %3684 = vmatmul.msk.bf16.gmra.mxu3 %vm2137_vm0, %v2098_v41  ;;  %v4123_v6 = vld [vmem:[%s4860_s27 + $0x10] sm:$0xff]  }
 0x41b   : > { %v1995_v14 = vpop.f32.mrf.mxu2 }
 0x41c   : > { %v1996_v27 = vadd.f32 %v4818_v1, %v1995_v14  ;;  %v4154_v14 = vld [vmem:[%s4865_s29 + $0x10] sm:$0xff]  }
 0x41d   : > { %v2348_v39 = vpop.f32.mrf.mxu3  ;;  %v4004_v17 = vunpack.c.l.bf16 %v4154_v14  ;;  %v4005_v46 = vunpack.c.h.bf16 %v4154_v14 }
 0x41e   : > { %v2349_v13 = vadd.f32 %v4795_v54, %v2348_v39  ;;  %v2065_v63 = vmax.f32 %v1996_v27, 0.0  ;;  %v3876_v39 = vunpack.c.l.bf16 %v4123_v6  ;;  %v3877_v27 = vunpack.c.h.bf16 %v4123_v6 }
 0x420   : > { %v2445_v5 = vmax.f32 %v2349_v13, 0.0  ;;  %v726_v3 = vmul.f32 %v4004_v17, %v3876_v39  ;;  %v727_v7 = vmul.f32 %v4005_v46, %v3877_v27 }
 0x422   : > { %v788_v25 = vpack.c.bf16 %v727_v7, %v726_v3 }
 0x423   : > { %v1997_v23 = vpop.f32.mrf.mxu2 }
 0x424   : > { %v1998_v26 = vadd.f32 %v4818_v1, %v1997_v23 }
 0x425   : > { %v2350_v12 = vpop.f32.mrf.mxu3 }
 0x426   : > { %v2066_v9 = vmax.f32 %v1998_v26, 0.0  ;;  %v2351_v28 = vadd.f32 %v4795_v54, %v2350_v12 }
 0x428   : > { %v2099_v40 = vpack.c.bf16 %v2066_v9, %v2065_v63  ;;  %v2446_v42 = vmax.f32 %v2351_v28, 0.0  ;;  %3662 = vmatmul.msk.bf16.gmra.mxu2 %vm2137_vm0, %v4641_v30  ;;  %3737 = vmatmul.msk.bf16.gmra.mxu0 %vm2519_vm1, %v788_v25 }
 0x42a   : > { %v4876_v32 = vpack.c.bf16 %v2446_v42, %v2445_v5  ;;  %3685 = vmatmul.msk.bf16.gmra.mxu3 %vm2137_vm0, %v2099_v40  ;;  %v4124_v42 = vld [vmem:[%s4860_s27 + $0x18] sm:$0xff]  }
 0x42b   : > { %v2000_v57 = vpop.f32.mrf.mxu2 }
 0x42c   : > { %v2001_v59 = vadd.f32 %v4818_v1, %v2000_v57  ;;  %v4155_v57 = vld [vmem:[%s4865_s29 + $0x18] sm:$0xff]  }
 0x42d   : > { %v2353_v19 = vpop.f32.mrf.mxu3  ;;  %v4008_v29 = vunpack.c.l.bf16 %v4155_v57  ;;  %v4009_v58 = vunpack.c.h.bf16 %v4155_v57 }
 0x42e   : > { %v2354_v43 = vadd.f32 %v4795_v54, %v2353_v19  ;;  %v2067_v51 = vmax.f32 %v2001_v59, 0.0  ;;  %v3880_v19 = vunpack.c.l.bf16 %v4124_v42  ;;  %v3881_v59 = vunpack.c.h.bf16 %v4124_v42 }
 0x430   : > { %v2447_v38 = vmax.f32 %v2354_v43, 0.0  ;;  %v728_v49 = vmul.f32 %v4008_v29, %v3880_v19  ;;  %v729_v50 = vmul.f32 %v4009_v58, %v3881_v59 }
 0x432   : > { %v789_v60 = vpack.c.bf16 %v729_v50, %v728_v49 }
 0x433   : > { %v2002_v55 = vpop.f32.mrf.mxu2 }
 0x434   : > { %v2003_v30 = vadd.f32 %v4818_v1, %v2002_v55 }
 0x435   : > { %v2355_v2 = vpop.f32.mrf.mxu3 }
 0x436   : > { %v2068_v53 = vmax.f32 %v2003_v30, 0.0  ;;  %v2356_v33 = vadd.f32 %v4795_v54, %v2355_v2 }
 0x438   : > { %v2100_v52 = vpack.c.bf16 %v2068_v53, %v2067_v51  ;;  %v2448_v20 = vmax.f32 %v2356_v33, 0.0  ;;  %3663 = vmatmul.msk.bf16.gmra.mxu2 %vm2137_vm0, %v4651_v18  ;;  %3738 = vmatmul.msk.bf16.gmra.mxu0 %vm2519_vm1, %v789_v60 }
 0x43a   : > { %v4888_v36 = vpack.c.bf16 %v2448_v20, %v2447_v38  ;;  %3686 = vmatmul.msk.bf16.gmra.mxu3 %vm2137_vm0, %v2100_v52  ;;  %v4125_v20 = vld [vmem:[%s4860_s27 + $0x20] sm:$0xff]  }
 0x43b   : > { %v2243_v1 = vpop.f32.mrf.mxu2 }
 0x43c   : > { %v2244_v41 = vadd.f32 %v4795_v54, %v2243_v1  ;;  %v4156_v1 = vld [vmem:[%s4865_s29 + $0x20] sm:$0xff]  }
 0x43d   : > { %v2358_v56 = vpop.f32.mrf.mxu3  ;;  %v4012_v6 = vunpack.c.l.bf16 %v4156_v1  ;;  %v4013_v14 = vunpack.c.h.bf16 %v4156_v1 }
 0x43e   : > { %v2359_v0 = vadd.f32 %v4795_v54, %v2358_v56  ;;  %v2403_v13 = vmax.f32 %v2244_v41, 0.0  ;;  %v3884_v56 = vunpack.c.l.bf16 %v4125_v20  ;;  %v3885_v41 = vunpack.c.h.bf16 %v4125_v20 }
 0x440   : > { %v2449_v12 = vmax.f32 %v2359_v0, 0.0  ;;  %v730_v17 = vmul.f32 %v4012_v6, %v3884_v56  ;;  %v731_v46 = vmul.f32 %v4013_v14, %v3885_v41 }
 0x442   : > { %v790_v7 = vpack.c.bf16 %v731_v46, %v730_v17 }
 0x443   : > { %v2245_v62 = vpop.f32.mrf.mxu2 }
 0x444   : > { %v2246_v18 = vadd.f32 %v4795_v54, %v2245_v62 }
 0x445   : > { %v2360_v23 = vpop.f32.mrf.mxu3 }
 0x446   : > { %v2404_v26 = vmax.f32 %v2246_v18, 0.0  ;;  %v2361_v21 = vadd.f32 %v4795_v54, %v2360_v23 }
 0x448   : > { %v2467_v63 = vpack.c.bf16 %v2404_v26, %v2403_v13  ;;  %v2450_v9 = vmax.f32 %v2361_v21, 0.0  ;;  %3664 = vmatmul.msk.bf16.gmra.mxu2 %vm2137_vm0, %v4661_v37  ;;  %3739 = vmatmul.msk.bf16.gmra.mxu0 %vm2519_vm1, %v790_v7 }
 0x44a   : > { %v4900_v28 = vpack.c.bf16 %v2450_v9, %v2449_v12  ;;  %3695 = vmatmul.msk.bf16.vlgmr.msrb.gmra.mxu3 %vm2519_vm1, %v2467_v63  ;;  %v4126_v9 = vld [vmem:[%s4860_s27 + $0x28] sm:$0xff]  }
 0x44b   : > { %v2248_v48 = vpop.f32.mrf.mxu2 }
 0x44c   : > { %v2249_v40 = vadd.f32 %v4795_v54, %v2248_v48  ;;  %v4157_v48 = vld [vmem:[%s4865_s29 + $0x28] sm:$0xff]  }
 0x44d   : > { %v2363_v5 = vpop.f32.mrf.mxu3  ;;  %v4016_v42 = vunpack.c.l.bf16 %v4157_v48  ;;  %v4017_v57 = vunpack.c.h.bf16 %v4157_v48 }
 0x44e   : > { %v2364_v44 = vadd.f32 %v4795_v54, %v2363_v5  ;;  %v2405_v43 = vmax.f32 %v2249_v40, 0.0  ;;  %v3888_v5 = vunpack.c.l.bf16 %v4126_v9  ;;  %v3889_v40 = vunpack.c.h.bf16 %v4126_v9 }
 0x450   : > { %v2451_v2 = vmax.f32 %v2364_v44, 0.0  ;;  %v732_v29 = vmul.f32 %v4016_v42, %v3888_v5  ;;  %v733_v58 = vmul.f32 %v4017_v57, %v3889_v40 }
 0x452   : > { %v791_v50 = vpack.c.bf16 %v733_v58, %v732_v29 }
 0x453   : > { %v2250_v61 = vpop.f32.mrf.mxu2 }
 0x454   : > { %v2251_v37 = vadd.f32 %v4795_v54, %v2250_v61 }
 0x455   : > { %v2365_v55 = vpop.f32.mrf.mxu3 }
 0x456   : > { %v2406_v30 = vmax.f32 %v2251_v37, 0.0  ;;  %v2366_v4 = vadd.f32 %v4795_v54, %v2365_v55 }
 0x458   : > { %v2468_v51 = vpack.c.bf16 %v2406_v30, %v2405_v43  ;;  %v2452_v53 = vmax.f32 %v2366_v4, 0.0  ;;  %3665 = vmatmul.msk.bf16.gmra.mxu2 %vm2137_vm0, %v4671_v35  ;;  %3740 = vmatmul.msk.bf16.gmra.mxu0 %vm2519_vm1, %v791_v50 }
 0x45a   : > { %v4912_v33 = vpack.c.bf16 %v2452_v53, %v2451_v2  ;;  %3696 = vmatmul.msk.bf16.gmra.mxu3 %vm2519_vm1, %v2468_v51  ;;  %v4127_v53 = vld [vmem:[%s4860_s27 + $0x30] sm:$0xff]  }
 0x45b   : > { %v2253_v45 = vpop.f32.mrf.mxu2 }
 0x45c   : > { %v2254_v52 = vadd.f32 %v4795_v54, %v2253_v45  ;;  %v4158_v45 = vld [vmem:[%s4865_s29 + $0x30] sm:$0xff]  }
 0x45d   : > { %v2368_v38 = vpop.f32.mrf.mxu3  ;;  %v4020_v20 = vunpack.c.l.bf16 %v4158_v45  ;;  %v4021_v1 = vunpack.c.h.bf16 %v4158_v45 }
 0x45e   : > { %v2369_v27 = vadd.f32 %v4795_v54, %v2368_v38  ;;  %v2407_v0 = vmax.f32 %v2254_v52, 0.0  ;;  %v3892_v38 = vunpack.c.l.bf16 %v4127_v53  ;;  %v3893_v52 = vunpack.c.h.bf16 %v4127_v53 }
 0x460   : > { %v2453_v23 = vmax.f32 %v2369_v27, 0.0  ;;  %v734_v6 = vmul.f32 %v4020_v20, %v3892_v38  ;;  %v735_v14 = vmul.f32 %v4021_v1, %v3893_v52 }
 0x462   : > { %v792_v46 = vpack.c.bf16 %v735_v14, %v734_v6 }
 0x463   : > { %v2255_v39 = vpop.f32.mrf.mxu2 }
 0x464   : > { %v2256_v35 = vadd.f32 %v4795_v54, %v2255_v39 }
 0x465   : > { %v2370_v62 = vpop.f32.mrf.mxu3 }
 0x466   : > { %v2408_v18 = vmax.f32 %v2256_v35, 0.0  ;;  %v2371_v3 = vadd.f32 %v4795_v54, %v2370_v62 }
 0x468   : > { %v2469_v13 = vpack.c.bf16 %v2408_v18, %v2407_v0  ;;  %v2454_v26 = vmax.f32 %v2371_v3, 0.0  ;;  %3666 = vmatmul.msk.bf16.gmra.mxu2 %vm2137_vm0, %v4681_v47  ;;  %3741 = vmatmul.msk.bf16.gmra.mxu0 %vm2519_vm1, %v792_v46 }
 0x46a   : > { %v4924_v21 = vpack.c.bf16 %v2454_v26, %v2453_v23  ;;  %3697 = vmatmul.msk.bf16.gmra.mxu3 %vm2519_vm1, %v2469_v13  ;;  %v4128_v26 = vld [vmem:[%s4860_s27 + $0x38] sm:$0xff]  }
 0x46b   : > { %v2258_v25 = vpop.f32.mrf.mxu2 }
 0x46c   : > { %v2259_v63 = vadd.f32 %v4795_v54, %v2258_v25  ;;  %v4159_v25 = vld [vmem:[%s4865_s29 + $0x38] sm:$0xff]  }
 0x46d   : > { %v2373_v12 = vpop.f32.mrf.mxu3  ;;  %v4024_v9 = vunpack.c.l.bf16 %v4159_v25  ;;  %v4025_v48 = vunpack.c.h.bf16 %v4159_v25 }
 0x46e   : > { %v2374_v59 = vadd.f32 %v4795_v54, %v2373_v12  ;;  %v2409_v44 = vmax.f32 %v2259_v63, 0.0  ;;  %v3896_v12 = vunpack.c.l.bf16 %v4128_v26  ;;  %v3897_v63 = vunpack.c.h.bf16 %v4128_v26 }
 0x470   : > { %v2455_v55 = vmax.f32 %v2374_v59, 0.0  ;;  %v736_v42 = vmul.f32 %v4024_v9, %v3896_v12  ;;  %v737_v57 = vmul.f32 %v4025_v48, %v3897_v63 }
 0x472   : > { %v793_v58 = vpack.c.bf16 %v737_v57, %v736_v42 }
 0x473   : > { %v2260_v19 = vpop.f32.mrf.mxu2 }
 0x474   : > { %v2261_v47 = vadd.f32 %v4795_v54, %v2260_v19 }
 0x475   : > { %v2375_v61 = vpop.f32.mrf.mxu3 }
 0x476   : > { %v2410_v37 = vmax.f32 %v2261_v47, 0.0  ;;  %v2376_v49 = vadd.f32 %v4795_v54, %v2375_v61 }
 0x478   : > { %v2470_v43 = vpack.c.bf16 %v2410_v37, %v2409_v44  ;;  %v2456_v30 = vmax.f32 %v2376_v49, 0.0  ;;  %3667 = vmatmul.msk.bf16.gmra.mxu2 %vm2137_vm0, %v4691_v22  ;;  %3742 = vmatmul.msk.bf16.gmra.mxu0 %vm2519_vm1, %v793_v58 }
 0x47a   : > { %v4936_v4 = vpack.c.bf16 %v2456_v30, %v2455_v55  ;;  %3698 = vmatmul.msk.bf16.gmra.mxu3 %vm2519_vm1, %v2470_v43  ;;  %v4129_v30 = vld [vmem:[%s4860_s27 + $0x40] sm:$0xff]  }
 0x47b   : > { %v2263_v60 = vpop.f32.mrf.mxu2 }
 0x47c   : > { %v2264_v51 = vadd.f32 %v4795_v54, %v2263_v60  ;;  %v4160_v60 = vld [vmem:[%s4865_s29 + $0x40] sm:$0xff]  }
 0x47d   : > { %v2378_v2 = vpop.f32.mrf.mxu3  ;;  %v4028_v53 = vunpack.c.l.bf16 %v4160_v60  ;;  %v4029_v45 = vunpack.c.h.bf16 %v4160_v60  ;;  %v4131_v60 = vld [vmem:[%s4860_s27 + $0x50] sm:$0xff]  }
 0x47e   : > { %v2379_v41 = vadd.f32 %v4795_v54, %v2378_v2  ;;  %v2411_v27 = vmax.f32 %v2264_v51, 0.0  ;;  %v3900_v2 = vunpack.c.l.bf16 %v4129_v30  ;;  %v3901_v51 = vunpack.c.h.bf16 %v4129_v30 }
 0x480   : > { %v2457_v62 = vmax.f32 %v2379_v41, 0.0  ;;  %v738_v20 = vmul.f32 %v4028_v53, %v3900_v2  ;;  %v739_v1 = vmul.f32 %v4029_v45, %v3901_v51  ;;  %v4968_v41 = vpop.f32.mrf.mxu0  ;;  %v4162_v2 = vld [vmem:[%s4865_s29 + $0x50] sm:$0xff]   ;;  %v3908_v51 = vunpack.c.l.bf16 %v4131_v60 }
 0x481   : > { %v3909_v53 = vunpack.c.h.bf16 %v4131_v60  ;;  %v4036_v45 = vunpack.c.l.bf16 %v4162_v2 }
 0x483   : > { %v2265_v56 = vpop.f32.mrf.mxu2 }
 0x484   : > { %v2266_v22 = vadd.f32 %v4795_v54, %v2265_v56 }
 0x485   : > { %v2380_v39 = vpop.f32.mrf.mxu3 }
 0x486   : > { %v2412_v35 = vmax.f32 %v2266_v22, 0.0  ;;  %v2381_v17 = vadd.f32 %v4795_v54, %v2380_v39  ;;  %v794_v39 = vpack.c.bf16 %v739_v1, %v738_v20  ;;  %v742_v1 = vmul.f32 %v4036_v45, %v3908_v51 }
 0x488   : > { %v2471_v0 = vpack.c.bf16 %v2412_v35, %v2411_v27  ;;  %v2458_v18 = vmax.f32 %v2381_v17, 0.0  ;;  %3668 = vmatmul.msk.bf16.gmra.mxu2 %vm2137_vm0, %v4704_v16  ;;  %3743 = vmatmul.msk.bf16.gmra.mxu0 %vm2519_vm1, %v794_v39 }
 0x48a   : > { %v4948_v3 = vpack.c.bf16 %v2458_v18, %v2457_v62  ;;  %3699 = vmatmul.msk.bf16.gmra.mxu3 %vm2519_vm1, %v2471_v0  ;;  %v4975_v18 = vpop.f32.mrf.mxu0 }
 0x48b   : > { %v2268_v7 = vpop.f32.mrf.mxu2 }
 0x48c   : > { %v2269_v13 = vadd.f32 %v4795_v54, %v2268_v7 }
 0x48d   : > { %v2383_v23 = vpop.f32.mrf.mxu3 }
 0x48e   : > { %v2384_v40 = vadd.f32 %v4795_v54, %v2383_v23  ;;  %v2413_v59 = vmax.f32 %v2269_v13, 0.0  ;;  %v4130_v23 = vld [vmem:[%s4860_s27 + $0x48] sm:$0xff]  }
 0x48f   : > { %v4161_v13 = vld [vmem:[%s4865_s29 + $0x48] sm:$0xff]   ;;  %v3904_v26 = vunpack.c.l.bf16 %v4130_v23  ;;  %v3905_v25 = vunpack.c.h.bf16 %v4130_v23 }
 0x490   : > { %v2459_v61 = vmax.f32 %v2384_v40, 0.0  ;;  %v4032_v12 = vunpack.c.l.bf16 %v4161_v13  ;;  %v4033_v63 = vunpack.c.h.bf16 %v4161_v13 }
 0x492   : > { %v740_v40 = vmul.f32 %v4032_v12, %v3904_v26  ;;  %v5003_v26 = vstv %s3062_s13 }
 0x493   : > { %v2270_v5 = vpop.f32.mrf.mxu2 }
 0x494   : > { %v2271_v16 = vadd.f32 %v4795_v54, %v2270_v5 }
 0x495   : > { %v2385_v19 = vpop.f32.mrf.mxu3  ;;  %v4982_v57 = vpop.f32.mrf.mxu0 }
 0x496   : > { %v2414_v47 = vmax.f32 %v2271_v16, 0.0  ;;  %v2386_v29 = vadd.f32 %v4795_v54, %v2385_v19  ;;  %v741_v16 = vmul.f32 %v4033_v63, %v3905_v25 }
 0x498   : > { %v2472_v44 = vpack.c.bf16 %v2414_v47, %v2413_v59  ;;  %v2460_v37 = vmax.f32 %v2386_v29, 0.0  ;;  %3669 = vmatmul.msk.bf16.gmra.mxu2 %vm2137_vm0, %v4715_v10  ;;  %v795_v29 = vpack.c.bf16 %v741_v16, %v740_v40 }
 0x49a   : > { %v4960_v49 = vpack.c.bf16 %v2460_v37, %v2459_v61  ;;  %3700 = vmatmul.msk.bf16.gmra.mxu3 %vm2519_vm1, %v2472_v44  ;;  %3744 = vmatmul.msk.bf16.gmra.mxu0 %vm2519_vm1, %v795_v29 }
 0x49b   : > { %v2273_v50 = vpop.f32.mrf.mxu2 }
 0x49c   : > { %v2274_v43 = vadd.f32 %v4795_v54, %v2273_v50 }
 0x49d   : > { %v2388_v55 = vpop.f32.mrf.mxu3 }
 0x49e   : > { %v2389_v52 = vadd.f32 %v4795_v54, %v2388_v55  ;;  %v2415_v22 = vmax.f32 %v2274_v43, 0.0  ;;  %v4989_v43 = vpop.f32.mrf.mxu0 }
 0x4a0   : > { %v2461_v27 = vmax.f32 %v2389_v52, 0.0 }
 0x4a3   : > { %v2275_v38 = vpop.f32.mrf.mxu2 }
 0x4a4   : > { %v2276_v10 = vadd.f32 %v4795_v54, %v2275_v38  ;;  %v4037_v38 = vunpack.c.h.bf16 %v4162_v2 }
 0x4a5   : > { %v2390_v56 = vpop.f32.mrf.mxu3 }
 0x4a6   : > { %v2416_v6 = vmax.f32 %v2276_v10, 0.0  ;;  %v2391_v14 = vadd.f32 %v4795_v54, %v2390_v56  ;;  %v743_v56 = vmul.f32 %v4037_v38, %v3909_v53 }
 0x4a8   : > { %v2473_v35 = vpack.c.bf16 %v2416_v6, %v2415_v22  ;;  %v2462_v17 = vmax.f32 %v2391_v14, 0.0  ;;  %v4996_v6 = vpop.f32.mrf.mxu0 }
 0x4aa   : > { %v4972_v46 = vpack.c.bf16 %v2462_v17, %v2461_v27  ;;  %3701 = vmatmul.msk.bf16.gmra.mxu3 %vm2519_vm1, %v2473_v35  ;;  %v796_v35 = vpack.c.bf16 %v743_v56, %v742_v1 }
 0x4ab   : > { %v2278_v62 = vpop.f32.mrf.mxu2 }
 0x4ac   : > { %v2279_v7 = vadd.f32 %v4795_v54, %v2278_v62  ;;  %3745 = vmatmul.msk.bf16.gmra.mxu0 %vm2519_vm1, %v796_v35 }
 0x4ad   : > { %v2393_v0 = vpop.f32.mrf.mxu3 }
 0x4ae   : > { %v2394_v48 = vadd.f32 %v4795_v54, %v2393_v0  ;;  %v2417_v19 = vmax.f32 %v2279_v7, 0.0 }
 0x4b0   : > { %v2463_v58 = vmax.f32 %v2394_v48, 0.0  ;;  %v5005_v25 = vpop.f32.mrf.mxu0  ;;  %v4132_v48 = vld [vmem:[%s4860_s27 + $0x58] sm:$0xff]  }
 0x4b1   : > { %v3912_v40 = vunpack.c.l.bf16 %v4132_v48  ;;  %v3913_v16 = vunpack.c.h.bf16 %v4132_v48 }
 0x4b3   : > { %v2280_v9 = vpop.f32.mrf.mxu2 }
 0x4b4   : > { %v2281_v5 = vadd.f32 %v4795_v54, %v2280_v9 }
 0x4b5   : > { %v2395_v42 = vpop.f32.mrf.mxu3 }
 0x4b6   : > { %v2418_v59 = vmax.f32 %v2281_v5, 0.0  ;;  %v2396_v47 = vadd.f32 %v4795_v54, %v2395_v42  ;;  %v4163_v5 = vld [vmem:[%s4865_s29 + $0x58] sm:$0xff]  }
 0x4b7   : > { %v4041_v42 = vunpack.c.h.bf16 %v4163_v5 }
 0x4b8   : > { %v2474_v61 = vpack.c.bf16 %v2418_v59, %v2417_v19  ;;  %v2464_v44 = vmax.f32 %v2396_v47, 0.0 }
 0x4b9   : > { %v745_v29 = vmul.f32 %v4041_v42, %v3913_v16  ;;  %v4134_v42 = vld [vmem:[%s4860_s27 + $0x68] sm:$0xff]  }
 0x4ba   : > { %v4986_v37 = vpack.c.bf16 %v2464_v44, %v2463_v58  ;;  %3702 = vmatmul.msk.bf16.gmra.mxu3 %vm2519_vm1, %v2474_v61  ;;  %v5022_v61 = vpop.f32.mrf.mxu0 }
 0x4bb   : > { %v2283_v50 = vpop.f32.mrf.mxu2 }
 0x4bc   : > { %v2284_v30 = vadd.f32 %v4795_v54, %v2283_v50 }
 0x4bd   : > { %v2398_v55 = vpop.f32.mrf.mxu3 }
 0x4be   : > { %v2399_v10 = vadd.f32 %v4795_v54, %v2398_v55  ;;  %v2419_v14 = vmax.f32 %v2284_v30, 0.0 }
 0x4c0   : > { %v2465_v17 = vmax.f32 %v2399_v10, 0.0  ;;  %v4133_v10 = vld [vmem:[%s4860_s27 + $0x60] sm:$0xff]  }
 0x4c1   : > { %v3916_v1 = vunpack.c.l.bf16 %v4133_v10  ;;  %v3917_v56 = vunpack.c.h.bf16 %v4133_v10 }
 0x4c2   : > { %v5030_v45 = vpop.f32.mrf.mxu0 }
 0x4c3   : > { %v2285_v52 = vpop.f32.mrf.mxu2 }
 0x4c4   : > { %v2286_v20 = vadd.f32 %v4795_v54, %v2285_v52 }
 0x4c5   : > { %v2400_v22 = vpop.f32.mrf.mxu3 }
 0x4c6   : > { %v2420_v39 = vmax.f32 %v2286_v20, 0.0  ;;  %v2401_v27 = vadd.f32 %v4795_v54, %v2400_v22  ;;  %v4164_v20 = vld [vmem:[%s4865_s29 + $0x60] sm:$0xff]  }
 0x4c7   : > { %v4044_v22 = vunpack.c.l.bf16 %v4164_v20 }
 0x4c8   : > { %v2475_v62 = vpack.c.bf16 %v2420_v39, %v2419_v14  ;;  %v2466_v0 = vmax.f32 %v2401_v27, 0.0  ;;  %v4045_v14 = vunpack.c.h.bf16 %v4164_v20 }
 0x4c9   : > { %v746_v35 = vmul.f32 %v4044_v22, %v3916_v1 }
 0x4ca   : > { %v5000_v7 = vpack.c.bf16 %v2466_v0, %v2465_v17  ;;  %3703 = vmatmul.msk.bf16.gmra.mxu3 %vm2519_vm1, %v2475_v62  ;;  %v747_v17 = vmul.f32 %v4045_v14, %v3917_v56  ;;  %v4135_v14 = vld [vmem:[%s4860_s27 + $0x70] sm:$0xff]  }
 0x4cb   : > { %v2288_v23 = vpop.f32.mrf.mxu2 }
 0x4cc   : > { %v2289_v9 = vadd.f32 %v4795_v54, %v2288_v23 }
 0x4cd   : > { %v2625_v13 = vpop.f32.mrf.mxu3 }
 0x4ce   : > { %v2903_v12 = vadd.f32 %v4968_v41, %v2625_v13  ;;  %v4040_v41 = vunpack.c.l.bf16 %v4163_v5  ;;  %v2421_v44 = vmax.f32 %v2289_v9, 0.0 }
 0x4d0   : > { %v3064_v63 = vadd.f32 %v5003_v26, %v2903_v12  ;;  %v744_v47 = vmul.f32 %v4040_v41, %v3912_v40  ;;  %v798_v12 = vpack.c.bf16 %v747_v17, %v746_v35  ;;  %v3925_v35 = vunpack.c.h.bf16 %v4135_v14 }
 0x4d2   : > { %3129 = vst.msk [vmem:[%s5013_s16] sm:$0xff] %vm3128_vm2, %v3064_v63  ;;  %v797_v30 = vpack.c.bf16 %v745_v29, %v744_v47  ;;  %v3921_v47 = vunpack.c.h.bf16 %v4134_v42 }
 0x4d3   : > { %v2290_v19 = vpop.f32.mrf.mxu2 }
 0x4d4   : > { %v2291_v59 = vadd.f32 %v4795_v54, %v2290_v19  ;;  %3746 = vmatmul.msk.bf16.gmra.mxu0 %vm2519_vm1, %v797_v30  ;;  %v4165_v19 = vld [vmem:[%s4865_s29 + $0x68] sm:$0xff]  }
 0x4d5   : > { %v2627_v58 = vpop.f32.mrf.mxu3  ;;  %v4048_v29 = vunpack.c.l.bf16 %v4165_v19 }
 0x4d6   : > { %v2422_v50 = vmax.f32 %v2291_v59, 0.0  ;;  %v2905_v55 = vadd.f32 %v4975_v18, %v2627_v58  ;;  %v3920_v59 = vunpack.c.l.bf16 %v4134_v42  ;;  %v4049_v58 = vunpack.c.h.bf16 %v4165_v19 }
 0x4d8   : > { %v2476_v60 = vpack.c.bf16 %v2422_v50, %v2421_v44  ;;  %v3065_v2 = vadd.f32 %v5003_v26, %v2905_v55  ;;  %v748_v55 = vmul.f32 %v4048_v29, %v3920_v59  ;;  %v749_v30 = vmul.f32 %v4049_v58, %v3921_v47  ;;  %v4136_v58 = vld [vmem:[%s4860_s27 + $0x78] sm:$0xff]  }
 0x4da   : > { %3130 = vst.msk [vmem:[%s5013_s16 + $0x8] sm:$0xff] %vm3128_vm2, %v3065_v2  ;;  %3704 = vmatmul.msk.bf16.gmra.mxu3 %vm2519_vm1, %v2476_v60 }
 0x4db   : > { %v2293_v51 = vpop.f32.mrf.mxu2 }
 0x4dc   : > { %v2294_v18 = vadd.f32 %v4795_v54, %v2293_v51 }
 0x4dd   : > { %v2630_v53 = vpop.f32.mrf.mxu3 }
 0x4de   : > { %v2908_v38 = vadd.f32 %v4982_v57, %v2630_v53  ;;  %v5040_v57 = vpop.f32.mrf.mxu0  ;;  %v2423_v0 = vmax.f32 %v2294_v18, 0.0 }
 0x4e0   : > { %v3066_v52 = vadd.f32 %v5003_v26, %v2908_v38  ;;  %v799_v38 = vpack.c.bf16 %v749_v30, %v748_v55  ;;  %v3929_v55 = vunpack.c.h.bf16 %v4136_v58 }
 0x4e2   : > { %3131 = vst.msk [vmem:[%s5013_s16 + $0x10] sm:$0xff] %vm3128_vm2, %v3066_v52 }
 0x4e3   : > { %v2295_v39 = vpop.f32.mrf.mxu2 }
 0x4e4   : > { %v2296_v27 = vadd.f32 %v4795_v54, %v2295_v39  ;;  %3747 = vmatmul.msk.bf16.gmra.mxu0 %vm2519_vm1, %v798_v12  ;;  %v4166_v39 = vld [vmem:[%s4865_s29 + $0x70] sm:$0xff]  }
 0x4e5   : > { %v2632_v62 = vpop.f32.mrf.mxu3  ;;  %v4052_v17 = vunpack.c.l.bf16 %v4166_v39 }
 0x4e6   : > { %v2424_v23 = vmax.f32 %v2296_v27, 0.0  ;;  %v2910_v13 = vadd.f32 %v4989_v43, %v2632_v62  ;;  %v5048_v40 = vpop.f32.mrf.mxu0  ;;  %v3924_v27 = vunpack.c.l.bf16 %v4135_v14  ;;  %v4053_v62 = vunpack.c.h.bf16 %v4166_v39 }
 0x4e8   : > { %v2477_v63 = vpack.c.bf16 %v2424_v23, %v2423_v0  ;;  %v3067_v9 = vadd.f32 %v5003_v26, %v2910_v13  ;;  %v750_v13 = vmul.f32 %v4052_v17, %v3924_v27  ;;  %v751_v12 = vmul.f32 %v4053_v62, %v3925_v35 }
 0x4ea   : > { %3132 = vst.msk [vmem:[%s5013_s16 + $0x18] sm:$0xff] %vm3128_vm2, %v3067_v9  ;;  %3705 = vmatmul.msk.bf16.gmra.mxu3 %vm2519_vm1, %v2477_v63 }
 0x4eb   : > { %v2298_v48 = vpop.f32.mrf.mxu2 }
 0x4ec   : > { %v2299_v43 = vadd.f32 %v4795_v54, %v2298_v48 }
 0x4ed   : > { %v2635_v5 = vpop.f32.mrf.mxu3 }
 0x4ee   : > { %v2913_v16 = vadd.f32 %v4996_v6, %v2635_v5  ;;  %v5058_v6 = vpop.f32.mrf.mxu0  ;;  %v2425_v2 = vmax.f32 %v2299_v43, 0.0 }
 0x4f0   : > { %v3068_v41 = vadd.f32 %v5003_v26, %v2913_v16  ;;  %v800_v16 = vpack.c.bf16 %v751_v12, %v750_v13 }
 0x4f2   : > { %3133 = vst.msk [vmem:[%s5013_s16 + $0x20] sm:$0xff] %vm3128_vm2, %v3068_v41 }
 0x4f3   : > { %v2300_v44 = vpop.f32.mrf.mxu2 }
 0x4f4   : > { %v2301_v50 = vadd.f32 %v4795_v54, %v2300_v44  ;;  %3748 = vmatmul.msk.bf16.gmra.mxu0 %vm2519_vm1, %v799_v38  ;;  %v4167_v44 = vld [vmem:[%s4865_s29 + $0x78] sm:$0xff]  }
 0x4f5   : > { %v2637_v60 = vpop.f32.mrf.mxu3  ;;  %v4056_v30 = vunpack.c.l.bf16 %v4167_v44 }
 0x4f6   : > { %v2426_v51 = vmax.f32 %v2301_v50, 0.0  ;;  %v2915_v53 = vadd.f32 %v5005_v25, %v2637_v60  ;;  %v5066_v1 = vpop.f32.mrf.mxu0  ;;  %v3928_v50 = vunpack.c.l.bf16 %v4136_v58  ;;  %v4057_v60 = vunpack.c.h.bf16 %v4167_v44 }
 0x4f8   : > { %v2478_v52 = vpack.c.bf16 %v2426_v51, %v2425_v2  ;;  %v3069_v18 = vadd.f32 %v5003_v26, %v2915_v53  ;;  %v4209_v51 = vld [vmem:[%s5362_s8] ss:$0 sm:$0xff]  ;;  %v753_v38 = vmul.f32 %v4057_v60, %v3929_v55  ;;  %v4169_v60 = vld [vmem:[%s4865_s29 + $0x88] sm:$0xff]  }
 0x4fa   : > { %3134 = vst.msk [vmem:[%s5013_s16 + $0x28] sm:$0xff] %vm3128_vm2, %v3069_v18  ;;  %3706 = vmatmul.msk.bf16.gmra.mxu3 %vm2519_vm1, %v2478_v52 }
 0x4fb   : > { %v2303_v10 = vpop.f32.mrf.mxu2 }
 0x4fc   : > { %v2304_v25 = vadd.f32 %v4795_v54, %v2303_v10 }
 0x4fd   : > { %v2640_v20 = vpop.f32.mrf.mxu3 }
 0x4fe   : > { %v2918_v56 = vadd.f32 %v5022_v61, %v2640_v20  ;;  %v5076_v61 = vpop.f32.mrf.mxu0  ;;  %v2427_v9 = vmax.f32 %v2304_v25, 0.0 }
 0x500   : > { %v3070_v22 = vadd.f32 %v5003_v26, %v2918_v56 }
 0x502   : > { %3135 = vst.msk [vmem:[%s5013_s16 + $0x30] sm:$0xff] %vm3128_vm2, %v3070_v22 }
 0x503   : > { %v2305_v0 = vpop.f32.mrf.mxu2 }
 0x504   : > { %v2306_v23 = vadd.f32 %v4795_v54, %v2305_v0  ;;  %3749 = vmatmul.msk.bf16.gmra.mxu0 %vm2519_vm1, %v800_v16  ;;  %v4137_v0 = vld [vmem:[%s4860_s27 + $0x80] sm:$0xff]  }
 0x505   : > { %v2642_v63 = vpop.f32.mrf.mxu3  ;;  %v3933_v13 = vunpack.c.h.bf16 %v4137_v0 }
 0x506   : > { %v2428_v48 = vmax.f32 %v2306_v23, 0.0  ;;  %v2920_v5 = vadd.f32 %v5030_v45, %v2642_v63  ;;  %v5084_v59 = vpop.f32.mrf.mxu0  ;;  %v3932_v23 = vunpack.c.l.bf16 %v4137_v0 }
 0x508   : > { %v2479_v41 = vpack.c.bf16 %v2428_v48, %v2427_v9  ;;  %v3071_v43 = vadd.f32 %v5003_v26, %v2920_v5 }
 0x50a   : > { %3136 = vst.msk [vmem:[%s5013_s16 + $0x38] sm:$0xff] %vm3128_vm2, %v3071_v43  ;;  %3707 = vmatmul.msk.bf16.gmra.mxu3 %vm2519_vm1, %v2479_v41 }
 0x50b   : > { %v2308_v42 = vpop.f32.mrf.mxu2 }
 0x50c   : > { %v2309_v45 = vadd.f32 %v4795_v54, %v2308_v42 }
 0x50d   : > { %v2645_v19 = vpop.f32.mrf.mxu3 }
 0x50e   : > { %v2923_v47 = vadd.f32 %v5040_v57, %v2645_v19  ;;  %v752_v57 = vmul.f32 %v4056_v30, %v3928_v50  ;;  %v2937_v18 = vpop.f32.mrf.mxu0  ;;  %v2429_v54 = vmax.f32 %v2309_v45, 0.0  ;;  %v4138_v30 = vld [vmem:[%s4860_s27 + $0x88] sm:$0xff]  }
 0x510   : > { %v3072_v29 = vadd.f32 %v5003_v26, %v2923_v47  ;;  %v801_v56 = vpack.c.bf16 %v753_v38, %v752_v57 }
 0x512   : > { %3137 = vst.msk [vmem:[%s5013_s16 + $0x40] sm:$0xff] %vm3128_vm2, %v3072_v29 }
 0x513   : > { %v2310_v2 = vpop.f32.mrf.mxu2 }
 0x514   : > { %v2311_v53 = vadd.f32 %v4209_v51, %v2310_v2  ;;  %3750 = vmatmul.msk.bf16.gmra.mxu0 %vm2519_vm1, %v801_v56  ;;  %v3937_v2 = vunpack.c.h.bf16 %v4138_v30 }
 0x515   : > { %v2647_v52 = vpop.f32.mrf.mxu3 }
 0x516   : > { %v2430_v10 = vmax.f32 %v2311_v53, 0.0  ;;  %v2925_v20 = vadd.f32 %v5048_v40, %v2647_v52  ;;  %v2939_v27 = vpop.f32.mrf.mxu0  ;;  %v4168_v40 = vld [vmem:[%s4865_s29 + $0x80] sm:$0xff]   ;;  %v4065_v53 = vunpack.c.h.bf16 %v4169_v60 }
 0x517   : > { %v4060_v12 = vunpack.c.l.bf16 %v4168_v40  ;;  %v4061_v63 = vunpack.c.h.bf16 %v4168_v40 }
 0x518   : > { %v2480_v22 = vpack.c.bf16 %v2430_v10, %v2429_v54  ;;  %v3073_v25 = vadd.f32 %v5003_v26, %v2925_v20  ;;  %v757_v38 = vmul.f32 %v4065_v53, %v3937_v2  ;;  %v4172_v53 = vld [vmem:[%s4865_s29 + $0xa0] sm:$0xff]  }
 0x519   : > { %v754_v5 = vmul.f32 %v4060_v12, %v3932_v23  ;;  %v755_v16 = vmul.f32 %v4061_v63, %v3933_v13 }
 0x51a   : > { %3138 = vst.msk [vmem:[%s5013_s16 + $0x48] sm:$0xff] %vm3128_vm2, %v3073_v25  ;;  %3708 = vmatmul.msk.bf16.gmra.mxu3 %vm2519_vm1, %v2480_v22 }
 0x51b   : > { %v2313_v14 = vpop.f32.mrf.mxu2  ;;  %v802_v47 = vpack.c.bf16 %v755_v16, %v754_v5 }
 0x51c   : > { %v2314_v62 = vadd.f32 %v4209_v51, %v2313_v14 }
 0x51d   : > { %v2650_v39 = vpop.f32.mrf.mxu3 }
 0x51e   : > { %v2928_v35 = vadd.f32 %v5058_v6, %v2650_v39  ;;  %v2942_v6 = vpop.f32.mrf.mxu0  ;;  %v2431_v43 = vmax.f32 %v2314_v62, 0.0  ;;  %v4139_v39 = vld [vmem:[%s4860_s27 + $0x90] sm:$0xff]  }
 0x520   : > { %v3074_v17 = vadd.f32 %v5003_v26, %v2928_v35  ;;  %v4170_v35 = vld [vmem:[%s4865_s29 + $0x90] sm:$0xff]  }
 0x521   : > { %v4068_v62 = vunpack.c.l.bf16 %v4170_v35  ;;  %v4069_v0 = vunpack.c.h.bf16 %v4170_v35 }
 0x522   : > { %3139 = vst.msk [vmem:[%s5013_s16 + $0x50] sm:$0xff] %vm3128_vm2, %v3074_v17  ;;  %v3941_v17 = vunpack.c.h.bf16 %v4139_v39 }
 0x523   : > { %v2315_v9 = vpop.f32.mrf.mxu2 }
 0x524   : > { %v2316_v48 = vadd.f32 %v4209_v51, %v2315_v9  ;;  %3751 = vmatmul.msk.bf16.gmra.mxu0 %vm2519_vm1, %v802_v47  ;;  %v4064_v51 = vunpack.c.l.bf16 %v4169_v60  ;;  %v759_v23 = vmul.f32 %v4069_v0, %v3941_v17  ;;  %v4142_v17 = vld [vmem:[%s4860_s27 + $0xa8] sm:$0xff]  }
 0x525   : > { %v2652_v41 = vpop.f32.mrf.mxu3  ;;  %v3953_v0 = vunpack.c.h.bf16 %v4142_v17 }
 0x526   : > { %v2432_v42 = vmax.f32 %v2316_v48, 0.0  ;;  %v2930_v19 = vadd.f32 %v5066_v1, %v2652_v41  ;;  %v2944_v44 = vpop.f32.mrf.mxu0  ;;  %v3936_v1 = vunpack.c.l.bf16 %v4138_v30  ;;  %v4140_v41 = vld [vmem:[%s4860_s27 + $0x98] sm:$0xff]  }
 0x528   : > { %v2481_v29 = vpack.c.bf16 %v2432_v42, %v2431_v43  ;;  %v3075_v45 = vadd.f32 %v5003_v26, %v2930_v19  ;;  %v756_v57 = vmul.f32 %v4064_v51, %v3936_v1  ;;  %v4171_v43 = vld [vmem:[%s4865_s29 + $0x98] sm:$0xff]   ;;  %v3945_v42 = vunpack.c.h.bf16 %v4140_v41  ;;  %v4141_v51 = vld [vmem:[%s4860_s27 + $0xa0] sm:$0xff]  }
 0x529   : > { %v4072_v19 = vunpack.c.l.bf16 %v4171_v43  ;;  %v4073_v47 = vunpack.c.h.bf16 %v4171_v43 }
 0x52a   : > { %3140 = vst.msk [vmem:[%s5013_s16 + $0x58] sm:$0xff] %vm3128_vm2, %v3075_v45  ;;  %3709 = vmatmul.msk.bf16.gmra.mxu3 %vm2519_vm1, %v2481_v29  ;;  %v803_v10 = vpack.c.bf16 %v757_v38, %v756_v57  ;;  %v3949_v57 = vunpack.c.h.bf16 %v4141_v51  ;;  %v4076_v38 = vunpack.c.l.bf16 %v4172_v53 }
 0x52b   : > { %v761_v45 = vmul.f32 %v4073_v47, %v3945_v42  ;;  %v4174_v42 = vld [vmem:[%s4865_s29 + $0xb0] sm:$0xff]  }
 0x52c   : > { %v4084_v47 = vunpack.c.l.bf16 %v4174_v42 }
 0x52d   : > { %v2655_v58 = vpop.f32.mrf.mxu3 }
 0x52e   : > { %v2933_v50 = vadd.f32 %v5076_v61, %v2655_v58  ;;  %v2947_v54 = vpop.f32.mrf.mxu0 }
 0x530   : > { %v3076_v55 = vadd.f32 %v5003_v26, %v2933_v50 }
 0x532   : > { %3141 = vst.msk [vmem:[%s5013_s16 + $0x60] sm:$0xff] %vm3128_vm2, %v3076_v55 }
 0x534   : > { %3752 = vmatmul.msk.bf16.gmra.mxu0 %vm2519_vm1, %v803_v10 }
 0x535   : > { %v2657_v52 = vpop.f32.mrf.mxu3 }
 0x536   : > { %v2935_v61 = vadd.f32 %v5084_v59, %v2657_v52  ;;  %v2949_v22 = vpop.f32.mrf.mxu0  ;;  %v3940_v59 = vunpack.c.l.bf16 %v4139_v39  ;;  %v4077_v52 = vunpack.c.h.bf16 %v4172_v53  ;;  %v4144_v53 = vld [vmem:[%s4860_s27 + $0xb8] sm:$0xff]  }
 0x538   : > { %v3077_v20 = vadd.f32 %v5003_v26, %v2935_v61  ;;  %v758_v40 = vmul.f32 %v4068_v62, %v3940_v59  ;;  %v763_v10 = vmul.f32 %v4077_v52, %v3949_v57  ;;  %v4173_v62 = vld [vmem:[%s4865_s29 + $0xa8] sm:$0xff]   ;;  %v3961_v57 = vunpack.c.h.bf16 %v4144_v53 }
 0x53a   : > { %3142 = vst.msk [vmem:[%s5013_s16 + $0x68] sm:$0xff] %vm3128_vm2, %v3077_v20  ;;  %3710 = vmatmul.msk.bf16.gmra.mxu3 %vm2519_vm1, %v4803_v15 }
 0x53d   : > { %v2660_v56 = vpop.f32.mrf.mxu3 }
 0x53e   : > { %v2938_v25 = vadd.f32 %v2937_v18, %v2660_v56  ;;  %v2952_v13 = vpop.f32.mrf.mxu0  ;;  %v804_v18 = vpack.c.bf16 %v759_v23, %v758_v40  ;;  %v4080_v40 = vunpack.c.l.bf16 %v4173_v62  ;;  %v4081_v23 = vunpack.c.h.bf16 %v4173_v62  ;;  %v4176_v62 = vld [vmem:[%s4865_s29 + $0xc0] sm:$0xff]  }
 0x540   : > { %v3078_v14 = vadd.f32 %v5003_v26, %v2938_v25 }
 0x542   : > { %3143 = vst.msk [vmem:[%s5013_s16 + $0x70] sm:$0xff] %vm3128_vm2, %v3078_v14 }
 0x544   : > { %3753 = vmatmul.msk.bf16.gmra.mxu0 %vm2519_vm1, %v804_v18 }
 0x545   : > { %v2662_v15 = vpop.f32.mrf.mxu3 }
 0x546   : > { %v2940_v12 = vadd.f32 %v2939_v27, %v2662_v15  ;;  %v2954_v48 = vpop.f32.mrf.mxu0  ;;  %v3944_v27 = vunpack.c.l.bf16 %v4140_v41 }
 0x548   : > { %v3079_v63 = vadd.f32 %v5003_v26, %v2940_v12  ;;  %v760_v29 = vmul.f32 %v4072_v19, %v3944_v27  ;;  %v765_v12 = vmul.f32 %v4081_v23, %v3953_v0  ;;  %v4143_v27 = vld [vmem:[%s4860_s27 + $0xb0] sm:$0xff]   ;;  %v4092_v0 = vunpack.c.l.bf16 %v4176_v62 }
 0x549   : > { %v3957_v19 = vunpack.c.h.bf16 %v4143_v27 }
 0x54a   : > { %3144 = vst.msk [vmem:[%s5013_s16 + $0x78] sm:$0xff] %vm3128_vm2, %v3079_v63  ;;  %3711 = vmatmul.msk.bf16.gmra.mxu3 %vm2519_vm1, %v4812_v34 }
 0x54d   : > { %v2665_v9 = vpop.f32.mrf.mxu3 }
 0x54e   : > { %v2943_v5 = vadd.f32 %v2942_v6, %v2665_v9  ;;  %v805_v6 = vpack.c.bf16 %v761_v45, %v760_v29  ;;  %v4085_v29 = vunpack.c.h.bf16 %v4174_v42 }
 0x550   : > { %v3080_v16 = vadd.f32 %v5003_v26, %v2943_v5 }
 0x551   : > { %v2957_v58 = vpop.f32.mrf.mxu0 }
 0x552   : > { %3145 = vst.msk [vmem:[%s5013_s16 + $0x80] sm:$0xff] %vm3128_vm2, %v3080_v16 }
 0x554   : > { %3754 = vmatmul.msk.bf16.gmra.mxu0 %vm2519_vm1, %v805_v6 }
 0x555   : > { %v2667_v34 = vpop.f32.mrf.mxu3 }
 0x556   : > { %v2945_v50 = vadd.f32 %v2944_v44, %v2667_v34  ;;  %v3948_v44 = vunpack.c.l.bf16 %v4141_v51  ;;  %v767_v34 = vmul.f32 %v4085_v29, %v3957_v19 }
 0x558   : > { %v3081_v55 = vadd.f32 %v5003_v26, %v2945_v50  ;;  %v762_v61 = vmul.f32 %v4076_v38, %v3948_v44  ;;  %v4175_v44 = vld [vmem:[%s4865_s29 + $0xb8] sm:$0xff]  }
 0x559   : > { %v2959_v60 = vpop.f32.mrf.mxu0  ;;  %v4088_v38 = vunpack.c.l.bf16 %v4175_v44  ;;  %v4089_v52 = vunpack.c.h.bf16 %v4175_v44 }
 0x55a   : > { %3146 = vst.msk [vmem:[%s5013_s16 + $0x88] sm:$0xff] %vm3128_vm2, %v3081_v55  ;;  %3712 = vmatmul.msk.bf16.gmra.mxu3 %vm2519_vm1, %v4826_v11 }
 0x55d   : > { %v2670_v30 = vpop.f32.mrf.mxu3 }
 0x55e   : > { %v2948_v1 = vadd.f32 %v2947_v54, %v2670_v30  ;;  %v806_v54 = vpack.c.bf16 %v763_v10, %v762_v61  ;;  %v769_v10 = vmul.f32 %v4089_v52, %v3961_v57 }
 0x560   : > { %v3082_v2 = vadd.f32 %v5003_v26, %v2948_v1 }
 0x561   : > { %v2962_v20 = vpop.f32.mrf.mxu0 }
 0x562   : > { %3147 = vst.msk [vmem:[%s5013_s16 + $0x90] sm:$0xff] %vm3128_vm2, %v3082_v2 }
 0x564   : > { %3755 = vmatmul.msk.bf16.gmra.mxu0 %vm2519_vm1, %v806_v54 }
 0x565   : > { %v2672_v11 = vpop.f32.mrf.mxu3 }
 0x566   : > { %v2950_v56 = vadd.f32 %v2949_v22, %v2672_v11  ;;  %v3952_v22 = vunpack.c.l.bf16 %v4142_v17  ;;  %v4145_v17 = vld [vmem:[%s4860_s27 + $0xc0] sm:$0xff]  }
 0x568   : > { %v3083_v25 = vadd.f32 %v5003_v26, %v2950_v56  ;;  %v764_v15 = vmul.f32 %v4080_v40, %v3952_v22  ;;  %v3965_v22 = vunpack.c.h.bf16 %v4145_v17  ;;  %v4093_v40 = vunpack.c.h.bf16 %v4176_v62 }
 0x569   : > { %v2964_v39 = vpop.f32.mrf.mxu0 }
 0x56a   : > { %3148 = vst.msk [vmem:[%s5013_s16 + $0x98] sm:$0xff] %vm3128_vm2, %v3083_v25  ;;  %3713 = vmatmul.msk.bf16.gmra.mxu3 %vm2519_vm1, %v4835_v31 }
 0x56d   : > { %v2675_v14 = vpop.f32.mrf.mxu3 }
 0x56e   : > { %v2953_v35 = vadd.f32 %v2952_v13, %v2675_v14  ;;  %v807_v13 = vpack.c.bf16 %v765_v12, %v764_v15  ;;  %v771_v15 = vmul.f32 %v4093_v40, %v3965_v22 }
 0x570   : > { %v3084_v59 = vadd.f32 %v5003_v26, %v2953_v35 }
 0x571   : > { %v2967_v18 = vpop.f32.mrf.mxu0 }
 0x572   : > { %3149 = vst.msk [vmem:[%s5013_s16 + $0xa0] sm:$0xff] %vm3128_vm2, %v3084_v59 }
 0x574   : > { %3756 = vmatmul.msk.bf16.gmra.mxu0 %vm2519_vm1, %v807_v13 }
 0x575   : > { %v2677_v31 = vpop.f32.mrf.mxu3 }
 0x576   : > { %v2955_v63 = vadd.f32 %v2954_v48, %v2677_v31  ;;  %v3956_v48 = vunpack.c.l.bf16 %v4143_v27  ;;  %v4177_v27 = vld [vmem:[%s4865_s29 + $0xc8] sm:$0xff]  }
 0x577   : > { %v4097_v19 = vunpack.c.h.bf16 %v4177_v27 }
 0x578   : > { %v3085_v9 = vadd.f32 %v5003_v26, %v2955_v63  ;;  %v766_v45 = vmul.f32 %v4084_v47, %v3956_v48  ;;  %v4096_v48 = vunpack.c.l.bf16 %v4177_v27 }
 0x579   : > { %v2969_v16 = vpop.f32.mrf.mxu0 }
 0x57a   : > { %3150 = vst.msk [vmem:[%s5013_s16 + $0xa8] sm:$0xff] %vm3128_vm2, %v3085_v9  ;;  %3714 = vmatmul.msk.bf16.gmra.mxu3 %vm2519_vm1, %v4844_v8 }
 0x57d   : > { %v2680_v5 = vpop.f32.mrf.mxu3 }
 0x57e   : > { %v2958_v41 = vadd.f32 %v2957_v58, %v2680_v5  ;;  %v808_v58 = vpack.c.bf16 %v767_v34, %v766_v45 }
 0x580   : > { %v3086_v43 = vadd.f32 %v5003_v26, %v2958_v41 }
 0x581   : > { %v2972_v50 = vpop.f32.mrf.mxu0 }
 0x582   : > { %3151 = vst.msk [vmem:[%s5013_s16 + $0xb0] sm:$0xff] %vm3128_vm2, %v3086_v43  ;;  %v4146_v43 = vld [vmem:[%s4860_s27 + $0xc8] sm:$0xff]  }
 0x583   : > { %v3969_v42 = vunpack.c.h.bf16 %v4146_v43 }
 0x584   : > { %3757 = vmatmul.msk.bf16.gmra.mxu0 %vm2519_vm1, %v808_v58 }
 0x585   : > { %v2682_v8 = vpop.f32.mrf.mxu3  ;;  %v773_v29 = vmul.f32 %v4097_v19, %v3969_v42 }
 0x586   : > { %v2960_v6 = vadd.f32 %v2959_v60, %v2682_v8  ;;  %v3960_v60 = vunpack.c.l.bf16 %v4144_v53 }
 0x588   : > { %v3087_v55 = vadd.f32 %v5003_v26, %v2960_v6  ;;  %v768_v61 = vmul.f32 %v4088_v38, %v3960_v60 }
 0x589   : > { %v2974_v1 = vpop.f32.mrf.mxu0 }
 0x58a   : > { %3152 = vst.msk [vmem:[%s5013_s16 + $0xb8] sm:$0xff] %vm3128_vm2, %v3087_v55  ;;  %3715 = vmatmul.msk.bf16.gmra.mxu3 %vm2519_vm1, %v4853_v24 }
 0x58d   : > { %v2685_v30 = vpop.f32.mrf.mxu3 }
 0x58e   : > { %v2963_v2 = vadd.f32 %v2962_v20, %v2685_v30  ;;  %v809_v20 = vpack.c.bf16 %v769_v10, %v768_v61 }
 0x590   : > { %v3088_v51 = vadd.f32 %v5003_v26, %v2963_v2  ;;  %v4147_v2 = vld [vmem:[%s4860_s27 + $0xd0] sm:$0xff]  }
 0x591   : > { %v2977_v11 = vpop.f32.mrf.mxu0  ;;  %v3973_v53 = vunpack.c.h.bf16 %v4147_v2 }
 0x592   : > { %3153 = vst.msk [vmem:[%s5013_s16 + $0xc0] sm:$0xff] %vm3128_vm2, %v3088_v51  ;;  %v4178_v51 = vld [vmem:[%s4865_s29 + $0xd0] sm:$0xff]  }
 0x593   : > { %v4100_v44 = vunpack.c.l.bf16 %v4178_v51  ;;  %v4101_v60 = vunpack.c.h.bf16 %v4178_v51 }
 0x594   : > { %3758 = vmatmul.msk.bf16.gmra.mxu0 %vm2519_vm1, %v809_v20 }
 0x595   : > { %v2687_v24 = vpop.f32.mrf.mxu3  ;;  %v775_v38 = vmul.f32 %v4101_v60, %v3973_v53 }
 0x596   : > { %v2965_v56 = vadd.f32 %v2964_v39, %v2687_v24  ;;  %v3964_v39 = vunpack.c.l.bf16 %v4145_v17 }
 0x598   : > { %v3089_v54 = vadd.f32 %v5003_v26, %v2965_v56  ;;  %v770_v23 = vmul.f32 %v4092_v0, %v3964_v39 }
 0x599   : > { %v2979_v14 = vpop.f32.mrf.mxu0 }
 0x59a   : > { %3154 = vst.msk [vmem:[%s5013_s16 + $0xc8] sm:$0xff] %vm3128_vm2, %v3089_v54  ;;  %3716 = vmatmul.msk.bf16.gmra.mxu3 %vm2519_vm1, %v4876_v32 }
 0x59d   : > { %v2690_v25 = vpop.f32.mrf.mxu3 }
 0x59e   : > { %v2968_v35 = vadd.f32 %v2967_v18, %v2690_v25  ;;  %v810_v18 = vpack.c.bf16 %v771_v15, %v770_v23  ;;  %v4148_v25 = vld [vmem:[%s4860_s27 + $0xd8] sm:$0xff]  }
 0x5a0   : > { %v3090_v59 = vadd.f32 %v5003_v26, %v2968_v35  ;;  %v4179_v35 = vld [vmem:[%s4865_s29 + $0xd8] sm:$0xff]  }
 0x5a1   : > { %v2982_v12 = vpop.f32.mrf.mxu0  ;;  %v4104_v17 = vunpack.c.l.bf16 %v4179_v35  ;;  %v4105_v62 = vunpack.c.h.bf16 %v4179_v35 }
 0x5a2   : > { %3155 = vst.msk [vmem:[%s5013_s16 + $0xd0] sm:$0xff] %vm3128_vm2, %v3090_v59  ;;  %v3977_v59 = vunpack.c.h.bf16 %v4148_v25 }
 0x5a4   : > { %3759 = vmatmul.msk.bf16.gmra.mxu0 %vm2519_vm1, %v810_v18  ;;  %v777_v22 = vmul.f32 %v4105_v62, %v3977_v59 }
 0x5a5   : > { %v2692_v32 = vpop.f32.mrf.mxu3 }
 0x5a6   : > { %v2970_v31 = vadd.f32 %v2969_v16, %v2692_v32  ;;  %v3968_v16 = vunpack.c.l.bf16 %v4146_v43 }
 0x5a8   : > { %v3091_v63 = vadd.f32 %v5003_v26, %v2970_v31  ;;  %v772_v47 = vmul.f32 %v4096_v48, %v3968_v16 }
 0x5a9   : > { %v2984_v9 = vpop.f32.mrf.mxu0 }
 0x5aa   : > { %3156 = vst.msk [vmem:[%s5013_s16 + $0xd8] sm:$0xff] %vm3128_vm2, %v3091_v63  ;;  %3717 = vmatmul.msk.bf16.gmra.mxu3 %vm2519_vm1, %v4888_v36  ;;  %v811_v8 = vpack.c.bf16 %v773_v29, %v772_v47  ;;  %v4149_v63 = vld [vmem:[%s4860_s27 + $0xe0] sm:$0xff]  }
 0x5ad   : > { %v2695_v13 = vpop.f32.mrf.mxu3 }
 0x5ae   : > { %v2973_v5 = vadd.f32 %v2972_v50, %v2695_v13  ;;  %v4180_v13 = vld [vmem:[%s4865_s29 + $0xe0] sm:$0xff]  }
 0x5af   : > { %v4109_v43 = vunpack.c.h.bf16 %v4180_v13 }
 0x5b0   : > { %v3092_v41 = vadd.f32 %v5003_v26, %v2973_v5  ;;  %v3981_v5 = vunpack.c.h.bf16 %v4149_v63 }
 0x5b1   : > { %v2987_v45 = vpop.f32.mrf.mxu0 }
 0x5b2   : > { %3157 = vst.msk [vmem:[%s5013_s16 + $0xe0] sm:$0xff] %vm3128_vm2, %v3092_v41  ;;  %v4108_v41 = vunpack.c.l.bf16 %v4180_v13  ;;  %v779_v16 = vmul.f32 %v4109_v43, %v3981_v5 }
 0x5b4   : > { %3760 = vmatmul.msk.bf16.gmra.mxu0 %vm2519_vm1, %v811_v8  ;;  %v4150_v8 = vld [vmem:[%s4860_s27 + $0xe8] sm:$0xff]  }
 0x5b5   : > { %v2697_v36 = vpop.f32.mrf.mxu3 }
 0x5b6   : > { %v2975_v34 = vadd.f32 %v2974_v1, %v2697_v36  ;;  %v3972_v1 = vunpack.c.l.bf16 %v4147_v2 }
 0x5b8   : > { %v3093_v50 = vadd.f32 %v5003_v26, %v2975_v34  ;;  %v774_v57 = vmul.f32 %v4100_v44, %v3972_v1 }
 0x5b9   : > { %v2989_v58 = vpop.f32.mrf.mxu0 }
 0x5ba   : > { %3158 = vst.msk [vmem:[%s5013_s16 + $0xe8] sm:$0xff] %vm3128_vm2, %v3093_v50  ;;  %3718 = vmatmul.msk.bf16.gmra.mxu3 %vm2519_vm1, %v4900_v28  ;;  %v812_v10 = vpack.c.bf16 %v775_v38, %v774_v57  ;;  %v4181_v50 = vld [vmem:[%s4865_s29 + $0xe8] sm:$0xff]  }
 0x5bd   : > { %v2700_v6 = vpop.f32.mrf.mxu3 }
 0x5be   : > { %v2978_v55 = vadd.f32 %v2977_v11, %v2700_v6  ;;  %v3984_v6 = vunpack.c.l.bf16 %v4150_v8 }
 0x5c0   : > { %v3094_v30 = vadd.f32 %v5003_v26, %v2978_v55  ;;  %v4112_v55 = vunpack.c.l.bf16 %v4181_v50 }
 0x5c1   : > { %v2992_v52 = vpop.f32.mrf.mxu0 }
 0x5c2   : > { %3159 = vst.msk [vmem:[%s5013_s16 + $0xf0] sm:$0xff] %vm3128_vm2, %v3094_v30  ;;  %v4113_v30 = vunpack.c.h.bf16 %v4181_v50  ;;  %v780_v2 = vmul.f32 %v4112_v55, %v3984_v6 }
 0x5c4   : > { %3761 = vmatmul.msk.bf16.gmra.mxu0 %vm2519_vm1, %v812_v10  ;;  %v4182_v10 = vld [vmem:[%s4865_s29 + $0xf0] sm:$0xff]  }
 0x5c5   : > { %v2702_v28 = vpop.f32.mrf.mxu3 }
 0x5c6   : > { %v2980_v61 = vadd.f32 %v2979_v14, %v2702_v28  ;;  %v3976_v14 = vunpack.c.l.bf16 %v4148_v25 }
 0x5c8   : > { %v3095_v24 = vadd.f32 %v5003_v26, %v2980_v61  ;;  %v776_v39 = vmul.f32 %v4104_v17, %v3976_v14  ;;  %v4151_v61 = vld [vmem:[%s4860_s27 + $0xf0] sm:$0xff]  }
 0x5c9   : > { %v2994_v56 = vpop.f32.mrf.mxu0 }
 0x5ca   : > { %3160 = vst.msk [vmem:[%s5013_s16 + $0xf8] sm:$0xff] %vm3128_vm2, %v3095_v24  ;;  %3719 = vmatmul.msk.bf16.gmra.mxu3 %vm2519_vm1, %v4912_v33  ;;  %v813_v23 = vpack.c.bf16 %v777_v22, %v776_v39  ;;  %v3988_v24 = vunpack.c.l.bf16 %v4151_v61 }
 0x5cd   : > { %v2705_v11 = vpop.f32.mrf.mxu3 }
 0x5ce   : > { %v2983_v20 = vadd.f32 %v2982_v12, %v2705_v11  ;;  %v3989_v11 = vunpack.c.h.bf16 %v4151_v61 }
 0x5d0   : > { %v3096_v54 = vadd.f32 %v5003_v26, %v2983_v20  ;;  %v4117_v20 = vunpack.c.h.bf16 %v4182_v10 }
 0x5d1   : > { %v2997_v0 = vpop.f32.mrf.mxu0 }
 0x5d2   : > { %3161 = vst.msk [vmem:[%s5013_s16 + $0x100] sm:$0xff] %vm3128_vm2, %v3096_v54  ;;  %v783_v25 = vmul.f32 %v4117_v20, %v3989_v11 }
 0x5d4   : > { %3762 = vmatmul.msk.bf16.gmra.mxu0 %vm2519_vm1, %v813_v23 }
 0x5d5   : > { %v2707_v33 = vpop.f32.mrf.mxu3 }
 0x5d6   : > { %v2985_v40 = vadd.f32 %v2984_v9, %v2707_v33  ;;  %v3980_v9 = vunpack.c.l.bf16 %v4149_v63 }
 0x5d8   : > { %v3097_v15 = vadd.f32 %v5003_v26, %v2985_v40  ;;  %v778_v27 = vmul.f32 %v4108_v41, %v3980_v9  ;;  %v4183_v40 = vld [vmem:[%s4865_s29 + $0xf8] sm:$0xff]  }
 0x5d9   : > { %v2999_v12 = vpop.f32.mrf.mxu0 }
 0x5da   : > { %3162 = vst.msk [vmem:[%s5013_s16 + $0x108] sm:$0xff] %vm3128_vm2, %v3097_v15  ;;  %3720 = vmatmul.msk.bf16.gmra.mxu3 %vm2519_vm1, %v4924_v21  ;;  %v814_v19 = vpack.c.bf16 %v779_v16, %v778_v27 }
 0x5dd   : > { %v2710_v32 = vpop.f32.mrf.mxu3 }
 0x5de   : > { %v2988_v31 = vadd.f32 %v2987_v45, %v2710_v32  ;;  %v4120_v32 = vunpack.c.l.bf16 %v4183_v40 }
 0x5e0   : > { %v3098_v18 = vadd.f32 %v5003_v26, %v2988_v31 }
 0x5e1   : > { %v3002_v42 = vpop.f32.mrf.mxu0 }
 0x5e2   : > { %3163 = vst.msk [vmem:[%s5013_s16 + $0x110] sm:$0xff] %vm3128_vm2, %v3098_v18 }
 0x5e4   : > { %3763 = vmatmul.msk.bf16.gmra.mxu0 %vm2519_vm1, %v814_v19 }
 0x5e5   : > { %v2712_v21 = vpop.f32.mrf.mxu3 }
 0x5e6   : > { %v2990_v48 = vadd.f32 %v2989_v58, %v2712_v21  ;;  %v3985_v58 = vunpack.c.h.bf16 %v4150_v8 }
 0x5e8   : > { %v3099_v47 = vadd.f32 %v5003_v26, %v2990_v48  ;;  %v781_v51 = vmul.f32 %v4113_v30, %v3985_v58 }
 0x5e9   : > { %v3004_v36 = vpop.f32.mrf.mxu0 }
 0x5ea   : > { %3164 = vst.msk [vmem:[%s5013_s16 + $0x118] sm:$0xff] %vm3128_vm2, %v3099_v47  ;;  %3721 = vmatmul.msk.bf16.gmra.mxu3 %vm2519_vm1, %v4936_v4  ;;  %v815_v44 = vpack.c.bf16 %v781_v51, %v780_v2 }
 0x5ed   : > { %v2715_v29 = vpop.f32.mrf.mxu3 }
 0x5ee   : > { %v2993_v45 = vadd.f32 %v2992_v52, %v2715_v29 }
 0x5f0   : > { %v3100_v34 = vadd.f32 %v5003_v26, %v2993_v45 }
 0x5f1   : > { %v3007_v1 = vpop.f32.mrf.mxu0 }
 0x5f2   : > { %3165 = vst.msk [vmem:[%s5013_s16 + $0x120] sm:$0xff] %vm3128_vm2, %v3100_v34 }
 0x5f4   : > { %3764 = vmatmul.msk.bf16.gmra.mxu0 %vm2519_vm1, %v815_v44 }
 0x5f5   : > { %v2717_v4 = vpop.f32.mrf.mxu3 }
 0x5f6   : > { %v2995_v53 = vadd.f32 %v2994_v56, %v2717_v4  ;;  %v4116_v56 = vunpack.c.l.bf16 %v4182_v10 }
 0x5f8   : > { %v3101_v60 = vadd.f32 %v5003_v26, %v2995_v53  ;;  %v782_v54 = vmul.f32 %v4116_v56, %v3988_v24 }
 0x5f9   : > { %v3009_v38 = vpop.f32.mrf.mxu0 }
 0x5fa   : > { %3166 = vst.msk [vmem:[%s5013_s16 + $0x128] sm:$0xff] %vm3128_vm2, %v3101_v60  ;;  %3722 = vmatmul.msk.bf16.gmra.mxu3 %vm2519_vm1, %v4948_v3  ;;  %v816_v14 = vpack.c.bf16 %v783_v25, %v782_v54 }
 0x5fd   : > { %v2720_v57 = vpop.f32.mrf.mxu3 }
 0x5fe   : > { %v2998_v28 = vadd.f32 %v2997_v0, %v2720_v57  ;;  %v4152_v0 = vld [vmem:[%s4860_s27 + $0xf8] sm:$0xff]  }
 0x5ff   : > { %v3992_v23 = vunpack.c.l.bf16 %v4152_v0  ;;  %v3993_v15 = vunpack.c.h.bf16 %v4152_v0 }
 0x600   : > { %v3102_v52 = vadd.f32 %v5003_v26, %v2998_v28 }
 0x601   : > { %v3012_v59 = vpop.f32.mrf.mxu0  ;;  %v784_v31 = vmul.f32 %v4120_v32, %v3992_v23 }
 0x602   : > { %3167 = vst.msk [vmem:[%s5013_s16 + $0x130] sm:$0xff] %vm3128_vm2, %v3102_v52 }
 0x604   : > { %3765 = vmatmul.msk.bf16.gmra.mxu0 %vm2519_vm1, %v816_v14 }
 0x605   : > { %v2722_v3 = vpop.f32.mrf.mxu3 }
 0x606   : > { %v3000_v35 = vadd.f32 %v2999_v12, %v2722_v3  ;;  %v4121_v12 = vunpack.c.h.bf16 %v4183_v40 }
 0x608   : > { %v3103_v17 = vadd.f32 %v5003_v26, %v3000_v35  ;;  %v785_v18 = vmul.f32 %v4121_v12, %v3993_v15 }
 0x609   : > { %v3014_v33 = vpop.f32.mrf.mxu0 }
 0x60a   : > { %3168 = vst.msk [vmem:[%s5013_s16 + $0x138] sm:$0xff] %vm3128_vm2, %v3103_v17  ;;  %3723 = vmatmul.msk.bf16.gmra.mxu3 %vm2519_vm1, %v4960_v49  ;;  %v817_v13 = vpack.c.bf16 %v785_v18, %v784_v31 }
 0x60d   : > { %v2725_v62 = vpop.f32.mrf.mxu3 }
 0x60e   : > { %v3003_v39 = vadd.f32 %v3002_v42, %v2725_v62 }
 0x610   : > { %v3104_v22 = vadd.f32 %v5003_v26, %v3003_v39 }
 0x611   : > { %v3017_v5 = vpop.f32.mrf.mxu0 }
 0x612   : > { %3169 = vst.msk [vmem:[%s5013_s16 + $0x140] sm:$0xff] %vm3128_vm2, %v3104_v22 }
 0x614   : > { %3766 = vmatmul.msk.bf16.gmra.mxu0 %vm2519_vm1, %v817_v13 }
 0x615   : > { %v2727_v63 = vpop.f32.mrf.mxu3 }
 0x616   : > { %v3005_v49 = vadd.f32 %v3004_v36, %v2727_v63 }
 0x618   : > { %v3105_v9 = vadd.f32 %v5003_v26, %v3005_v49 }
 0x619   : > { %v3019_v21 = vpop.f32.mrf.mxu0 }
 0x61a   : > { %3170 = vst.msk [vmem:[%s5013_s16 + $0x148] sm:$0xff] %vm3128_vm2, %v3105_v9  ;;  %3724 = vmatmul.msk.bf16.gmra.mxu3 %vm2519_vm1, %v4972_v46 }
 0x61d   : > { %v2730_v41 = vpop.f32.mrf.mxu3 }
 0x61e   : > { %v3008_v43 = vadd.f32 %v3007_v1, %v2730_v41 }
 0x620   : > { %v3106_v27 = vadd.f32 %v5003_v26, %v3008_v43 }
 0x621   : > { %v3022_v47 = vpop.f32.mrf.mxu0 }
 0x622   : > { %3171 = vst.msk [vmem:[%s5013_s16 + $0x150] sm:$0xff] %vm3128_vm2, %v3106_v27 }
 0x625   : > { %v2732_v16 = vpop.f32.mrf.mxu3 }
 0x626   : > { %v3010_v42 = vadd.f32 %v3009_v38, %v2732_v16 }
 0x628   : > { %v3107_v48 = vadd.f32 %v5003_v26, %v3010_v42 }
 0x629   : > { %v3024_v8 = vpop.f32.mrf.mxu0 }
 0x62a   : > { %3172 = vst.msk [vmem:[%s5013_s16 + $0x158] sm:$0xff] %vm3128_vm2, %v3107_v48  ;;  %3725 = vmatmul.msk.bf16.gmra.mxu3 %vm2519_vm1, %v4986_v37 }
 0x62d   : > { %v2735_v46 = vpop.f32.mrf.mxu3 }
 0x62e   : > { %v3013_v19 = vadd.f32 %v3012_v59, %v2735_v46 }
 0x630   : > { %v3108_v29 = vadd.f32 %v5003_v26, %v3013_v19 }
 0x631   : > { %v3027_v58 = vpop.f32.mrf.mxu0 }
 0x632   : > { %3173 = vst.msk [vmem:[%s5013_s16 + $0x160] sm:$0xff] %vm3128_vm2, %v3108_v29 }
 0x635   : > { %v2737_v36 = vpop.f32.mrf.mxu3 }
 0x636   : > { %v3015_v45 = vadd.f32 %v3014_v33, %v2737_v36 }
 0x638   : > { %v3109_v34 = vadd.f32 %v5003_v26, %v3015_v45 }
 0x639   : > { %v3029_v4 = vpop.f32.mrf.mxu0 }
 0x63a   : > { %3174 = vst.msk [vmem:[%s5013_s16 + $0x168] sm:$0xff] %vm3128_vm2, %v3109_v34  ;;  %3726 = vmatmul.msk.bf16.gmra.mxu3 %vm2519_vm1, %v5000_v7 }
 0x63d   : > { %v2740_v37 = vpop.f32.mrf.mxu3 }
 0x63e   : > { %v3018_v50 = vadd.f32 %v3017_v5, %v2740_v37 }
 0x640   : > { %v3110_v6 = vadd.f32 %v5003_v26, %v3018_v50 }
 0x641   : > { %v3032_v60 = vpop.f32.mrf.mxu0 }
 0x642   : > { %3175 = vst.msk [vmem:[%s5013_s16 + $0x170] sm:$0xff] %vm3128_vm2, %v3110_v6 }
 0x645   : > { %v2742_v55 = vpop.f32.mrf.mxu3 }
 0x646   : > { %v3020_v30 = vadd.f32 %v3019_v21, %v2742_v55 }
 0x648   : > { %v3111_v2 = vadd.f32 %v5003_v26, %v3020_v30 }
 0x649   : > { %v3034_v61 = vpop.f32.mrf.mxu0 }
 0x64a   : > { %3176 = vst.msk [vmem:[%s5013_s16 + $0x178] sm:$0xff] %vm3128_vm2, %v3111_v2 }
 0x64d   : > { %v2745_v51 = vpop.f32.mrf.mxu3 }
 0x64e   : > { %v3023_v1 = vadd.f32 %v3022_v47, %v2745_v51 }
 0x650   : > { %v3112_v7 = vadd.f32 %v5003_v26, %v3023_v1 }
 0x651   : > { %v3037_v56 = vpop.f32.mrf.mxu0 }
 0x652   : > { %3177 = vst.msk [vmem:[%s5013_s16 + $0x180] sm:$0xff] %vm3128_vm2, %v3112_v7 }
 0x655   : > { %v2747_v53 = vpop.f32.mrf.mxu3 }
 0x656   : > { %v3025_v44 = vadd.f32 %v3024_v8, %v2747_v53 }
 0x658   : > { %v3113_v57 = vadd.f32 %v5003_v26, %v3025_v44 }
 0x659   : > { %v3039_v35 = vpop.f32.mrf.mxu0 }
 0x65a   : > { %3178 = vst.msk [vmem:[%s5013_s16 + $0x188] sm:$0xff] %vm3128_vm2, %v3113_v57 }
 0x65d   : > { %v2750_v38 = vpop.f32.mrf.mxu3 }
 0x65e   : > { %v3028_v28 = vadd.f32 %v3027_v58, %v2750_v38 }
 0x660   : > { %v3114_v52 = vadd.f32 %v5003_v26, %v3028_v28 }
 0x661   : > { %v3042_v39 = vpop.f32.mrf.mxu0 }
 0x662   : > { %3179 = vst.msk [vmem:[%s5013_s16 + $0x190] sm:$0xff] %vm3128_vm2, %v3114_v52 }
 0x665   : > { %v2752_v10 = vpop.f32.mrf.mxu3 }
 0x666   : > { %v3030_v24 = vadd.f32 %v3029_v4, %v2752_v10 }
 0x668   : > { %v3115_v11 = vadd.f32 %v5003_v26, %v3030_v24 }
 0x669   : > { %v3044_v23 = vpop.f32.mrf.mxu0 }
 0x66a   : > { %3180 = vst.msk [vmem:[%s5013_s16 + $0x198] sm:$0xff] %vm3128_vm2, %v3115_v11 }
 0x66d   : > { %v2755_v20 = vpop.f32.mrf.mxu3 }
 0x66e   : > { %v3033_v54 = vadd.f32 %v3032_v60, %v2755_v20 }
 0x670   : > { %v3116_v25 = vadd.f32 %v5003_v26, %v3033_v54 }
 0x671   : > { %v3047_v31 = vpop.f32.mrf.mxu0 }
 0x672   : > { %3181 = vst.msk [vmem:[%s5013_s16 + $0x1a0] sm:$0xff] %vm3128_vm2, %v3116_v25 }
 0x675   : > { %v2757_v3 = vpop.f32.mrf.mxu3 }
 0x676   : > { %v3035_v14 = vadd.f32 %v3034_v61, %v2757_v3 }
 0x678   : > { %v3117_v59 = vadd.f32 %v5003_v26, %v3035_v14 }
 0x679   : > { %v3049_v9 = vpop.f32.mrf.mxu0 }
 0x67a   : > { %3182 = vst.msk [vmem:[%s5013_s16 + $0x1a8] sm:$0xff] %vm3128_vm2, %v3117_v59 }
 0x67d   : > { %v2760_v17 = vpop.f32.mrf.mxu3 }
 0x67e   : > { %v3038_v62 = vadd.f32 %v3037_v56, %v2760_v17 }
 0x680   : > { %v3118_v22 = vadd.f32 %v5003_v26, %v3038_v62 }
 0x681   : > { %v3052_v16 = vpop.f32.mrf.mxu0 }
 0x682   : > { %3183 = vst.msk [vmem:[%s5013_s16 + $0x1b0] sm:$0xff] %vm3128_vm2, %v3118_v22 }
 0x685   : > { %v2762_v33 = vpop.f32.mrf.mxu3 }
 0x686   : > { %v3040_v0 = vadd.f32 %v3039_v35, %v2762_v33 }
 0x688   : > { %v3119_v40 = vadd.f32 %v5003_v26, %v3040_v0 }
 0x689   : > { %v3054_v19 = vpop.f32.mrf.mxu0 }
 0x68a   : > { %3184 = vst.msk [vmem:[%s5013_s16 + $0x1b8] sm:$0xff] %vm3128_vm2, %v3119_v40 }
 0x68d   : > { %v2765_v15 = vpop.f32.mrf.mxu3 }
 0x68e   : > { %v3043_v32 = vadd.f32 %v3042_v39, %v2765_v15 }
 0x690   : > { %v3120_v12 = vadd.f32 %v5003_v26, %v3043_v32 }
 0x691   : > { %v3057_v45 = vpop.f32.mrf.mxu0 }
 0x692   : > { %3185 = vst.msk [vmem:[%s5013_s16 + $0x1c0] sm:$0xff] %vm3128_vm2, %v3120_v12 }
 0x695   : > { %v2767_v18 = vpop.f32.mrf.mxu3 }
 0x696   : > { %v3045_v63 = vadd.f32 %v3044_v23, %v2767_v18 }
 0x698   : > { %v3121_v49 = vadd.f32 %v5003_v26, %v3045_v63 }
 0x699   : > { %v3059_v50 = vpop.f32.mrf.mxu0 }
 0x69a   : > { %3186 = vst.msk [vmem:[%s5013_s16 + $0x1c8] sm:$0xff] %vm3128_vm2, %v3121_v49 }
 0x69d   : > { %v2770_v13 = vpop.f32.mrf.mxu3 }
 0x69e   : > { %v3048_v5 = vadd.f32 %v3047_v31, %v2770_v13 }
 0x6a0   : > { %v3122_v41 = vadd.f32 %v5003_v26, %v3048_v5 }
 0x6a2   : > { %3187 = vst.msk [vmem:[%s5013_s16 + $0x1d0] sm:$0xff] %vm3128_vm2, %v3122_v41 }
 0x6a5   : > { %v2772_v43 = vpop.f32.mrf.mxu3 }
 0x6a6   : > { %v3050_v27 = vadd.f32 %v3049_v9, %v2772_v43 }
 0x6a8   : > { %v3123_v21 = vadd.f32 %v5003_v26, %v3050_v27 }
 0x6aa   : > { %3188 = vst.msk [vmem:[%s5013_s16 + $0x1d8] sm:$0xff] %vm3128_vm2, %v3123_v21 }
 0x6ad   : > { %v2775_v42 = vpop.f32.mrf.mxu3 }
 0x6ae   : > { %v3053_v48 = vadd.f32 %v3052_v16, %v2775_v42 }
 0x6b0   : > { %v3124_v46 = vadd.f32 %v5003_v26, %v3053_v48 }
 0x6b2   : > { %3189 = vst.msk [vmem:[%s5013_s16 + $0x1e0] sm:$0xff] %vm3128_vm2, %v3124_v46 }
 0x6b5   : > { %v2777_v47 = vpop.f32.mrf.mxu3 }
 0x6b6   : > { %v3055_v29 = vadd.f32 %v3054_v19, %v2777_v47 }
 0x6b8   : > { %v3125_v36 = vadd.f32 %v5003_v26, %v3055_v29 }
 0x6ba   : > { %3190 = vst.msk [vmem:[%s5013_s16 + $0x1e8] sm:$0xff] %vm3128_vm2, %v3125_v36 }
 0x6bd   : > { %v2780_v34 = vpop.f32.mrf.mxu3 }
 0x6be   : > { %v3058_v8 = vadd.f32 %v3057_v45, %v2780_v34 }
 0x6c0   : > { %v3126_v37 = vadd.f32 %v5003_v26, %v3058_v8 }
 0x6c2   : > { %3191 = vst.msk [vmem:[%s5013_s16 + $0x1f0] sm:$0xff] %vm3128_vm2, %v3126_v37 }
 0x6c5   : > { %v2782_v6 = vpop.f32.mrf.mxu3 }
 0x6c6   : > { %v3060_v58 = vadd.f32 %v3059_v50, %v2782_v6 }
 0x6c8   : > { %v3127_v55 = vadd.f32 %v5003_v26, %v3060_v58 }
 0x6ca   : > { %3192 = vst.msk [vmem:[%s5013_s16 + $0x1f8] sm:$0xff] %vm3128_vm2, %v3127_v55 }
 0x6cb PF: > { %s23_s23 = sadd.s32 1, %s4216_s23  }
 0x6cc   : > { %p20_p4 = scmp.ge.s32.totalorder %s23_s23, 4  }
 0x6ce   :  { %22 = sbr.rel (!%p20_p4) target bundleno = 2 (0x2), region = 104 }

</bundles_post_ra>
